<compile_context>
chip_gen: v7x
topology: tpu7x:2x2x1
jax: 0.10.0
libtpu: 0.0.40
codegen_flags: <defaults>
</compile_context>

<pallas_src>
import functools

import jax
import jax.numpy as jnp
from jax import lax
from jax.experimental import pallas as pl
from jax.experimental.pallas import tpu as pltpu


def _fused_decoder_kernel(z_ref, w1z_ref, l1c_ref,
                          w2_ref, b2_ref, w3_ref, b3_ref, w4_ref, b4_ref,
                          w5t_ref, b5_ref, o_ref, *, height, width):
    """Whole decoder for one sample; everything stays in VMEM / vregs.

    z_ref   : (1, 1, ldim)            latent for this grid step (one sample)
    w1z_ref : (9*ldim, 32)            layer-1 latent taps, (dy,dx,c)-flattened
    l1c_ref : ((H+6)*(W+6), 32)       layer-1 coord-conv + bias constant
    wK_ref  : (288, 32), bK_ref (1,32)  layers 2..4 (3x3, im2col-flattened)
    w5t_ref : (4, 32),  b5_ref (4,1)    layer 5 (1x1), channel-major
    o_ref   : (1, 4, H*W)             NCHW-contiguous output slab
    """
    f32 = jnp.float32
    hp, wp = height + 6, width + 6

    # ---- layer 1: tiled latent is spatially constant ------------------------
    # One dot against all 9 taps at once (K = 9*ldim); products are identical
    # to the full conv over the tiled latent, only the spatial repetition and
    # the (B, ldim+2, H+8, W+8) input build are removed.
    z_row = z_ref[0]                                        # (1, ldim)
    z_cat = jnp.concatenate([z_row] * 9, axis=-1)           # (1, 9*ldim)
    zp = jnp.dot(z_cat, w1z_ref[...],
                 preferred_element_type=f32)                # (1, 32)
    h = jnp.maximum(l1c_ref[...] + zp, 0.0)                 # (hp*wp, 32)
    h = h.reshape(hp, wp, 32)

    # ---- layers 2..4: 3x3 valid conv + ReLU, one im2col matmul (K=288) each -
    for w_ref, b_ref in ((w2_ref, b2_ref), (w3_ref, b3_ref), (w4_ref, b4_ref)):
        hin, win, cin = h.shape
        hout, wout = hin - 2, win - 2
        cols = [h[dy:dy + hout, dx:dx + wout, :].reshape(hout * wout, cin)
                for dy in range(3) for dx in range(3)]
        patches = jnp.concatenate(cols, axis=-1)            # (hout*wout, 9*cin)
        y = jnp.dot(patches, w_ref[...],
                    preferred_element_type=f32) + b_ref[...]
        h = jnp.maximum(y, 0.0).reshape(hout, wout, 32)

    # ---- layer 5: 1x1 conv, channel-major (lane-dense store, NCHW-ready) ----
    h2d = h.reshape(height * width, 32)                     # (H*W, 32)
    out_cm = lax.dot_general(                               # (4, H*W)
        w5t_ref[...], h2d,
        dimension_numbers=(((1,), (1,)), ((), ())),
        preferred_element_type=f32)
    out_cm = out_cm + b5_ref[...]                           # (4,1) lane-broadcast
    o_ref[...] = out_cm.reshape(1, 4, height * width)


def expert_decoder_forward(z, w1z, l1c, w2, b2, w3, b3, w4, b4, w5t, b5,
                           *, height, width):
    """Fused decoder forward.  Returns (B, 4, H*W), NCHW-contiguous."""
    B, ldim = z.shape
    hw = height * width
    z3 = z.reshape(B, 1, ldim)

    # Advisory cost estimate (MXU flops + bytes moved).
    m1 = (height + 4) * (width + 4)
    m2 = (height + 2) * (width + 2)
    flops = B * (2 * 9 * ldim * 32
                 + 2 * (m1 + m2 + hw) * (9 * 32) * 32
                 + 2 * hw * 32 * 4)
    operands = (z3, w1z, l1c, w2, b2, w3, b3, w4, b4, w5t, b5)
    bytes_accessed = (sum(int(a.size) * a.dtype.itemsize for a in operands)
                      + B * 4 * hw * 4)

    kernel = functools.partial(_fused_decoder_kernel,
                               height=height, width=width)
    return pl.pallas_call(
        kernel,
        out_shape=jax.ShapeDtypeStruct((B, 4, hw), jnp.float32),
        grid=(B,),
        in_specs=[
            pl.BlockSpec((1, 1, ldim), lambda b: (b, 0, 0)),
            pl.BlockSpec(w1z.shape, lambda b: (0, 0)),
            pl.BlockSpec(l1c.shape, lambda b: (0, 0)),
            pl.BlockSpec(w2.shape, lambda b: (0, 0)),
            pl.BlockSpec(b2.shape, lambda b: (0, 0)),
            pl.BlockSpec(w3.shape, lambda b: (0, 0)),
            pl.BlockSpec(b3.shape, lambda b: (0, 0)),
            pl.BlockSpec(w4.shape, lambda b: (0, 0)),
            pl.BlockSpec(b4.shape, lambda b: (0, 0)),
            pl.BlockSpec(w5t.shape, lambda b: (0, 0)),
            pl.BlockSpec(b5.shape, lambda b: (0, 0)),
        ],
        out_specs=pl.BlockSpec((1, 4, hw), lambda b: (b, 0, 0)),
        compiler_params=pltpu.CompilerParams(
            dimension_semantics=("parallel",)),
        cost_estimate=pl.CostEstimate(flops=flops, transcendentals=0,
                                      bytes_accessed=bytes_accessed),
    )(*operands)


class ExpertDecoderPallas:
    """JAX/Pallas port of ExpertDecoder. Parameters created deterministically."""

    def __init__(self, height, width, ldim=16, key=None):
        self.height = height
        self.width = width
        self.ldim = ldim
        if key is None:
            key = jax.random.PRNGKey(0)

        # Conv stack in HWIO, matching
        # Conv2d(ldim+2,32,3) -> Conv2d(32,32,3) x3 -> Conv2d(32,4,1)
        layer_defs = [
            (3, 3, ldim + 2, 32),
            (3, 3, 32, 32),
            (3, 3, 32, 32),
            (3, 3, 32, 32),
            (1, 1, 32, 4),
        ]
        self.weights = []
        self.biases = []
        for (kh, kw, cin, cout) in layer_defs:
            key, kw_key, kb_key = jax.random.split(key, 3)
            fan_in = kh * kw * cin
            scale = 1.0 / jnp.sqrt(jnp.float32(fan_in))
            w = jax.random.uniform(kw_key, (kh, kw, cin, cout),
                                   jnp.float32, -scale, scale)
            bb = jax.random.uniform(kb_key, (cout,), jnp.float32, -scale, scale)
            self.weights.append(w)
            self.biases.append(bb)

        # coord_map_const: stack of (ys, xs) meshgrid('ij') over padded extent.
        ys = jnp.linspace(-1.0, 1.0, height + 8)
        xs = jnp.linspace(-1.0, 1.0, width + 8)
        ys_g, xs_g = jnp.meshgrid(ys, xs, indexing="ij")
        # (H+8, W+8, 2) NHWC channel order (ys first, xs second)
        self.coord_map = jnp.stack((ys_g, xs_g), axis=-1).astype(jnp.float32)

        # ---- precomputed kernel-friendly parameter forms --------------------
        hp, wp = height + 6, width + 6
        w1 = self.weights[0]                                  # (3,3,ldim+2,32)
        # latent taps flattened in (dy, dx, c) order -> (9*ldim, 32)
        self.w1z_flat = w1[:, :, :ldim, :].reshape(9 * ldim, 32)
        # coord-channel contribution + bias: batch independent, computed once.
        coord_nhwc = self.coord_map[None]                     # (1, H+8, W+8, 2)
        w1_coord = w1[:, :, ldim:, :]                         # (3, 3, 2, 32)
        dn = lax.conv_dimension_numbers(coord_nhwc.shape, w1_coord.shape,
                                        ("NHWC", "HWIO", "NHWC"))
        l1c = lax.conv_general_dilated(coord_nhwc, w1_coord, (1, 1), "VALID",
                                       dimension_numbers=dn)[0]
        self.l1_const = (l1c + self.biases[0]).reshape(hp * wp, 32)
        # layers 2-4: im2col-flattened weights (9*32, 32), row-vector biases.
        self.w_flat = [self.weights[i].reshape(9 * 32, 32) for i in (1, 2, 3)]
        self.b_row = [self.biases[i].reshape(1, 32) for i in (1, 2, 3)]
        # layer 5: channel-major 1x1 weights / column bias.
        self.w5_t = jnp.transpose(self.weights[4][0, 0])      # (4, 32)
        self.b5_col = self.biases[4].reshape(4, 1)

    def __call__(self, z):
        B = z.shape[0]
        out = expert_decoder_forward(
            z, self.w1z_flat, self.l1_const,
            self.w_flat[0], self.b_row[0],
            self.w_flat[1], self.b_row[1],
            self.w_flat[2], self.b_row[2],
            self.w5_t, self.b5_col,
            height=self.height, width=self.width)
        # (B, 4, H*W) is already NCHW-contiguous: free reshape, no transpose.
        return out.reshape(B, 4, self.height, self.width)

    def reference(self, z):
        """Pure-JAX reference (full input build + lax convs) for checking."""
        B = z.shape[0]
        Hp, Wp = self.height + 8, self.width + 8
        z_tiled = jnp.broadcast_to(z[:, None, None, :], (B, Hp, Wp, self.ldim))
        coord = jnp.broadcast_to(self.coord_map[None], (B, Hp, Wp, 2))
        h = jnp.concatenate((z_tiled, coord), axis=-1)
        n_layers = len(self.weights)
        for li in range(n_layers):
            dn = lax.conv_dimension_numbers(h.shape, self.weights[li].shape,
                                            ("NHWC", "HWIO", "NHWC"))
            h = lax.conv_general_dilated(
                h, self.weights[li], window_strides=(1, 1), padding="VALID",
                dimension_numbers=dn) + self.biases[li]
            if li < n_layers - 1:
                h = jnp.maximum(h, 0.0)
        return jnp.transpose(h, (0, 3, 1, 2))


if __name__ == "__main__":
    key = jax.random.PRNGKey(0)
    k_params, k_z = jax.random.split(key)

    height, width, ldim, batch = 8, 8, 16, 2
    dec = ExpertDecoderPallas(height, width, ldim=ldim, key=k_params)

    z = jax.random.normal(k_z, (batch, ldim), jnp.float32)

    out = jax.block_until_ready(dec(z))
    assert out.shape == (batch, 4, height, width), out.shape

    ref = jax.block_until_ready(dec.reference(z))
    # Products match the reference bit-for-bit (same inputs/weights feed the
    # MXU); only f32 accumulation order differs, so a tight tolerance holds.
    max_err = float(jnp.max(jnp.abs(out - ref)))
    assert jnp.allclose(out, ref, atol=2e-4, rtol=2e-4), max_err

    print("KERNEL_OK")
</pallas_src>

<mosaic_0001>
module attributes {stable_mosaic.version = 11 : i64} {
  func.func @_fused_decoder_kernel(%arg0: i32, %arg1: memref<1x1x16xf32, #tpu.memory_space<vmem>>, %arg2: memref<144x32xf32, #tpu.memory_space<vmem>>, %arg3: memref<196x32xf32, #tpu.memory_space<vmem>>, %arg4: memref<288x32xf32, #tpu.memory_space<vmem>>, %arg5: memref<1x32xf32, #tpu.memory_space<vmem>>, %arg6: memref<288x32xf32, #tpu.memory_space<vmem>>, %arg7: memref<1x32xf32, #tpu.memory_space<vmem>>, %arg8: memref<288x32xf32, #tpu.memory_space<vmem>>, %arg9: memref<1x32xf32, #tpu.memory_space<vmem>>, %arg10: memref<4x32xf32, #tpu.memory_space<vmem>>, %arg11: memref<4x1xf32, #tpu.memory_space<vmem>>, %arg12: memref<1x4x64xf32, #tpu.memory_space<vmem>>) attributes {dimension_semantics = [#tpu.dimension_semantics<parallel>], iteration_bounds = array<i64: 2>, scalar_prefetch = 0 : i64, scratch_operands = 0 : i64, tpu.core_type = #tpu.core_type<tc>, window_params = [{transform_indices = @transform_0, window_bounds = array<i64: 1, 1, 16>}, {pipeline_mode = #tpu.pipeline_mode<synchronous>, transform_indices = @transform_1, window_bounds = array<i64: 144, 32>}, {pipeline_mode = #tpu.pipeline_mode<synchronous>, transform_indices = @transform_2, window_bounds = array<i64: 196, 32>}, {pipeline_mode = #tpu.pipeline_mode<synchronous>, transform_indices = @transform_3, window_bounds = array<i64: 288, 32>}, {pipeline_mode = #tpu.pipeline_mode<synchronous>, transform_indices = @transform_4, window_bounds = array<i64: 1, 32>}, {pipeline_mode = #tpu.pipeline_mode<synchronous>, transform_indices = @transform_5, window_bounds = array<i64: 288, 32>}, {pipeline_mode = #tpu.pipeline_mode<synchronous>, transform_indices = @transform_6, window_bounds = array<i64: 1, 32>}, {pipeline_mode = #tpu.pipeline_mode<synchronous>, transform_indices = @transform_7, window_bounds = array<i64: 288, 32>}, {pipeline_mode = #tpu.pipeline_mode<synchronous>, transform_indices = @transform_8, window_bounds = array<i64: 1, 32>}, {pipeline_mode = #tpu.pipeline_mode<synchronous>, transform_indices = @transform_9, window_bounds = array<i64: 4, 32>}, {pipeline_mode = #tpu.pipeline_mode<synchronous>, transform_indices = @transform_10, window_bounds = array<i64: 4, 1>}, {transform_indices = @transform_11, window_bounds = array<i64: 1, 4, 64>}]} {
    %c0 = arith.constant 0 : index
    %c0_0 = arith.constant 0 : index
    %c0_1 = arith.constant 0 : index
    %0 = vector.load %arg1[%c0, %c0_0, %c0_1] : memref<1x1x16xf32, #tpu.memory_space<vmem>>, vector<1x1x16xf32>
    %1 = vector.shape_cast %0 : vector<1x1x16xf32> to vector<1x16xf32>
    %2 = tpu.concatenate %1, %1, %1, %1, %1, %1, %1, %1, %1 in 1 : vector<1x16xf32>, vector<1x16xf32>, vector<1x16xf32>, vector<1x16xf32>, vector<1x16xf32>, vector<1x16xf32>, vector<1x16xf32>, vector<1x16xf32>, vector<1x16xf32> -> vector<1x144xf32>
    %c0_2 = arith.constant 0 : index
    %c0_3 = arith.constant 0 : index
    %3 = vector.load %arg2[%c0_2, %c0_3] : memref<144x32xf32, #tpu.memory_space<vmem>>, vector<144x32xf32>
    %cst = arith.constant dense<0.000000e+00> : vector<1x32xf32>
    %4 = tpu.matmul %2, %3, %cst {dimension_numbers = #tpu.dot_dimension_numbers<[1], [0], [0], [1], [0, 0, 1, 1], [], []>} : vector<1x144xf32>, vector<144x32xf32>, vector<1x32xf32> -> vector<1x32xf32>
    %c0_4 = arith.constant 0 : index
    %c0_5 = arith.constant 0 : index
    %5 = vector.load %arg3[%c0_4, %c0_5] : memref<196x32xf32, #tpu.memory_space<vmem>>, vector<196x32xf32>
    %6 = vector.broadcast %4 : vector<1x32xf32> to vector<196x32xf32>
    %7 = arith.addf %5, %6 : vector<196x32xf32>
    %cst_6 = arith.constant 0.000000e+00 : f32
    %8 = vector.broadcast %cst_6 : f32 to vector<196x32xf32>
    %9 = arith.maximumf %7, %8 : vector<196x32xf32>
    %10 = vector.shape_cast %9 : vector<196x32xf32> to vector<14x14x32xf32>
    %11 = vector.extract_strided_slice %10 {offsets = [0, 0, 0], sizes = [12, 12, 32], strides = [1, 1, 1]} : vector<14x14x32xf32> to vector<12x12x32xf32>
    %12 = vector.shape_cast %11 : vector<12x12x32xf32> to vector<144x32xf32>
    %13 = vector.extract_strided_slice %10 {offsets = [0, 1, 0], sizes = [12, 12, 32], strides = [1, 1, 1]} : vector<14x14x32xf32> to vector<12x12x32xf32>
    %14 = vector.shape_cast %13 : vector<12x12x32xf32> to vector<144x32xf32>
    %15 = vector.extract_strided_slice %10 {offsets = [0, 2, 0], sizes = [12, 12, 32], strides = [1, 1, 1]} : vector<14x14x32xf32> to vector<12x12x32xf32>
    %16 = vector.shape_cast %15 : vector<12x12x32xf32> to vector<144x32xf32>
    %17 = vector.extract_strided_slice %10 {offsets = [1, 0, 0], sizes = [12, 12, 32], strides = [1, 1, 1]} : vector<14x14x32xf32> to vector<12x12x32xf32>
    %18 = vector.shape_cast %17 : vector<12x12x32xf32> to vector<144x32xf32>
    %19 = vector.extract_strided_slice %10 {offsets = [1, 1, 0], sizes = [12, 12, 32], strides = [1, 1, 1]} : vector<14x14x32xf32> to vector<12x12x32xf32>
    %20 = vector.shape_cast %19 : vector<12x12x32xf32> to vector<144x32xf32>
    %21 = vector.extract_strided_slice %10 {offsets = [1, 2, 0], sizes = [12, 12, 32], strides = [1, 1, 1]} : vector<14x14x32xf32> to vector<12x12x32xf32>
    %22 = vector.shape_cast %21 : vector<12x12x32xf32> to vector<144x32xf32>
    %23 = vector.extract_strided_slice %10 {offsets = [2, 0, 0], sizes = [12, 12, 32], strides = [1, 1, 1]} : vector<14x14x32xf32> to vector<12x12x32xf32>
    %24 = vector.shape_cast %23 : vector<12x12x32xf32> to vector<144x32xf32>
    %25 = vector.extract_strided_slice %10 {offsets = [2, 1, 0], sizes = [12, 12, 32], strides = [1, 1, 1]} : vector<14x14x32xf32> to vector<12x12x32xf32>
    %26 = vector.shape_cast %25 : vector<12x12x32xf32> to vector<144x32xf32>
    %27 = vector.extract_strided_slice %10 {offsets = [2, 2, 0], sizes = [12, 12, 32], strides = [1, 1, 1]} : vector<14x14x32xf32> to vector<12x12x32xf32>
    %28 = vector.shape_cast %27 : vector<12x12x32xf32> to vector<144x32xf32>
    %29 = tpu.concatenate %12, %14, %16, %18, %20, %22, %24, %26, %28 in 1 : vector<144x32xf32>, vector<144x32xf32>, vector<144x32xf32>, vector<144x32xf32>, vector<144x32xf32>, vector<144x32xf32>, vector<144x32xf32>, vector<144x32xf32>, vector<144x32xf32> -> vector<144x288xf32>
    %c0_7 = arith.constant 0 : index
    %c0_8 = arith.constant 0 : index
    %30 = vector.load %arg4[%c0_7, %c0_8] : memref<288x32xf32, #tpu.memory_space<vmem>>, vector<288x32xf32>
    %cst_9 = arith.constant dense<0.000000e+00> : vector<144x32xf32>
    %31 = tpu.matmul %29, %30, %cst_9 {dimension_numbers = #tpu.dot_dimension_numbers<[1], [0], [0], [1], [0, 0, 1, 1], [], []>} : vector<144x288xf32>, vector<288x32xf32>, vector<144x32xf32> -> vector<144x32xf32>
    %c0_10 = arith.constant 0 : index
    %c0_11 = arith.constant 0 : index
    %32 = vector.load %arg5[%c0_10, %c0_11] : memref<1x32xf32, #tpu.memory_space<vmem>>, vector<1x32xf32>
    %33 = vector.broadcast %32 : vector<1x32xf32> to vector<144x32xf32>
    %34 = arith.addf %31, %33 : vector<144x32xf32>
    %cst_12 = arith.constant 0.000000e+00 : f32
    %35 = vector.broadcast %cst_12 : f32 to vector<144x32xf32>
    %36 = arith.maximumf %34, %35 : vector<144x32xf32>
    %37 = vector.shape_cast %36 : vector<144x32xf32> to vector<12x12x32xf32>
    %38 = vector.extract_strided_slice %37 {offsets = [0, 0, 0], sizes = [10, 10, 32], strides = [1, 1, 1]} : vector<12x12x32xf32> to vector<10x10x32xf32>
    %39 = vector.shape_cast %38 : vector<10x10x32xf32> to vector<100x32xf32>
    %40 = vector.extract_strided_slice %37 {offsets = [0, 1, 0], sizes = [10, 10, 32], strides = [1, 1, 1]} : vector<12x12x32xf32> to vector<10x10x32xf32>
    %41 = vector.shape_cast %40 : vector<10x10x32xf32> to vector<100x32xf32>
    %42 = vector.extract_strided_slice %37 {offsets = [0, 2, 0], sizes = [10, 10, 32], strides = [1, 1, 1]} : vector<12x12x32xf32> to vector<10x10x32xf32>
    %43 = vector.shape_cast %42 : vector<10x10x32xf32> to vector<100x32xf32>
    %44 = vector.extract_strided_slice %37 {offsets = [1, 0, 0], sizes = [10, 10, 32], strides = [1, 1, 1]} : vector<12x12x32xf32> to vector<10x10x32xf32>
    %45 = vector.shape_cast %44 : vector<10x10x32xf32> to vector<100x32xf32>
    %46 = vector.extract_strided_slice %37 {offsets = [1, 1, 0], sizes = [10, 10, 32], strides = [1, 1, 1]} : vector<12x12x32xf32> to vector<10x10x32xf32>
    %47 = vector.shape_cast %46 : vector<10x10x32xf32> to vector<100x32xf32>
    %48 = vector.extract_strided_slice %37 {offsets = [1, 2, 0], sizes = [10, 10, 32], strides = [1, 1, 1]} : vector<12x12x32xf32> to vector<10x10x32xf32>
    %49 = vector.shape_cast %48 : vector<10x10x32xf32> to vector<100x32xf32>
    %50 = vector.extract_strided_slice %37 {offsets = [2, 0, 0], sizes = [10, 10, 32], strides = [1, 1, 1]} : vector<12x12x32xf32> to vector<10x10x32xf32>
    %51 = vector.shape_cast %50 : vector<10x10x32xf32> to vector<100x32xf32>
    %52 = vector.extract_strided_slice %37 {offsets = [2, 1, 0], sizes = [10, 10, 32], strides = [1, 1, 1]} : vector<12x12x32xf32> to vector<10x10x32xf32>
    %53 = vector.shape_cast %52 : vector<10x10x32xf32> to vector<100x32xf32>
    %54 = vector.extract_strided_slice %37 {offsets = [2, 2, 0], sizes = [10, 10, 32], strides = [1, 1, 1]} : vector<12x12x32xf32> to vector<10x10x32xf32>
    %55 = vector.shape_cast %54 : vector<10x10x32xf32> to vector<100x32xf32>
    %56 = tpu.concatenate %39, %41, %43, %45, %47, %49, %51, %53, %55 in 1 : vector<100x32xf32>, vector<100x32xf32>, vector<100x32xf32>, vector<100x32xf32>, vector<100x32xf32>, vector<100x32xf32>, vector<100x32xf32>, vector<100x32xf32>, vector<100x32xf32> -> vector<100x288xf32>
    %c0_13 = arith.constant 0 : index
    %c0_14 = arith.constant 0 : index
    %57 = vector.load %arg6[%c0_13, %c0_14] : memref<288x32xf32, #tpu.memory_space<vmem>>, vector<288x32xf32>
    %cst_15 = arith.constant dense<0.000000e+00> : vector<100x32xf32>
    %58 = tpu.matmul %56, %57, %cst_15 {dimension_numbers = #tpu.dot_dimension_numbers<[1], [0], [0], [1], [0, 0, 1, 1], [], []>} : vector<100x288xf32>, vector<288x32xf32>, vector<100x32xf32> -> vector<100x32xf32>
    %c0_16 = arith.constant 0 : index
    %c0_17 = arith.constant 0 : index
    %59 = vector.load %arg7[%c0_16, %c0_17] : memref<1x32xf32, #tpu.memory_space<vmem>>, vector<1x32xf32>
    %60 = vector.broadcast %59 : vector<1x32xf32> to vector<100x32xf32>
    %61 = arith.addf %58, %60 : vector<100x32xf32>
    %cst_18 = arith.constant 0.000000e+00 : f32
    %62 = vector.broadcast %cst_18 : f32 to vector<100x32xf32>
    %63 = arith.maximumf %61, %62 : vector<100x32xf32>
    %64 = vector.shape_cast %63 : vector<100x32xf32> to vector<10x10x32xf32>
    %65 = vector.extract_strided_slice %64 {offsets = [0, 0, 0], sizes = [8, 8, 32], strides = [1, 1, 1]} : vector<10x10x32xf32> to vector<8x8x32xf32>
    %66 = vector.shape_cast %65 : vector<8x8x32xf32> to vector<64x32xf32>
    %67 = vector.extract_strided_slice %64 {offsets = [0, 1, 0], sizes = [8, 8, 32], strides = [1, 1, 1]} : vector<10x10x32xf32> to vector<8x8x32xf32>
    %68 = vector.shape_cast %67 : vector<8x8x32xf32> to vector<64x32xf32>
    %69 = vector.extract_strided_slice %64 {offsets = [0, 2, 0], sizes = [8, 8, 32], strides = [1, 1, 1]} : vector<10x10x32xf32> to vector<8x8x32xf32>
    %70 = vector.shape_cast %69 : vector<8x8x32xf32> to vector<64x32xf32>
    %71 = vector.extract_strided_slice %64 {offsets = [1, 0, 0], sizes = [8, 8, 32], strides = [1, 1, 1]} : vector<10x10x32xf32> to vector<8x8x32xf32>
    %72 = vector.shape_cast %71 : vector<8x8x32xf32> to vector<64x32xf32>
    %73 = vector.extract_strided_slice %64 {offsets = [1, 1, 0], sizes = [8, 8, 32], strides = [1, 1, 1]} : vector<10x10x32xf32> to vector<8x8x32xf32>
    %74 = vector.shape_cast %73 : vector<8x8x32xf32> to vector<64x32xf32>
    %75 = vector.extract_strided_slice %64 {offsets = [1, 2, 0], sizes = [8, 8, 32], strides = [1, 1, 1]} : vector<10x10x32xf32> to vector<8x8x32xf32>
    %76 = vector.shape_cast %75 : vector<8x8x32xf32> to vector<64x32xf32>
    %77 = vector.extract_strided_slice %64 {offsets = [2, 0, 0], sizes = [8, 8, 32], strides = [1, 1, 1]} : vector<10x10x32xf32> to vector<8x8x32xf32>
    %78 = vector.shape_cast %77 : vector<8x8x32xf32> to vector<64x32xf32>
    %79 = vector.extract_strided_slice %64 {offsets = [2, 1, 0], sizes = [8, 8, 32], strides = [1, 1, 1]} : vector<10x10x32xf32> to vector<8x8x32xf32>
    %80 = vector.shape_cast %79 : vector<8x8x32xf32> to vector<64x32xf32>
    %81 = vector.extract_strided_slice %64 {offsets = [2, 2, 0], sizes = [8, 8, 32], strides = [1, 1, 1]} : vector<10x10x32xf32> to vector<8x8x32xf32>
    %82 = vector.shape_cast %81 : vector<8x8x32xf32> to vector<64x32xf32>
    %83 = tpu.concatenate %66, %68, %70, %72, %74, %76, %78, %80, %82 in 1 : vector<64x32xf32>, vector<64x32xf32>, vector<64x32xf32>, vector<64x32xf32>, vector<64x32xf32>, vector<64x32xf32>, vector<64x32xf32>, vector<64x32xf32>, vector<64x32xf32> -> vector<64x288xf32>
    %c0_19 = arith.constant 0 : index
    %c0_20 = arith.constant 0 : index
    %84 = vector.load %arg8[%c0_19, %c0_20] : memref<288x32xf32, #tpu.memory_space<vmem>>, vector<288x32xf32>
    %cst_21 = arith.constant dense<0.000000e+00> : vector<64x32xf32>
    %85 = tpu.matmul %83, %84, %cst_21 {dimension_numbers = #tpu.dot_dimension_numbers<[1], [0], [0], [1], [0, 0, 1, 1], [], []>} : vector<64x288xf32>, vector<288x32xf32>, vector<64x32xf32> -> vector<64x32xf32>
    %c0_22 = arith.constant 0 : index
    %c0_23 = arith.constant 0 : index
    %86 = vector.load %arg9[%c0_22, %c0_23] : memref<1x32xf32, #tpu.memory_space<vmem>>, vector<1x32xf32>
    %87 = vector.broadcast %86 : vector<1x32xf32> to vector<64x32xf32>
    %88 = arith.addf %85, %87 : vector<64x32xf32>
    %cst_24 = arith.constant 0.000000e+00 : f32
    %89 = vector.broadcast %cst_24 : f32 to vector<64x32xf32>
    %90 = arith.maximumf %88, %89 : vector<64x32xf32>
    %91 = vector.shape_cast %90 : vector<64x32xf32> to vector<8x8x32xf32>
    %92 = vector.shape_cast %91 : vector<8x8x32xf32> to vector<64x32xf32>
    %c0_25 = arith.constant 0 : index
    %c0_26 = arith.constant 0 : index
    %93 = vector.load %arg10[%c0_25, %c0_26] : memref<4x32xf32, #tpu.memory_space<vmem>>, vector<4x32xf32>
    %cst_27 = arith.constant dense<0.000000e+00> : vector<4x64xf32>
    %94 = tpu.matmul %93, %92, %cst_27 {dimension_numbers = #tpu.dot_dimension_numbers<[1], [1], [0], [0], [0, 0, 1, 0], [], []>} : vector<4x32xf32>, vector<64x32xf32>, vector<4x64xf32> -> vector<4x64xf32>
    %c0_28 = arith.constant 0 : index
    %c0_29 = arith.constant 0 : index
    %95 = vector.load %arg11[%c0_28, %c0_29] : memref<4x1xf32, #tpu.memory_space<vmem>>, vector<4x1xf32>
    %96 = vector.broadcast %95 : vector<4x1xf32> to vector<4x64xf32>
    %97 = arith.addf %94, %96 : vector<4x64xf32>
    %98 = vector.shape_cast %97 : vector<4x64xf32> to vector<1x4x64xf32>
    %c0_30 = arith.constant 0 : index
    %c0_31 = arith.constant 0 : index
    %c0_32 = arith.constant 0 : index
    %99 = vector.load %arg12[%c0_30, %c0_31, %c0_32] : memref<1x4x64xf32, #tpu.memory_space<vmem>>, vector<1x4x64xf32>
    tpu.vector_store %arg12[%c0_30, %c0_31, %c0_32], %98 {strides = array<i32>} : memref<1x4x64xf32, #tpu.memory_space<vmem>>, vector<1x4x64xf32>,
    return
  }
  func.func @transform_0(%arg0: i32) -> (i32, i32, i32) {
    %c0_i32 = arith.constant 0 : i32
    %c0_i32_0 = arith.constant 0 : i32
    %c0_i32_1 = arith.constant 0 : i32
    return %arg0, %c0_i32, %c0_i32_0 : i32, i32, i32
  }
  func.func @transform_1(%arg0: i32) -> (i32, i32) {
    %c0_i32 = arith.constant 0 : i32
    %c0_i32_0 = arith.constant 0 : i32
    %c0_i32_1 = arith.constant 0 : i32
    return %c0_i32, %c0_i32_0 : i32, i32
  }
  func.func @transform_2(%arg0: i32) -> (i32, i32) {
    %c0_i32 = arith.constant 0 : i32
    %c0_i32_0 = arith.constant 0 : i32
    %c0_i32_1 = arith.constant 0 : i32
    return %c0_i32, %c0_i32_0 : i32, i32
  }
  func.func @transform_3(%arg0: i32) -> (i32, i32) {
    %c0_i32 = arith.constant 0 : i32
    %c0_i32_0 = arith.constant 0 : i32
    %c0_i32_1 = arith.constant 0 : i32
    return %c0_i32, %c0_i32_0 : i32, i32
  }
  func.func @transform_4(%arg0: i32) -> (i32, i32) {
    %c0_i32 = arith.constant 0 : i32
    %c0_i32_0 = arith.constant 0 : i32
    %c0_i32_1 = arith.constant 0 : i32
    return %c0_i32, %c0_i32_0 : i32, i32
  }
  func.func @transform_5(%arg0: i32) -> (i32, i32) {
    %c0_i32 = arith.constant 0 : i32
    %c0_i32_0 = arith.constant 0 : i32
    %c0_i32_1 = arith.constant 0 : i32
    return %c0_i32, %c0_i32_0 : i32, i32
  }
  func.func @transform_6(%arg0: i32) -> (i32, i32) {
    %c0_i32 = arith.constant 0 : i32
    %c0_i32_0 = arith.constant 0 : i32
    %c0_i32_1 = arith.constant 0 : i32
    return %c0_i32, %c0_i32_0 : i32, i32
  }
  func.func @transform_7(%arg0: i32) -> (i32, i32) {
    %c0_i32 = arith.constant 0 : i32
    %c0_i32_0 = arith.constant 0 : i32
    %c0_i32_1 = arith.constant 0 : i32
    return %c0_i32, %c0_i32_0 : i32, i32
  }
  func.func @transform_8(%arg0: i32) -> (i32, i32) {
    %c0_i32 = arith.constant 0 : i32
    %c0_i32_0 = arith.constant 0 : i32
    %c0_i32_1 = arith.constant 0 : i32
    return %c0_i32, %c0_i32_0 : i32, i32
  }
  func.func @transform_9(%arg0: i32) -> (i32, i32) {
    %c0_i32 = arith.constant 0 : i32
    %c0_i32_0 = arith.constant 0 : i32
    %c0_i32_1 = arith.constant 0 : i32
    return %c0_i32, %c0_i32_0 : i32, i32
  }
  func.func @transform_10(%arg0: i32) -> (i32, i32) {
    %c0_i32 = arith.constant 0 : i32
    %c0_i32_0 = arith.constant 0 : i32
    %c0_i32_1 = arith.constant 0 : i32
    return %c0_i32, %c0_i32_0 : i32, i32
  }
  func.func @transform_11(%arg0: i32) -> (i32, i32, i32) {
    %c0_i32 = arith.constant 0 : i32
    %c0_i32_0 = arith.constant 0 : i32
    %c0_i32_1 = arith.constant 0 : i32
    return %arg0, %c0_i32, %c0_i32_0 : i32, i32, i32
  }
}

</mosaic_0001>

<bundles_post_ra>
// kernel: tpu_custom_call.1
= control target key start
LH: loop header
LB: loop body
LE: loop exit
PB: predicated region body
PF: predicated region fallthrough
CT: control target
= control target key end

     0   :  { %s13664_s0 = inlined_call_operand.vmem [shape: f32[2,1,16], index: 0, kind: input, shape index: {}]   ;;  %s13665_s1 = inlined_call_operand.vmem [shape: f32[144,32], index: 1, kind: input, shape index: {}]   ;;  %s13666_s2 = inlined_call_operand.vmem [shape: f32[196,32], index: 2, kind: input, shape index: {}]   ;;  %s13667_s3 = inlined_call_operand.vmem [shape: f32[288,32], index: 3, kind: input, shape index: {}]   ;;  %s13668_s4 = inlined_call_operand.vmem [shape: f32[1,32], index: 4, kind: input, shape index: {}]   ;;  %s13669_s5 = inlined_call_operand.vmem [shape: f32[288,32], index: 5, kind: input, shape index: {}]   ;;  %s13670_s6 = inlined_call_operand.vmem [shape: f32[1,32], index: 6, kind: input, shape index: {}]   ;;  %s13671_s7 = inlined_call_operand.vmem [shape: f32[288,32], index: 7, kind: input, shape index: {}]   ;;  %s13672_s8 = inlined_call_operand.vmem [shape: f32[1,32], index: 8, kind: input, shape index: {}]   ;;  %s13673_s9 = inlined_call_operand.vmem [shape: f32[4,32], index: 9, kind: input, shape index: {}]   ;;  %s13674_s10 = inlined_call_operand.vmem [shape: f32[4,1], index: 10, kind: input, shape index: {}]   ;;  %s13675_s11 = inlined_call_operand.hbm [shape: f32[2,4,64], index: 11, kind: output, shape index: {}]  }
   0x1   :  { %13954 = sst [smem:[#allocation134_spill]] %s13664_s0 }
   0x2   :  { %13955 = sst [smem:[#allocation135_spill]] %s13665_s1 }
   0x3   :  { %13956 = sst [smem:[#allocation136_spill]] %s13666_s2 }
   0x4   :  { %16 = vsyncpa [#allocation3], 0 }
   0x5   :  { %18 = vsyncpa [#allocation3 + $0x1], 0  ;;  %s8576_s17 = smov 0   ;;  %s8578_s18 = smov 0  }
   0x6   :  { %s8580_s19 = smov 0   ;;  %s8582_s20 = smov 0  }
   0x7 LB: > { %s8597_s21 = sadd.s32 4294967295, %s8501_s20   ;;  %s7209_s22 = sadd.s32 4294967294, %s8501_s20   ;;  %s8501_s20 = sphi %s8582_s20, %s14569_s20   ;;  %s8497_s19 = sphi %s8580_s19, %s14568_s19   ;;  %s8493_s18 = sphi %s8578_s18, %s14567_s18   ;;  %s8489_s17 = sphi %s8576_s17, %s14566_s17  }
   0x8   : > { %s8601_s23 = sadd.s32 1, %s8501_s20   ;;  %s267_s24 = sadd.s32 1, %s8497_s19 }
   0x9   : > { %s264_s25 = ssub.s32 %s8501_s20, %s8601_s23  ;;  %p277_p0 = scmp.ne.s32.totalorder %s8497_s19, %s8493_s18 }
   0xa   : > { %p265_p1 = scmp.eq.s32.totalorder %s264_s25, 0  ;;  %p278_p2 = scmp.eq.s32.totalorder %s8597_s21, 1 }
   0xb   : > { %p283_p3 = scmp.ne.s32.totalorder %s8493_s18, %s8489_s17  ;;  %p284_p4 = scmp.eq.s32.totalorder %s7209_s22, 1 }
   0xc   : > { %s8612_s26 = scalar_select %p265_p1, %s8497_s19, %s267_s24  }
   0xd   : > { %p8614_p5 = por %p278_p2, %p277_p0  ;;  %p8618_p6 = por %p284_p4, %p283_p3 }
   0xe   : > { %p7212_p7 = scmp.ge.s32.totalorder %s8501_s20, 1  ;;  %p338_p8 = scmp.lt.s32.totalorder %s8501_s20, 3 }
  0x10   : > { %p339_p9 = pnand %p7212_p7, %p338_p8 }
  0x12   : > { %342 = sbr.rel (%p339_p9) target bundleno = 2090 (0x82a), region = 64 }
  0x19   : > { %p376_p10 = scmp.lt.s32.totalorder %s8597_s21, 1  ;;  %v381_v0 = vlaneseq  ;;  %s13959_s1 = sld [smem:[#allocation135_spill]]  ;;  %v13680_v2 = vmov 0.0|0.0   ;;  %vm406_vm0 = vcmask 130048   ;;  %vm408_vm1 = vcmask 261120   ;;  %v2928_v47 = vld [vmem:[%s13667_s3 + $0x100] sm:$0xff] }
  0x1a   : > { %7625 = vmatprep.subr.bf16.mxu0 %v13680_v2  ;;  %7652 = vmatprep.subr.bf16.mxu1 %v13680_v2  ;;  %s13960_s0 = sld [smem:[#allocation134_spill]]  ;;  %s8505_s22 = smov 48   ;;  %vm410_vm2 = vcmask 392192   ;;  %vm412_vm3 = vcmask 523264   ;;  %vm414_vm4 = vcmask 654336   ;;  %vm416_vm5 = vcmask 785408   ;;  %vm13598_vm15 = vmpackc.low %vm408_vm1, %vm408_vm1 }
  0x1b   : > { %s377_s14 = scalar_select %p376_p10, %s8597_s21, 1  ;;  %v8634_v4 = vshrl.u32 %v381_v0, 7  ;;  %vm418_vm6 = vcmask 916480   ;;  %v2929_v48 = vld [vmem:[%s13667_s3 + $0x108] sm:$0xff]  ;;  %v2930_v49 = vld [vmem:[%s13667_s3 + $0x110] sm:$0xff]  ;;  %v2931_v51 = vld [vmem:[%s13667_s3 + $0x118] sm:$0xff] }
  0x1c   : > { %s13676_s12 = smov 32   ;;  %s13848_s13 = smov 64   ;;  %v7700_v50 = vpack.c.bf16 %v2929_v48, %v2928_v47  ;;  %v7704_v52 = vpack.c.bf16 %v2931_v51, %v2930_v49  ;;  %v8511_v53 = vmov 1983009808   ;;  %vm1030_vm7 = vcmask 1040384  }
  0x1d   : > { %v383_v8 = vsub.s32 0, %v8634_v4  ;;  %s8508_s24 = smov 80   ;;  %s13678_s25 = smov 96   ;;  %v616_v54 = vunpack.c.l.s4 %v8511_v53  ;;  %vm1031_vm8 = vcmask 1042434   ;;  %vm1033_vm9 = vcmask 1044484  }
  0x1e   : > { %s8510_s16 = smov 112   ;;  %s13961_s2 = sld [smem:[#allocation136_spill]]  ;;  %vm1035_vm10 = vcmask 1046534   ;;  %vm1032_vm11 = vmor %vm1030_vm7, %vm1031_vm8  ;;  %vm8512_vm14 = vmmov 0  }
  0x1f   : > { %v420_v1 = vld [vmem:[%s13959_s1] sm:$0xff]  ;;  %v421_v3 = vld [vmem:[%s13959_s1 + $0x8] sm:$0xff]  ;;  %v422_v6 = vld [vmem:[%s13959_s1 + $0x10] sm:$0xff]  ;;  %v617_v55 = vunpack.c.0.s8 %v616_v54  ;;  %s14090_s29 = smov 96   ;;  %s14307_s15 = smov 64  }
  0x20   : > { %v7626_v5 = vpack.c.bf16 %v421_v3, %v420_v1  ;;  %v423_v7 = vld [vmem:[%s13959_s1 + $0x18] sm:$0xff]  ;;  %s378_s30 = scalar_lea.vmem %s13960_s0, %s377_s14  ;;  %v424_v12 = vld [vmem:[%s13959_s1 + $0x20] sm:$0xff]  ;;  %v425_v13 = vld [vmem:[%s13959_s1 + $0x28] sm:$0xff]  ;;  %s8504_s14 = smov 16  }
  0x21   : > { %v8646_v9 = vld [vmem:[%s378_s30] sm:$0x1]  ;;  %v7629_v10 = vpack.c.bf16 %v423_v7, %v422_v6  ;;  %v7632_v14 = vpack.c.bf16 %v425_v13, %v424_v12  ;;  %v426_v15 = vld [vmem:[%s13959_s1 + $0x30] sm:$0xff]  ;;  %v427_v16 = vld [vmem:[%s13959_s1 + $0x38] sm:$0xff]  ;;  %v8749_v3 = vsub.s32 %v617_v55, %v8634_v4 }
  0x22   : > { %7627 = vmatpush1.bf16.msra.mxu0 %v7626_v5  ;;  %v384_v11 = vrot.slane %v8646_v9, %v383_v8  ;;  %7214 = vmatprep.mubr.msk.f32.mxu0 %vm406_vm0, %v8646_v9  ;;  %v7635_v17 = vpack.c.bf16 %v427_v16, %v426_v15  ;;  %v428_v18 = vld [vmem:[%s13959_s1 + $0x40] sm:$0xff]  ;;  %v429_v19 = vld [vmem:[%s13959_s1 + $0x48] sm:$0xff]  ;;  %v430_v21 = vld [vmem:[%s13959_s1 + $0x50] sm:$0xff] }
  0x23   : > { %7628 = vmatprep.subr.bf16.mxu0 %v13680_v2  ;;  %v7638_v20 = vpack.c.bf16 %v429_v19, %v428_v18  ;;  %v431_v22 = vld [vmem:[%s13959_s1 + $0x58] sm:$0xff]  ;;  %v432_v24 = vld [vmem:[%s13959_s1 + $0x60] sm:$0xff]  ;;  %v433_v25 = vld [vmem:[%s13959_s1 + $0x68] sm:$0xff] }
  0x24   : > { %385 = vrot.lane.b32.xlu0 %v384_v11, %s8504_s14  ;;  %391 = vrot.lane.b32.xlu1 %v384_v11, %s8505_s22  ;;  %v7641_v23 = vpack.c.bf16 %v431_v22, %v430_v21  ;;  %v7644_v26 = vpack.c.bf16 %v433_v25, %v432_v24  ;;  %v434_v27 = vld [vmem:[%s13959_s1 + $0x70] sm:$0xff]  ;;  %v435_v28 = vld [vmem:[%s13959_s1 + $0x78] sm:$0xff]  ;;  %vm1034_vm12 = vmor %vm1032_vm11, %vm1033_vm9  ;;  %s373_s14 = sand.u32 1, %s8493_s18  }
  0x25   : > { %v7647_v29 = vpack.c.bf16 %v435_v28, %v434_v27  ;;  %v436_v30 = vld [vmem:[%s13959_s1 + $0x80] sm:$0xff]  ;;  %v437_v31 = vld [vmem:[%s13959_s1 + $0x88] sm:$0xff]  ;;  %v513_v56 = vld [vmem:[%s13961_s2 + $0x18] sm:$0xff]  ;;  %s7213_s1 = sshll.u32 %s373_s14, 2  ;;  %s7140_s22 = scalar_lea.sflag [#allocation3], %s373_s14 }
  0x26   : > { %7630 = vmatpush1.bf16.msra.mxu0 %v7629_v10  ;;  %v7650_v32 = vpack.c.bf16 %v437_v31, %v436_v30  ;;  %v514_v58 = vld [vmem:[%s13961_s2 + $0x20] sm:$0xff]  ;;  %v515_v59 = vld [vmem:[%s13961_s2 + $0x28] sm:$0xff]  ;;  %v516_v60 = vld [vmem:[%s13961_s2 + $0x30] sm:$0xff] }
  0x27   : > { %7631 = vmatprep.subr.bf16.mxu0 %v13680_v2  ;;  %v511_v63 = vld [vmem:[%s13961_s2 + $0x8] sm:$0xff]  ;;  %v512_v0 = vld [vmem:[%s13961_s2 + $0x10] sm:$0xff]  ;;  %v510_v1 = vld [vmem:[%s13961_s2] sm:$0xff] }
  0x28   : > { %388 = vrot.lane.b32.xlu0 %v384_v11, %s13676_s12  ;;  %394 = vrot.lane.b32.xlu1 %v384_v11, %s13848_s13  ;;  %vm9524_vm13 = vmor %vm1034_vm12, %vm1035_vm10 }
  0x2a   : > { %7633 = vmatpush1.bf16.msra.mxu0 %v7632_v14 }
  0x2b   : > { %7634 = vmatprep.subr.bf16.mxu0 %v13680_v2 }
  0x2c   : > { %397 = vrot.lane.b32.xlu0 %v384_v11, %s8508_s24  ;;  %400 = vrot.lane.b32.xlu1 %v384_v11, %s13678_s25 }
  0x2e   : > { %7636 = vmatpush1.bf16.msra.mxu0 %v7635_v17 }
  0x2f   : > { %7637 = vmatprep.subr.bf16.mxu0 %v13680_v2 }
  0x30   : > { %403 = vrot.lane.b32.xlu0 %v384_v11, %s8510_s16  ;;  %s14097_s16 = smov 32  }
  0x32   : > { %7639 = vmatpush1.bf16.msra.mxu0 %v7638_v20 }
  0x33   : > { %7640 = vmatprep.subr.bf16.mxu0 %v13680_v2 }
  0x36   : > { %7642 = vmatpush1.bf16.msra.mxu0 %v7641_v23 }
  0x37   : > { %7643 = vmatprep.subr.bf16.mxu0 %v13680_v2 }
  0x3a   : > { %7645 = vmatpush1.bf16.msra.mxu0 %v7644_v26 }
  0x3b   : > { %7646 = vmatprep.subr.bf16.mxu0 %v13680_v2 }
  0x3e   : > { %7648 = vmatpush1.bf16.msra.mxu0 %v7647_v29 }
  0x3f   : > { %7649 = vmatprep.subr.bf16.mxu0 %v13680_v2 }
  0x42   : > { %7651 = vmatpush1.bf16.msra.mxu0 %v7650_v32 }
  0x43   : > { %7701 = vmatprep.subr.bf16.mxu0 %v7700_v50 }
  0x96   : > { %v386_v33 = vpop.permute.xlu0 %385  ;;  %v392_v34 = vpop.permute.xlu1 %391 }
  0x97   : > { %v407_v37 = vsel %vm406_vm0, %v8646_v9, %v386_v33  ;;  %v517_v9 = vld [vmem:[%s13961_s2 + $0x38] sm:$0xff]  ;;  %vm7137_vm0 = vcmask 519168  }
  0x9a   : > { %v389_v35 = vpop.permute.xlu0 %388  ;;  %v395_v36 = vpop.permute.xlu1 %394 }
  0x9b   : > { %v409_v38 = vsel %vm408_vm1, %v407_v37, %v389_v35 }
  0x9c   : > { %v411_v39 = vsel %vm410_vm2, %v409_v38, %v392_v34 }
  0x9d   : > { %v413_v40 = vsel %vm412_vm3, %v411_v39, %v395_v36  ;;  %v518_v36 = vld [vmem:[%s13961_s2 + $0x40] sm:$0xff] }
  0x9e   : > { %v398_v41 = vpop.permute.xlu0 %397  ;;  %v401_v42 = vpop.permute.xlu1 %400 }
  0x9f   : > { %v415_v43 = vsel %vm414_vm4, %v413_v40, %v398_v41 }
  0xa0   : > { %v417_v45 = vsel %vm416_vm5, %v415_v43, %v401_v42 }
  0xa2   : > { %v404_v44 = vpop.permute.xlu0 %403 }
  0xa3   : > { %v419_v46 = vsel %vm418_vm6, %v417_v45, %v404_v44 }
  0xa4   : > { %505 = vmatmul.mubr.f32.vlgmr.msra.gmra.mrb[0].mxu0 %v419_v46 }
  0xa5   : > { %7703 = vmatpush3.bf16.msra.mxu0 %v7700_v50 }
  0xa6   : > { %7705 = vmatprep.subr.bf16.mxu0 %v7704_v52 }
  0xa9   : > { %7707 = vmatpush3.bf16.msra.mxu0 %v7704_v52 }
 0x177   : > { %v506_v57 = vpop.f32.mrb[0].mxu0 }
 0x178   : > { %v8737_v61 = vrot.slane %v506_v57, %v383_v8  ;;  %v508_v62 = vpop.f32.mrb[1].mxu0 }
 0x17a   : > { %v542_v5 = vadd.f32 %v8737_v61, %v513_v56  ;;  %v543_v6 = vadd.f32 %v8737_v61, %v514_v58  ;;  %v544_v7 = vadd.f32 %v8737_v61, %v515_v59  ;;  %v545_v8 = vadd.f32 %v8737_v61, %v516_v60 }
 0x17b   : > { %v540_v10 = vadd.f32 %v8737_v61, %v511_v63  ;;  %v541_v11 = vadd.f32 %v8737_v61, %v512_v0  ;;  %v539_v12 = vadd.f32 %v8737_v61, %v510_v1  ;;  %v546_v19 = vadd.f32 %v8737_v61, %v517_v9 }
 0x17c   : > { %v8761_v4 = vmax.f32 %v542_v5, 0.0  ;;  %v568_v13 = vmax.f32 %v543_v6, 0.0  ;;  %v569_v14 = vmax.f32 %v544_v7, 0.0  ;;  %v570_v15 = vmax.f32 %v545_v8, 0.0 }
 0x17d   : > { %v565_v16 = vmax.f32 %v540_v10, 0.0  ;;  %v8763_v17 = vmax.f32 %v541_v11, 0.0  ;;  %v564_v18 = vmax.f32 %v539_v12, 0.0  ;;  %v547_v48 = vadd.f32 %v8737_v61, %v518_v36 }
 0x17e   : > { %v665_v20 = vcombine.high %v8761_v4, %v8761_v4  ;;  %v682_v21 = vcombine.high %v568_v13, %v568_v13  ;;  %v8769_v22 = vrot.slane %v568_v13, %v8749_v3  ;;  %v699_v23 = vcombine.high %v569_v14, %v569_v14 }
 0x17f   : > { %v8772_v24 = vrot.slane %v569_v14, %v8749_v3  ;;  %v716_v25 = vcombine.high %v570_v15, %v570_v15  ;;  %v8775_v26 = vrot.slane %v570_v15, %v8749_v3  ;;  %v631_v27 = vcombine.high %v565_v16, %v565_v16 }
 0x180   : > { %v8778_v28 = vrot.slane %v665_v20, %v8749_v3  ;;  %v8781_v29 = vrot.slane %v682_v21, %v8749_v3  ;;  %v8785_v30 = vcombine.high %v8769_v22, %v8769_v22  ;;  %v8788_v31 = vrot.slane %v699_v23, %v8749_v3 }
 0x181   : > { %13962 = vst [vmem:[#allocation5_spill] sm:$0xff] %v8772_v24  ;;  %13963 = vst [vmem:[#allocation6_spill] sm:$0xff] %v8775_v26  ;;  %v8791_v32 = vrot.slane %v716_v25, %v8749_v3  ;;  %v8795_v33 = vcombine.high %v8775_v26, %v8775_v26  ;;  %v8798_v34 = vrot.slane %v565_v16, %v8749_v3  ;;  %v571_v15 = vmax.f32 %v546_v19, 0.0 }
 0x182   : > { %13964 = vst [vmem:[#allocation7_spill] sm:$0xff] %v8788_v31  ;;  %v8801_v35 = vrot.slane %v631_v27, %v8749_v3  ;;  %v8808_v37 = vcombine.high %v8778_v28, %v8778_v28  ;;  %v2039_v38 = vcombine.low %v8785_v30, %v8781_v29  ;;  %v8814_v39 = vcombine.high %v8781_v29, %v8781_v29 }
 0x183   : > { %13965 = vst [vmem:[#allocation8_spill] sm:$0xff] %v8791_v32  ;;  %13966 = vst [vmem:[#allocation9_spill] sm:$0xff] %v8795_v33  ;;  %v8818_v40 = vcombine.high %v8788_v31, %v8788_v31  ;;  %v8822_v41 = vcombine.high %v8791_v32, %v8791_v32  ;;  %v2072_v42 = vcombine.low %v8775_v26, %v8795_v33  ;;  %v572_v16 = vmax.f32 %v547_v48, 0.0 }
 0x184   : > { %13967 = vst [vmem:[#allocation10_spill] sm:$0xff] %v8798_v34  ;;  %13968 = vst [vmem:[#allocation11_spill] sm:$0xff] %v8814_v39  ;;  %v8828_v43 = vcombine.high %v8798_v34, %v8798_v34  ;;  %v8832_v44 = vrot.slane %v8763_v17, %v8749_v3  ;;  %v2038_v45 = vcombine.low %v8808_v37, %v8769_v22 }
 0x185   : > { %13969 = vst [vmem:[#allocation12_spill] sm:$0xff] %v8818_v40  ;;  %13970 = vst [vmem:[#allocation13_spill] sm:$0xff] %v8822_v41  ;;  %v2055_v46 = vcombine.low %v8814_v39, %v8772_v24  ;;  %v2056_v47 = vcombine.low %v8788_v31, %v8818_v40  ;;  %v8842_v49 = vrot.slane %v2039_v38, %v8749_v3 }
 0x186   : > { %13971 = vst [vmem:[#allocation14_spill] sm:$0xff] %v8828_v43  ;;  %v2073_v50 = vcombine.low %v8791_v32, %v8822_v41  ;;  %v8848_v51 = vcombine.high %v8832_v44, %v8832_v44  ;;  %v8852_v52 = vcombine.high %v8772_v24, %v8772_v24  ;;  %v8855_v53 = vrot.slane %v2038_v45, %v8749_v3 }
 0x187   : > { %13972 = vst [vmem:[#allocation15_spill] sm:$0xff] %v8842_v49  ;;  %v8858_v54 = vrot.slane %v2055_v46, %v8749_v3  ;;  %v8861_v55 = vrot.slane %v2056_v47, %v8749_v3  ;;  %v1371_v56 = vcombine.low %v8781_v29, %v8814_v39  ;;  %v8866_v57 = vrot.slane %v2072_v42, %v8749_v3 }
 0x188   : > { %v8869_v58 = vrot.slane %v2073_v50, %v8749_v3  ;;  %v1372_v59 = vcombine.low %v8852_v52, %v8788_v31  ;;  %v2004_v60 = vcombine.low %v8828_v43, %v8801_v35  ;;  %v8877_v62 = vcombine.low %v8855_v53, %v8842_v49 }
 0x189   : > { %13973 = vst [vmem:[#allocation16_spill] sm:$0xff] %v8858_v54  ;;  %13974 = vst [vmem:[#allocation17_spill] sm:$0xff] %v8861_v55  ;;  %v8881_v63 = vcombine.low %v8858_v54, %v8861_v55  ;;  %v8884_v0 = vrot.slane %v1371_v56, %v8749_v3  ;;  %v2005_v1 = vcombine.low %v8832_v44, %v8848_v51 }
 0x18a   : > { %13975 = vst [vmem:[#allocation18_spill] sm:$0xff] %v8866_v57  ;;  %13976 = vst [vmem:[#allocation19_spill] sm:$0xff] %v8869_v58  ;;  %v8890_v5 = vcombine.low %v8866_v57, %v8869_v58  ;;  %v8893_v6 = vrot.slane %v1372_v59, %v8749_v3  ;;  %v2012_v7 = vrot.slane %v2004_v60, %v8749_v3  ;;  %7512 = vmatprep.mubr.msk.f32.mxu0 %vm408_vm1, %v8877_v62 }
 0x18b   : > { %13977 = vst [vmem:[#allocation20_spill] sm:$0xff] %v8884_v0  ;;  %v614_v8 = vcombine.high %v564_v18, %v564_v18  ;;  %v8899_v9 = vrot.slane %v2005_v1, %v8749_v3  ;;  %v8902_v10 = vrot.slane %v564_v18, %v8749_v3  ;;  %v1354_v11 = vcombine.low %v8778_v28, %v8808_v37  ;;  %v519_v18 = vld [vmem:[%s13961_s2 + $0x48] sm:$0xff] }
 0x18c   : > { %13978 = vst [vmem:[#allocation21_spill] sm:$0xff] %v8893_v6  ;;  %v1355_v12 = vcombine.low %v8769_v22, %v8785_v30  ;;  %7513 = vmatmul.mubr.msk.f32.vlgmr.msra.gmra.mrb[2].mxu0 %vm408_vm1, %v8881_v63  ;;  %v8912_v13 = vcombine.low %v8884_v0, %v8893_v6  ;;  %v733_v27 = vcombine.high %v571_v15, %v571_v15 }
 0x18d   : > { %v8915_v14 = vrot.slane %v614_v8, %v8749_v3  ;;  %7515 = vmatprep.mubr.msk.f32.mxu0 %vm408_vm1, %v8890_v5  ;;  %v2020_v20 = vcombine.low %v2012_v7, %v8899_v9  ;;  %v8925_v21 = vcombine.high %v8902_v10, %v8902_v10  ;;  %v8928_v23 = vrot.slane %v1354_v11, %v8749_v3 }
 0x18e   : > { %13979 = vst [vmem:[#allocation22_spill] sm:$0xff] %v8912_v13  ;;  %v8931_v25 = vrot.slane %v1355_v12, %v8749_v3  ;;  %v8938_v36 = vrot.slane %v571_v15, %v8749_v3  ;;  %v8941_v38 = vrot.slane %v572_v16, %v8749_v3  ;;  %v548_v47 = vadd.f32 %v8737_v61, %v519_v18 }
 0x18f   : > { %13980 = vst [vmem:[#allocation23_spill] sm:$0xff] %v8928_v23  ;;  %v8935_v19 = vcombine.high %v8915_v14, %v8915_v14  ;;  %v7858_v42 = vpack.i.bf16 %v2020_v20, %v8912_v13  ;;  %v1987_v46 = vcombine.low %v8925_v21, %v8915_v14  ;;  %v8954_v50 = vrot.slane %v733_v27, %v8749_v3 }
 0x190   : > { %13981 = vst [vmem:[#allocation24_spill] sm:$0xff] %v8931_v25  ;;  %13982 = vst [vmem:[#allocation25_spill] sm:$0xff] %v8938_v36  ;;  %v8946_v45 = vcombine.low %v8928_v23, %v8931_v25  ;;  %v8958_v56 = vcombine.high %v8938_v36, %v8938_v36  ;;  %v750_v59 = vcombine.high %v572_v16, %v572_v16  ;;  %v573_v1 = vmax.f32 %v548_v47, 0.0  ;;  %v521_v25 = vld [vmem:[%s13961_s2 + $0x58] sm:$0xff] }
 0x191   : > { %v1988_v48 = vcombine.low %v8935_v19, %v8798_v34  ;;  %13984 = vst [vmem:[#allocation27_spill] sm:$0xff] %v8954_v50  ;;  %7859 = vrot.lane.b32.xlu1 %v7858_v42, %s13848_s13  ;;  %v1995_v60 = vrot.slane %v1987_v46, %v8749_v3  ;;  %v8964_v7 = vcombine.high %v8941_v38, %v8941_v38 }
 0x192   : > { %13983 = vst [vmem:[#allocation26_spill] sm:$0xff] %v8946_v45  ;;  %13985 = vst [vmem:[#allocation28_spill] sm:$0xff] %v8958_v56  ;;  %v648_v8 = vcombine.high %v8763_v17, %v8763_v17  ;;  %v8971_v12 = vcombine.high %v8954_v50, %v8954_v50  ;;  %v2089_v15 = vcombine.low %v8958_v56, %v8954_v50 }
 0x193   : > { %v2002_v11 = vrot.slane %v1988_v48, %v8749_v3  ;;  %v8976_v16 = vrot.slane %v750_v59, %v8749_v3  ;;  %v8979_v18 = vrot.slane %v573_v1, %v8749_v3  ;;  %v1405_v20 = vcombine.low %v8938_v36, %v8958_v56 }
 0x194   : > { %13986 = vst [vmem:[#allocation29_spill] sm:$0xff] %v8971_v12  ;;  %v8984_v17 = vrot.slane %v648_v8, %v8749_v3  ;;  %v8988_v27 = vrot.slane %v8761_v4, %v8749_v3  ;;  %v2090_v46 = vcombine.low %v8971_v12, %v8941_v38  ;;  %v8993_v47 = vrot.slane %v2089_v15, %v8749_v3 }
 0x195   : > { %v2003_v42 = vcombine.low %v1995_v60, %v2002_v11  ;;  %v2106_v48 = vcombine.low %v8964_v7, %v8976_v16  ;;  %v8999_v59 = vcombine.high %v8979_v18, %v8979_v18  ;;  %v1406_v8 = vcombine.low %v8954_v50, %v8971_v12 }
 0x196   : > { %13987 = vst [vmem:[#allocation30_spill] sm:$0xff] %v8984_v17  ;;  %13988 = vst [vmem:[#allocation31_spill] sm:$0xff] %v8988_v27  ;;  %v9004_v4 = vrot.slane %v1405_v20, %v8749_v3  ;;  %v9008_v60 = vcombine.high %v8984_v17, %v8984_v17  ;;  %v9012_v15 = vrot.slane %v2090_v46, %v8749_v3  ;;  %v520_v46 = vld [vmem:[%s13961_s2 + $0x50] sm:$0xff] }
 0x197   : > { %13989 = vst [vmem:[#allocation32_spill] sm:$0xff] %v8993_v47  ;;  %v7853_v11 = vpack.i.bf16 %v2003_v42, %v8946_v45  ;;  %v9015_v2 = vrot.slane %v2106_v48, %v8749_v3  ;;  %v9019_v13 = vcombine.high %v8988_v27, %v8988_v27  ;;  %v2107_v20 = vcombine.low %v8979_v18, %v8999_v59 }
 0x198   : > { %13990 = vst [vmem:[#allocation33_spill] sm:$0xff] %v9008_v60  ;;  %13991 = vst [vmem:[#allocation34_spill] sm:$0xff] %v9012_v15  ;;  %v9024_v58 = vrot.slane %v1406_v8, %v8749_v3  ;;  %v1388_v6 = vcombine.low %v8818_v40, %v8775_v26  ;;  %v1389_v42 = vcombine.low %v8795_v33, %v8791_v32 }
 0x199   : > { %13992 = vst [vmem:[#allocation35_spill] sm:$0xff] %v9015_v2  ;;  %13993 = vst [vmem:[#allocation36_spill] sm:$0xff] %v9019_v13  ;;  %7854 = vrot.lane.b32.xlu0 %v7853_v11, %s13848_s13  ;;  %v9036_v48 = vcombine.low %v8993_v47, %v9012_v15  ;;  %v2021_v8 = vcombine.low %v8984_v17, %v9008_v60  ;;  %v2022_v45 = vcombine.low %v8988_v27, %v9019_v13 }
 0x19a   : > { %13994 = vst [vmem:[#allocation37_spill] sm:$0xff] %v9024_v58  ;;  %v9046_v0 = vrot.slane %v2107_v20, %v8749_v3  ;;  %v9050_v11 = vcombine.low %v9004_v4, %v9024_v58  ;;  %v9053_v15 = vrot.slane %v1388_v6, %v8749_v3  ;;  %v9056_v47 = vrot.slane %v1389_v42, %v8749_v3  ;;  %v522_v6 = vld [vmem:[%s13961_s2 + $0x60] sm:$0xff] }
 0x19b   : > { %7516 = vmatmul.mubr.msk.f32.gmra.mrb[4].mxu0 %vm408_vm1, %v9036_v48  ;;  %v9061_v12 = vrot.slane %v2021_v8, %v8749_v3  ;;  %v9064_v50 = vrot.slane %v2022_v45, %v8749_v3  ;;  %v549_v20 = vadd.f32 %v8737_v61, %v520_v46  ;;  %v767_v36 = vcombine.high %v573_v1, %v573_v1 }
 0x19c   : > { %13995 = vst [vmem:[#allocation38_spill] sm:$0xff] %v9046_v0  ;;  %13996 = vst [vmem:[#allocation39_spill] sm:$0xff] %v9050_v11  ;;  %v9072_v42 = vcombine.low %v9015_v2, %v9046_v0  ;;  %v7868_v58 = vpack.i.bf16 %v8877_v62, %v9050_v11  ;;  %v9078_v8 = vcombine.low %v9053_v15, %v9056_v47  ;;  %v523_v0 = vld [vmem:[%s13961_s2 + $0x68] sm:$0xff] }
 0x19d   : > { %13997 = vst [vmem:[#allocation40_spill] sm:$0xff] %v9053_v15  ;;  %v550_v45 = vadd.f32 %v8737_v61, %v521_v25  ;;  %v2037_v1 = vcombine.low %v9061_v12, %v9064_v50  ;;  %v574_v46 = vmax.f32 %v549_v20, 0.0  ;;  %v9084_v56 = vrot.slane %v767_v36, %v8749_v3 }
 0x19e   : > { %13998 = vst [vmem:[#allocation41_spill] sm:$0xff] %v9078_v8  ;;  %7518 = vmatprep.mubr.msk.f32.mxu0 %vm408_vm1, %v9072_v42  ;;  %7869 = vrot.lane.b32.xlu1 %v7868_v58, %s13848_s13  ;;  %v9094_v25 = vcombine.high %v8976_v16, %v8976_v16  ;;  %v1422_v20 = vcombine.low %v8941_v38, %v8964_v7 }
 0x19f   : > { %13999 = vst [vmem:[#allocation42_spill] sm:$0xff] %v9084_v56  ;;  %v575_v62 = vmax.f32 %v550_v45, 0.0  ;;  %v551_v36 = vadd.f32 %v8737_v61, %v522_v6  ;;  %v7863_v11 = vpack.i.bf16 %v2037_v1, %v9078_v8  ;;  %v9102_v2 = vcombine.high %v9084_v56, %v9084_v56 }
 0x1a0   : > { %v9105_v15 = vrot.slane %v574_v46, %v8749_v3  ;;  %v784_v58 = vcombine.high %v574_v46, %v574_v46  ;;  %v1439_v32 = vcombine.low %v8999_v59, %v9084_v56  ;;  %v552_v33 = vadd.f32 %v8737_v61, %v523_v0 }
 0x1a1   : > { %14000 = vst [vmem:[#allocation43_spill] sm:$0xff] %v9102_v2  ;;  %v801_v45 = vcombine.high %v575_v62, %v575_v62  ;;  %v9108_v41 = vrot.slane %v575_v62, %v8749_v3  ;;  %7864 = vrot.lane.b32.xlu0 %v7863_v11, %s13848_s13  ;;  %v2123_v1 = vcombine.low %v9084_v56, %v9102_v2 }
 0x1a2   : > { %14001 = vst [vmem:[#allocation44_spill] sm:$0xff] %v9105_v15  ;;  %v9116_v6 = vcombine.high %v9105_v15, %v9105_v15  ;;  %v9121_v46 = vrot.slane %v784_v58, %v8749_v3  ;;  %v1440_v62 = vcombine.low %v9102_v2, %v9105_v15  ;;  %v9133_v11 = vrot.slane %v1439_v32, %v8749_v3 }
 0x1a3   : > { %14002 = vst [vmem:[#allocation45_spill] sm:$0xff] %v9108_v41  ;;  %v9126_v8 = vrot.slane %v801_v45, %v8749_v3  ;;  %v9130_v0 = vcombine.high %v9108_v41, %v9108_v41  ;;  %v1423_v55 = vcombine.low %v9094_v25, %v8979_v18  ;;  %v9140_v56 = vrot.slane %v2123_v1, %v8749_v3 }
 0x1a4   : > { %14003 = vst [vmem:[#allocation46_spill] sm:$0xff] %v9116_v6  ;;  %14004 = vst [vmem:[#allocation47_spill] sm:$0xff] %v9121_v46  ;;  %v2124_v58 = vcombine.low %v9105_v15, %v9116_v6  ;;  %v9144_v45 = vcombine.high %v9121_v46, %v9121_v46  ;;  %v9147_v2 = vrot.slane %v1440_v62, %v8749_v3  ;;  %v576_v6 = vmax.f32 %v551_v36, 0.0 }
 0x1a5   : > { %14005 = vst [vmem:[#allocation48_spill] sm:$0xff] %v9126_v8  ;;  %14006 = vst [vmem:[#allocation49_spill] sm:$0xff] %v9130_v0  ;;  %v2141_v32 = vcombine.low %v9130_v0, %v9126_v8  ;;  %v9152_v57 = vrot.slane %v1422_v20, %v8749_v3  ;;  %v9155_v49 = vrot.slane %v1423_v55, %v8749_v3 }
 0x1a6   : > { %14007 = vst [vmem:[#allocation50_spill] sm:$0xff] %v9133_v11  ;;  %14008 = vst [vmem:[#allocation51_spill] sm:$0xff] %v9140_v56  ;;  %v9158_v1 = vrot.slane %v2124_v58, %v8749_v3  ;;  %v2140_v15 = vcombine.low %v9144_v45, %v9108_v41  ;;  %v9164_v62 = vcombine.low %v9133_v11, %v9147_v2 }
 0x1a7   : > { %14009 = vst [vmem:[#allocation52_spill] sm:$0xff] %v9144_v45  ;;  %14010 = vst [vmem:[#allocation53_spill] sm:$0xff] %v9147_v2  ;;  %v9168_v54 = vcombine.high %v9126_v8, %v9126_v8  ;;  %v9171_v20 = vrot.slane %v2141_v32, %v8749_v3  ;;  %v9175_v55 = vcombine.low %v9152_v57, %v9155_v49  ;;  %v577_v32 = vmax.f32 %v552_v33, 0.0  ;;  %v525_v33 = vld [vmem:[%s13961_s2 + $0x78] sm:$0xff] }
 0x1a8   : > { %14011 = vst [vmem:[#allocation54_spill] sm:$0xff] %v9152_v57  ;;  %14012 = vst [vmem:[#allocation55_spill] sm:$0xff] %v9155_v49  ;;  %v818_v36 = vcombine.high %v576_v6, %v576_v6  ;;  %v9178_v58 = vrot.slane %v576_v6, %v8749_v3  ;;  %v9182_v26 = vcombine.low %v9140_v56, %v9158_v1  ;;  %v526_v57 = vld [vmem:[%s13961_s2 + $0x80] sm:$0xff] }
 0x1a9   : > { %14013 = vst [vmem:[#allocation56_spill] sm:$0xff] %v9164_v62  ;;  %14014 = vst [vmem:[#allocation57_spill] sm:$0xff] %v9168_v54  ;;  %v9185_v2 = vrot.slane %v2140_v15, %v8749_v3  ;;  %v7878_v11 = vpack.i.bf16 %v8890_v5, %v9164_v62  ;;  %v7873_v23 = vpack.i.bf16 %v8881_v63, %v9175_v55 }
 0x1aa   : > { %14015 = vst [vmem:[#allocation58_spill] sm:$0xff] %v9171_v20  ;;  %14016 = vst [vmem:[#allocation59_spill] sm:$0xff] %v9175_v55  ;;  %v9192_v49 = vrot.slane %v818_v36, %v8749_v3  ;;  %v2157_v6 = vcombine.low %v9168_v54, %v9178_v58  ;;  %v9198_v56 = vcombine.high %v9178_v58, %v9178_v58  ;;  %7519 = vmatmul.mubr.msk.f32.gmra.mrb[6].mxu0 %vm408_vm1, %v9182_v26  ;;  %v524_v36 = vld [vmem:[%s13961_s2 + $0x70] sm:$0xff] }
 0x1ab   : > { %14017 = vst [vmem:[#allocation60_spill] sm:$0xff] %v9178_v58  ;;  %v9204_v5 = vcombine.low %v9185_v2, %v9171_v20  ;;  %7879 = vrot.lane.b32.xlu1 %v7878_v11, %s13848_s13  ;;  %v835_v63 = vcombine.high %v577_v32, %v577_v32  ;;  %v9209_v15 = vrot.slane %v577_v32, %v8749_v3 }
 0x1ac   : > { %14018 = vst [vmem:[#allocation61_spill] sm:$0xff] %v9192_v49  ;;  %14019 = vst [vmem:[#allocation62_spill] sm:$0xff] %v9198_v56  ;;  %7874 = vrot.lane.b32.xlu0 %v7873_v23, %s13848_s13  ;;  %v9217_v62 = vcombine.high %v9192_v49, %v9192_v49  ;;  %v9220_v55 = vrot.slane %v2157_v6, %v8749_v3  ;;  %v1473_v11 = vcombine.low %v9126_v8, %v9168_v54 }
 0x1ad   : > { %14020 = vst [vmem:[#allocation63_spill] sm:$0xff] %v9209_v15  ;;  %7521 = vmatprep.mubr.msk.f32.mxu0 %vm408_vm1, %v9204_v5  ;;  %v9228_v32 = vrot.slane %v835_v63, %v8749_v3  ;;  %v9232_v23 = vcombine.high %v9209_v15, %v9209_v15  ;;  %v1474_v20 = vcombine.low %v9198_v56, %v9192_v49 }
 0x1ae   : > { %14021 = vst [vmem:[#allocation64_spill] sm:$0xff] %v9217_v62  ;;  %14022 = vst [vmem:[#allocation65_spill] sm:$0xff] %v9220_v55  ;;  %v1456_v6 = vcombine.low %v9121_v46, %v9144_v45  ;;  %v2158_v58 = vcombine.low %v9192_v49, %v9217_v62  ;;  %v9244_v63 = vrot.slane %v1473_v11, %v8749_v3 }
 0x1af   : > { %14023 = vst [vmem:[#allocation66_spill] sm:$0xff] %v9228_v32  ;;  %14024 = vst [vmem:[#allocation67_spill] sm:$0xff] %v9232_v23  ;;  %v1457_v54 = vcombine.low %v9108_v41, %v9130_v0  ;;  %v553_v8 = vadd.f32 %v8737_v61, %v524_v36  ;;  %v9254_v46 = vcombine.high %v9228_v32, %v9228_v32 }
 0x1b0   : > { %14025 = vst [vmem:[#allocation68_spill] sm:$0xff] %v9244_v63  ;;  %v2174_v45 = vcombine.low %v9209_v15, %v9232_v23  ;;  %v9259_v49 = vrot.slane %v1474_v20, %v8749_v3  ;;  %v9262_v11 = vrot.slane %v1456_v6, %v8749_v3  ;;  %v9265_v0 = vrot.slane %v2158_v58, %v8749_v3 }
 0x1b1   : > { %14026 = vst [vmem:[#allocation69_spill] sm:$0xff] %v9254_v46  ;;  %v9268_v36 = vrot.slane %v1457_v54, %v8749_v3  ;;  %v554_v41 = vadd.f32 %v8737_v61, %v525_v33  ;;  %v578_v56 = vmax.f32 %v553_v8, 0.0  ;;  %v2175_v13 = vcombine.low %v9228_v32, %v9254_v46 }
 0x1b2   : > { %14027 = vst [vmem:[#allocation70_spill] sm:$0xff] %v9259_v49  ;;  %14028 = vst [vmem:[#allocation71_spill] sm:$0xff] %v9262_v11  ;;  %v9274_v60 = vrot.slane %v2174_v45, %v8749_v3  ;;  %v9278_v20 = vcombine.low %v9244_v63, %v9259_v49  ;;  %v555_v6 = vadd.f32 %v8737_v61, %v526_v57 }
 0x1b3   : > { %14029 = vst [vmem:[#allocation72_spill] sm:$0xff] %v9265_v0  ;;  %14030 = vst [vmem:[#allocation73_spill] sm:$0xff] %v9268_v36  ;;  %v9283_v58 = vcombine.low %v9220_v55, %v9265_v0  ;;  %v9287_v54 = vcombine.low %v9262_v11, %v9268_v36  ;;  %v579_v8 = vmax.f32 %v554_v41, 0.0  ;;  %v852_v33 = vcombine.high %v578_v56, %v578_v56 }
 0x1b4   : > { %14031 = vst [vmem:[#allocation74_spill] sm:$0xff] %v9274_v60  ;;  %14032 = vst [vmem:[#allocation75_spill] sm:$0xff] %v9278_v20  ;;  %v9290_v46 = vrot.slane %v2175_v13, %v8749_v3  ;;  %v7888_v45 = vpack.i.bf16 %v9072_v42, %v9278_v20  ;;  %v9295_v49 = vrot.slane %v578_v56, %v8749_v3  ;;  %v580_v57 = vmax.f32 %v555_v6, 0.0 }
 0x1b5   : > { %14033 = vst [vmem:[#allocation76_spill] sm:$0xff] %v9287_v54  ;;  %7522 = vmatmul.mubr.msk.f32.gmra.mrb[8].mxu0 %vm408_vm1, %v9283_v58  ;;  %v7883_v63 = vpack.i.bf16 %v9036_v48, %v9287_v54  ;;  %v9302_v36 = vrot.slane %v852_v33, %v8749_v3  ;;  %v9305_v41 = vrot.slane %v579_v8, %v8749_v3  ;;  %v527_v54 = vld [vmem:[%s13961_s2 + $0x88] sm:$0xff] }
 0x1b6   : > { %14034 = vst [vmem:[#allocation77_spill] sm:$0xff] %v9290_v46  ;;  %14035 = vst [vmem:[#allocation78_spill] sm:$0xff] %v9295_v49  ;;  %v869_v13 = vcombine.high %v579_v8, %v579_v8  ;;  %v9309_v42 = vcombine.low %v9274_v60, %v9290_v46  ;;  %7889 = vrot.lane.b32.xlu1 %v7888_v45, %s13848_s13  ;;  %v9314_v56 = vcombine.high %v9295_v49, %v9295_v49 }
 0x1b7   : > { %14036 = vst [vmem:[#allocation79_spill] sm:$0xff] %v9302_v36  ;;  %v9317_v6 = vrot.slane %v580_v57, %v8749_v3  ;;  %v1490_v48 = vcombine.low %v9217_v62, %v9209_v15  ;;  %7884 = vrot.lane.b32.xlu0 %v7883_v63, %s13848_s13  ;;  %v9324_v8 = vcombine.high %v9302_v36, %v9302_v36  ;;  %v528_v15 = vld [vmem:[%s13961_s2 + $0x90] sm:$0xff] }
 0x1b8   : > { %14037 = vst [vmem:[#allocation80_spill] sm:$0xff] %v9314_v56  ;;  %v9327_v33 = vrot.slane %v869_v13, %v8749_v3  ;;  %v9331_v45 = vcombine.high %v9305_v41, %v9305_v41  ;;  %v1491_v20 = vcombine.low %v9232_v23, %v9228_v32  ;;  %7524 = vmatprep.mubr.msk.f32.mxu0 %vm408_vm1, %v9309_v42 }
 0x1b9   : > { %14038 = vst [vmem:[#allocation81_spill] sm:$0xff] %v9324_v8  ;;  %v2191_v63 = vcombine.low %v9314_v56, %v9302_v36  ;;  %v9344_v13 = vcombine.high %v9317_v6, %v9317_v6  ;;  %v1507_v46 = vcombine.low %v9295_v49, %v9314_v56  ;;  %v9349_v0 = vrot.slane %v1490_v48, %v8749_v3 }
 0x1ba   : > { %v2192_v60 = vcombine.low %v9324_v8, %v9305_v41  ;;  %v2208_v55 = vcombine.low %v9331_v45, %v9327_v33  ;;  %v1508_v32 = vcombine.low %v9302_v36, %v9324_v8  ;;  %v9358_v23 = vrot.slane %v1491_v20, %v8749_v3 }
 0x1bb   : > { %14039 = vst [vmem:[#allocation82_spill] sm:$0xff] %v9349_v0  ;;  %v9364_v49 = vrot.slane %v2191_v63, %v8749_v3  ;;  %v2209_v48 = vcombine.low %v9317_v6, %v9344_v13  ;;  %v9369_v56 = vrot.slane %v1507_v46, %v8749_v3  ;;  %v556_v11 = vadd.f32 %v8737_v61, %v527_v54 }
 0x1bc   : > { %v9373_v8 = vrot.slane %v2192_v60, %v8749_v3  ;;  %v9376_v20 = vrot.slane %v2208_v55, %v8749_v3  ;;  %v9379_v36 = vrot.slane %v1508_v32, %v8749_v3  ;;  %v9383_v63 = vcombine.low %v9349_v0, %v9358_v23 }
 0x1bd   : > { %14040 = vst [vmem:[#allocation83_spill] sm:$0xff] %v9364_v49  ;;  %v9386_v62 = vrot.slane %v2209_v48, %v8749_v3  ;;  %v581_v46 = vmax.f32 %v556_v11, 0.0  ;;  %v886_v27 = vcombine.high %v580_v57, %v580_v57  ;;  %v557_v54 = vadd.f32 %v8737_v61, %v528_v15 }
 0x1be   : > { %14041 = vst [vmem:[#allocation84_spill] sm:$0xff] %v9373_v8  ;;  %14042 = vst [vmem:[#allocation85_spill] sm:$0xff] %v9376_v20  ;;  %v9391_v60 = vcombine.low %v9364_v49, %v9373_v8  ;;  %v9395_v55 = vcombine.low %v9369_v56, %v9379_v36  ;;  %v7893_v32 = vpack.i.bf16 %v9182_v26, %v9383_v63 }
 0x1bf   : > { %14043 = vst [vmem:[#allocation86_spill] sm:$0xff] %v9379_v36  ;;  %14044 = vst [vmem:[#allocation87_spill] sm:$0xff] %v9383_v63  ;;  %v9401_v0 = vcombine.high %v9327_v33, %v9327_v33  ;;  %v9405_v11 = vcombine.low %v9376_v20, %v9386_v62  ;;  %v9408_v15 = vrot.slane %v886_v27, %v8749_v3  ;;  %v582_v48 = vmax.f32 %v557_v54, 0.0  ;;  %v529_v20 = vld [vmem:[%s13961_s2 + $0x98] sm:$0xff] }
 0x1c0   : > { %14045 = vst [vmem:[#allocation88_spill] sm:$0xff] %v9386_v62  ;;  %14046 = vst [vmem:[#allocation89_spill] sm:$0xff] %v9395_v55  ;;  %v9411_v57 = vrot.slane %v581_v46, %v8749_v3  ;;  %7525 = vmatmul.mubr.msk.f32.gmra.mrb[10].mxu0 %vm408_vm1, %v9391_v60  ;;  %v7898_v26 = vpack.i.bf16 %v9204_v5, %v9395_v55  ;;  %7894 = vrot.lane.b32.xlu0 %v7893_v32, %s13848_s13 }
 0x1c1   : > { %14047 = vst [vmem:[#allocation90_spill] sm:$0xff] %v9405_v11  ;;  %14048 = vst [vmem:[#allocation91_spill] sm:$0xff] %v9408_v15  ;;  %v903_v63 = vcombine.high %v581_v46, %v581_v46  ;;  %v1524_v62 = vcombine.low %v9305_v41, %v9331_v45  ;;  %7527 = vmatprep.mubr.msk.f32.mxu0 %vm408_vm1, %v9405_v11  ;;  %v9425_v27 = vcombine.high %v9408_v15, %v9408_v15 }
 0x1c2   : > { %14049 = vst [vmem:[#allocation92_spill] sm:$0xff] %v9411_v57  ;;  %v9429_v54 = vcombine.high %v9411_v57, %v9411_v57  ;;  %v920_v5 = vcombine.high %v582_v48, %v582_v48  ;;  %v9432_v32 = vrot.slane %v582_v48, %v8749_v3  ;;  %7899 = vrot.lane.b32.xlu1 %v7898_v26, %s13848_s13 }
 0x1c3   : > { %14050 = vst [vmem:[#allocation93_spill] sm:$0xff] %v9425_v27  ;;  %v9436_v46 = vrot.slane %v903_v63, %v8749_v3  ;;  %v1541_v36 = vcombine.low %v9344_v13, %v9408_v15  ;;  %v1525_v55 = vcombine.low %v9401_v0, %v9317_v6  ;;  %v9443_v8 = vrot.slane %v1524_v62, %v8749_v3 }
 0x1c4   : > { %14051 = vst [vmem:[#allocation94_spill] sm:$0xff] %v9429_v54  ;;  %14052 = vst [vmem:[#allocation95_spill] sm:$0xff] %v9432_v32  ;;  %v2225_v48 = vcombine.low %v9408_v15, %v9425_v27  ;;  %v2226_v63 = vcombine.low %v9411_v57, %v9429_v54  ;;  %v9453_v26 = vrot.slane %v920_v5, %v8749_v3  ;;  %v530_v54 = vld [vmem:[%s13961_s2 + $0xa0] sm:$0xff] }
 0x1c5   : > { %14053 = vst [vmem:[#allocation96_spill] sm:$0xff] %v9436_v46  ;;  %14054 = vst [vmem:[#allocation97_spill] sm:$0xff] %v9443_v8  ;;  %v9457_v49 = vcombine.high %v9432_v32, %v9432_v32  ;;  %v9463_v62 = vcombine.high %v9436_v46, %v9436_v46  ;;  %v1542_v15 = vcombine.low %v9425_v27, %v9411_v57 }
 0x1c6   : > { %14055 = vst [vmem:[#allocation98_spill] sm:$0xff] %v9453_v26  ;;  %v9468_v11 = vrot.slane %v1541_v36, %v8749_v3  ;;  %v9471_v5 = vrot.slane %v1525_v55, %v8749_v3  ;;  %v9477_v40 = vrot.slane %v2225_v48, %v8749_v3  ;;  %v9480_v31 = vrot.slane %v2226_v63, %v8749_v3 }
 0x1c7   : > { %14056 = vst [vmem:[#allocation99_spill] sm:$0xff] %v9457_v49  ;;  %14057 = vst [vmem:[#allocation100_spill] sm:$0xff] %v9463_v62  ;;  %v2243_v24 = vcombine.low %v9457_v49, %v9453_v26  ;;  %v558_v57 = vadd.f32 %v8737_v61, %v529_v20  ;;  %v2242_v36 = vcombine.low %v9463_v62, %v9432_v32 }
 0x1c8   : > { %14058 = vst [vmem:[#allocation101_spill] sm:$0xff] %v9468_v11  ;;  %14059 = vst [vmem:[#allocation102_spill] sm:$0xff] %v9471_v5  ;;  %v9488_v55 = vrot.slane %v1542_v15, %v8749_v3  ;;  %v9492_v27 = vcombine.low %v9443_v8, %v9471_v5  ;;  %v9496_v48 = vcombine.high %v9453_v26, %v9453_v26  ;;  %v14067_v26 = vrot.slane %v8941_v38, 7 }
 0x1c9   : > { %14060 = vst [vmem:[#allocation103_spill] sm:$0xff] %v9477_v40  ;;  %v9501_v63 = vcombine.low %v9477_v40, %v9480_v31  ;;  %v9504_v20 = vrot.slane %v2243_v24, %v8749_v3  ;;  %v583_v39 = vmax.f32 %v558_v57, 0.0  ;;  %v559_v15 = vadd.f32 %v8737_v61, %v530_v54 }
 0x1ca   : > { %14061 = vst [vmem:[#allocation104_spill] sm:$0xff] %v9488_v55  ;;  %14062 = vst [vmem:[#allocation105_spill] sm:$0xff] %v9492_v27  ;;  %v9508_v17 = vrot.slane %v2242_v36, %v8749_v3  ;;  %v9512_v5 = vcombine.low %v9468_v11, %v9488_v55  ;;  %v7903_v8 = vpack.i.bf16 %v9283_v58, %v9492_v27  ;;  %v1126_v40 = vrot.slane %v14067_v26, 2 }
 0x1cb   : > { %14063 = vst [vmem:[#allocation106_spill] sm:$0xff] %v9496_v48  ;;  %14064 = vst [vmem:[#allocation107_spill] sm:$0xff] %v9501_v63  ;;  %7528 = vmatmul.mubr.msk.f32.gmra.mrb[12].mxu0 %vm408_vm1, %v9501_v63  ;;  %v937_v24 = vcombine.high %v583_v39, %v583_v39  ;;  %v9521_v57 = vrot.slane %v583_v39, %v8749_v3  ;;  %v584_v54 = vmax.f32 %v559_v15, 0.0  ;;  %v14068_v36 = vmov 0 }
 0x1cc   : > { %14065 = vst [vmem:[#allocation108_spill] sm:$0xff] %v9504_v20  ;;  %14066 = vst [vmem:[#allocation109_spill] sm:$0xff] %v9512_v5  ;;  %v14069_v36 = vsel %vm9524_vm13, 4294967295, %v14068_v36  ;;  %v1127_v55 = vrot.slane %v8964_v7, 7  ;;  %v9531_v58 = vcombine.low %v9508_v17, %v9504_v20  ;;  %v7908_v26 = vpack.i.bf16 %v9309_v42, %v9512_v5  ;;  %7904 = vrot.lane.b32.xlu0 %v7903_v8, %s13848_s13 }
 0x1cd   : > { %14070 = vst [vmem:[#allocation110_spill] sm:$0xff] %v14069_v36  ;;  %v1130_v39 = vrot.slane %v8976_v16, 7  ;;  %v1134_v15 = vrot.slane %v8979_v18, 7  ;;  %v9539_v27 = vrot.slane %v937_v24, %v8749_v3  ;;  %v2259_v11 = vcombine.low %v9496_v48, %v9521_v57 }
 0x1ce   : > { %14071 = vst [vmem:[#allocation111_spill] sm:$0xff] %v9531_v58  ;;  %v954_v7 = vcombine.high %v584_v54, %v584_v54  ;;  %v9544_v63 = vrot.slane %v584_v54, %v8749_v3  ;;  %7530 = vmatprep.mubr.msk.f32.mxu0 %vm408_vm1, %v9531_v58  ;;  %7909 = vrot.lane.b32.xlu1 %v7908_v26, %s13848_s13  ;;  %v1129_v42 = vrot.slane %v1127_v55, 2  ;;  %v14072_v18 = vrot.slane %v9094_v25, 9  ;;  %v531_v25 = vld [vmem:[%s13961_s2 + $0xa8] sm:$0xff] }
 0x1cf   : > { %v1128_v16 = vsel %vm9524_vm13, %v1126_v40, %v1127_v55  ;;  %v1136_v24 = vrot.slane %v1134_v15, 2  ;;  %v9557_v5 = vcombine.high %v9539_v27, %v9539_v27  ;;  %v9560_v54 = vrot.slane %v2259_v11, %v8749_v3 }
 0x1d0   : > { %v1135_v8 = vsel %vm9524_vm13, %v14072_v18, %v1134_v15  ;;  %v9563_v20 = vrot.slane %v954_v7, %v8749_v3  ;;  %v9567_v40 = vcombine.high %v9544_v63, %v9544_v63  ;;  %v1131_v55 = vsel %vm9524_vm13, %v1129_v42, %v1130_v39  ;;  %v532_v39 = vld [vmem:[%s13961_s2 + $0xb0] sm:$0xff] }
 0x1d1   : > { %14073 = vst [vmem:[#allocation112_spill] sm:$0xff] %v9560_v54  ;;  %v13790_v26 = vrot.slane %v8999_v59, 7  ;;  %v2351_v11 = vcombine.low %v9056_v47, %v9004_v4  ;;  %v1558_v15 = vcombine.low %v9436_v46, %v9463_v62  ;;  %v2260_v7 = vcombine.low %v9539_v27, %v9557_v5 }
 0x1d2   : > { %14074 = vst [vmem:[#allocation113_spill] sm:$0xff] %v9567_v40  ;;  %v9583_v18 = vcombine.high %v9563_v20, %v9563_v20  ;;  %v2276_v58 = vcombine.low %v9544_v63, %v9567_v40  ;;  %v1746_v48 = vcombine.low %v1128_v16, %v1131_v55  ;;  %v1559_v4 = vcombine.low %v9432_v32, %v9457_v49  ;;  %v533_v16 = vld [vmem:[%s13961_s2 + $0xb8] sm:$0xff] }
 0x1d3   : > { %v1138_v47 = vsel %vm9524_vm13, %v1136_v24, %v13790_v26  ;;  %v9597_v42 = vrot.slane %v1558_v15, %v8749_v3  ;;  %v560_v46 = vadd.f32 %v8737_v61, %v531_v25  ;;  %v9604_v55 = vrot.slane %v2260_v7, %v8749_v3 }
 0x1d4   : > { %14075 = vst [vmem:[#allocation114_spill] sm:$0xff] %v9583_v18  ;;  %v2277_v62 = vcombine.low %v9563_v20, %v9583_v18  ;;  %v9609_v24 = vrot.slane %v2276_v58, %v8749_v3  ;;  %v1747_v26 = vcombine.low %v1135_v8, %v1138_v47  ;;  %v9612_v49 = vrot.slane %v1746_v48, %v8749_v3 }
 0x1d5   : > { %14076 = vst [vmem:[#allocation115_spill] sm:$0xff] %v9597_v42  ;;  %14077 = vst [vmem:[#allocation116_spill] sm:$0xff] %v9604_v55  ;;  %v9615_v15 = vrot.slane %v1559_v4, %v8749_v3  ;;  %v561_v25 = vadd.f32 %v8737_v61, %v532_v39  ;;  %v585_v32 = vmax.f32 %v560_v46, 0.0  ;;  %v9620_v7 = vcombine.low %v9560_v54, %v9604_v55 }
 0x1d6   : > { %14078 = vst [vmem:[#allocation117_spill] sm:$0xff] %v9609_v24  ;;  %14079 = vst [vmem:[#allocation118_spill] sm:$0xff] %v9612_v49  ;;  %v9623_v40 = vrot.slane %v2277_v62, %v8749_v3  ;;  %v9626_v58 = vrot.slane %v1747_v26, %v8749_v3  ;;  %v562_v8 = vadd.f32 %v8737_v61, %v533_v16 }
 0x1d7   : > { %14080 = vst [vmem:[#allocation119_spill] sm:$0xff] %v9615_v15  ;;  %14081 = vst [vmem:[#allocation120_spill] sm:$0xff] %v9620_v7  ;;  %v9631_v48 = vcombine.low %v9597_v42, %v9615_v15  ;;  %v586_v47 = vmax.f32 %v561_v25, 0.0  ;;  %v971_v4 = vcombine.high %v585_v32, %v585_v32  ;;  %v9634_v46 = vrot.slane %v585_v32, %v8749_v3 }
 0x1d8   : > { %14082 = vst [vmem:[#allocation121_spill] sm:$0xff] %v9623_v40  ;;  %14083 = vst [vmem:[#allocation122_spill] sm:$0xff] %v9626_v58  ;;  %7531 = vmatmul.mubr.msk.f32.gmra.mrb[14].mxu0 %vm408_vm1, %v9620_v7  ;;  %v9640_v62 = vcombine.low %v9609_v24, %v9623_v40  ;;  %v9644_v26 = vcombine.low %v9612_v49, %v9626_v58  ;;  %v9646_v39 = vmax.f32 %v562_v8, 0.0 }
 0x1d9   : > { %14084 = vst [vmem:[#allocation123_spill] sm:$0xff] %v9631_v48  ;;  %v7913_v25 = vpack.i.bf16 %v9391_v60, %v9631_v48  ;;  %v9652_v32 = vrot.slane %v971_v4, %v8749_v3  ;;  %v9656_v15 = vcombine.high %v9634_v46, %v9634_v46  ;;  %v9659_v40 = vrot.slane %v586_v47, %v8749_v3 }
 0x1da   : > { %14085 = vst [vmem:[#allocation124_spill] sm:$0xff] %v9640_v62  ;;  %7533 = vmatprep.mubr.msk.f32.mxu0 %vm408_vm1, %v9640_v62  ;;  %v7923_v8 = vpack.i.bf16 %v2351_v11, %v9644_v26  ;;  %v988_v18 = vcombine.high %v586_v47, %v586_v47  ;;  %v9666_v16 = vrot.slane %v9646_v39, %v8749_v3  ;;  %v14088_v60 = vrot.slane %v9305_v41, 7 }
 0x1db   : > { %14086 = vst [vmem:[#allocation125_spill] sm:$0xff] %v9652_v32  ;;  %14087 = vst [vmem:[#allocation126_spill] sm:$0xff] %v9659_v40  ;;  %7914 = vrot.lane.b32.xlu0 %v7913_v25, %s13848_s13  ;;  %v9673_v48 = vcombine.high %v9652_v32, %v9652_v32  ;;  %v2519_v55 = vcombine.low %v9656_v15, %v9652_v32  ;;  %v9679_v11 = vcombine.high %v9659_v40, %v9659_v40 }
 0x1dc   : > { %v1202_v4 = vrot.slane %v14088_v60, 2  ;;  %v1203_v47 = vrot.slane %v9331_v45, 7  ;;  %7924 = vrot.lane.b32.xlu1 %v7923_v8, %s14090_s29  ;;  %v9684_v62 = vrot.slane %v988_v18, %v8749_v3  ;;  %v9688_v25 = vcombine.high %v9666_v16, %v9666_v16 }
 0x1dd   : > { %14089 = vst [vmem:[#allocation127_spill] sm:$0xff] %v9679_v11  ;;  %v1210_v60 = vrot.slane %v9317_v6, 7  ;;  %v9692_v24 = vrot.slane %v2519_v55, %v8749_v3  ;;  %v2528_v54 = vcombine.low %v9673_v48, %v9659_v40  ;;  %v1206_v45 = vrot.slane %v9327_v33, 7 }
 0x1de   : > { %14091 = vst [vmem:[#allocation128_spill] sm:$0xff] %v9684_v62  ;;  %14092 = vst [vmem:[#allocation129_spill] sm:$0xff] %v9688_v25  ;;  %v1205_v42 = vrot.slane %v1203_v47, 2  ;;  %v2529_v8 = vcombine.low %v9679_v11, %v9684_v62  ;;  %v2762_v18 = vcombine.low %v9666_v16, %v9688_v25  ;;  %v1204_v7 = vsel %vm9524_vm13, %v1202_v4, %v1203_v47 }
 0x1df   : > { %v1212_v32 = vrot.slane %v1210_v60, 2  ;;  %v9704_v6 = vrot.slane %v2528_v54, %v8749_v3  ;;  %v14094_v40 = vrot.slane %v9401_v0, 9  ;;  %v13815_v11 = vrot.slane %v9344_v13, 7 }
 0x1e0   : > { %v1207_v55 = vsel %vm9524_vm13, %v1205_v42, %v1206_v45  ;;  %v9714_v62 = vrot.slane %v2529_v8, %v8749_v3  ;;  %v2769_v25 = vrot.slane %v2762_v18, %v8749_v3  ;;  %v9719_v54 = vcombine.high %v8801_v35, %v8801_v35 }
 0x1e1   : > { %14093 = vst [vmem:[#allocation130_spill] sm:$0xff] %v9704_v6  ;;  %v1211_v33 = vsel %vm9524_vm13, %v14094_v40, %v1210_v60  ;;  %v1848_v4 = vcombine.low %v1204_v7, %v1207_v55  ;;  %v2761_v42 = vcombine.low %v9692_v24, %v9704_v6  ;;  %v1214_v0 = vsel %vm9524_vm13, %v1212_v32, %v13815_v11  ;;  %v534_v7 = vld [vmem:[%s13961_s2 + $0xc0] sm:$0xf]  ;;  %s7314_s2 = sshll.u32 %s8597_s21, 6  ;;  %s8515_s21 = smov [#allocation2]  }
 0x1e2   : > { %v1048_v40 = vrot.slane %v8798_v34, 7  ;;  %v1051_v47 = vrot.slane %v8828_v43, 7  ;;  %v2770_v60 = vcombine.low %v9714_v62, %v2769_v25  ;;  %v1849_v45 = vcombine.low %v1211_v33, %v1214_v0  ;;  %s13622_s25 = scalar_lea.hbm %s13675_s11, %s7314_s2  ;;  %s8443_s0 = sshll.u32 %s8515_s21, 4  ;;  %s8444_s0 = int_to_ptr.vmem [resolvable:$false] %s8443_s0 }
 0x1e3   : > { %v9734_v8 = vrot.slane %v1848_v4, %v8749_v3  ;;  %v1054_v18 = vrot.slane %v8801_v35, 7  ;;  %7534 = vmatmul.mubr.msk.f32.gmra.mrb[16].mxu0 %vm408_vm1, %v2761_v42  ;;  %v7216_v11 = vrot.slane %v9719_v54, 9  ;;  %v1058_v34 = vrot.slane %v8832_v44, 7  ;;  %s8445_s12 = scalar_lea.vmem %s8444_s0, 128 }
 0x1e4   : > { %v1050_v55 = vrot.slane %v1048_v40, 2  ;;  %v1053_v32 = vrot.slane %v1051_v47, 2  ;;  %7536 = vmatprep.mubr.msk.f32.mxu0 %vm408_vm1, %v2770_v60  ;;  %v9742_v43 = vrot.slane %v1849_v45, %v8749_v3  ;;  %v2357_v25 = vcombine.low %v9358_v23, %v9369_v56 }
 0x1e5   : > { %14095 = vst [vmem:[#allocation131_spill] sm:$0xff] %v9734_v8  ;;  %v13819_v33 = vrot.slane %v8848_v51, 7  ;;  %v563_v35 = vadd.f32 %v8737_v61, %v534_v7  ;;  %v1059_v0 = vsel %vm9524_vm13, %v7216_v11, %v1058_v34  ;;  %v1060_v60 = vrot.slane %v1058_v34, 2 }
 0x1e6   : > { %14096 = vst [vmem:[#allocation132_spill] sm:$0xff] %v9742_v43  ;;  %v1052_v4 = vsel %vm9524_vm13, %v1050_v55, %v1051_v47  ;;  %v1055_v42 = vsel %vm9524_vm13, %v1053_v32, %v1054_v18  ;;  %v9756_v45 = vcombine.low %v9734_v8, %v9742_v43  ;;  %v1005_v56 = vcombine.high %v9646_v39, %v9646_v39  ;;  %v14147_v8 = vld [vmem:[#allocation46_spill] sm:$0xff] }
 0x1e7   : > { %v1644_v6 = vcombine.low %v1052_v4, %v1055_v42  ;;  %v588_v23 = vmax.f32 %v563_v35, 0.0  ;;  %v1062_v61 = vsel %vm9524_vm13, %v1060_v60, %v13819_v33  ;;  %v2510_v47 = vcombine.low %v9158_v1, %v9185_v2 }
 0x1e8   : > { %v1039_v11 = vrot.slane %v8925_v21, 7  ;;  %v7933_v34 = vpack.i.bf16 %v2357_v25, %v9756_v45  ;;  %v1645_v7 = vcombine.low %v1059_v0, %v1062_v61  ;;  %v9770_v55 = vrot.slane %v1005_v56, %v8749_v3 }
 0x1e9   : > { %v1652_v18 = vrot.slane %v1644_v6, %v8749_v3  ;;  %v9774_v32 = vrot.slane %v588_v23, %v8749_v3  ;;  %v7215_v35 = vrot.slane %v8902_v10, 9  ;;  %v1042_v6 = vrot.slane %v8915_v14, 7 }
 0x1ea   : > { %v1041_v4 = vrot.slane %v1039_v11, 2  ;;  %7934 = vrot.lane.b32.xlu1 %v7933_v34, %s14090_s29  ;;  %v9779_v2 = vrot.slane %v1645_v7, %v8749_v3  ;;  %v9783_v1 = vcombine.high %v9770_v55, %v9770_v55  ;;  %v1045_v25 = vrot.slane %v8935_v19, 7 }
 0x1eb   : > { %v2504_v42 = vcombine.low %v9064_v50, %v8855_v53  ;;  %v9791_v0 = vcombine.high %v9774_v32, %v9774_v32  ;;  %v7928_v60 = vpack.i.bf16 %v9644_v26, %v2510_v47  ;;  %v1040_v23 = vsel %vm9524_vm13, %v7215_v35, %v1039_v11 }
 0x1ec   : > { %v1660_v56 = vcombine.low %v1652_v18, %v9779_v2  ;;  %v2771_v61 = vcombine.low %v9770_v55, %v9783_v1  ;;  %v1043_v34 = vsel %vm9524_vm13, %v1041_v4, %v1042_v6  ;;  %v1044_v7 = vrot.slane %v1042_v6, 2 }
 0x1ed   : > { %v2772_v53 = vcombine.low %v9774_v32, %v9791_v0  ;;  %v1047_v50 = vrot.slane %v1045_v25, 2  ;;  %v1627_v33 = vcombine.low %v1040_v23, %v1043_v34  ;;  %v2503_v26 = vcombine.low %v8899_v9, %v9061_v12 }
 0x1ee   : > { %v7918_v47 = vpack.i.bf16 %v1660_v56, %v2504_v42  ;;  %v2779_v11 = vrot.slane %v2771_v61, %v8749_v3  ;;  %v7217_v18 = vrot.slane %v8778_v28, 9  ;;  %v1077_v35 = vrot.slane %v8808_v37, 7 }
 0x1ef   : > { %v2786_v39 = vrot.slane %v2772_v53, %v8749_v3  ;;  %v1046_v4 = vsel %vm9524_vm13, %v1044_v7, %v1045_v25  ;;  %v1049_v6 = vsel %vm9524_vm13, %v1047_v50, %v1048_v40  ;;  %v1080_v23 = vrot.slane %v8769_v22, 7 }
 0x1f0   : > { %7919 = vrot.lane.b32.xlu0 %v7918_v47, %s14097_s16  ;;  %v1628_v9 = vcombine.low %v1046_v4, %v1049_v6  ;;  %v1635_v12 = vrot.slane %v1627_v33, %v8749_v3  ;;  %v1079_v42 = vrot.slane %v1077_v35, 2  ;;  %v1083_v28 = vrot.slane %v8785_v30, 7  ;;  %v14102_v6 = vld [vmem:[#allocation5_spill] sm:$0xff] }
 0x1f1   : > { %v2787_v56 = vcombine.low %v2779_v11, %v2786_v39  ;;  %v1078_v37 = vsel %vm9524_vm13, %v7217_v18, %v1077_v35  ;;  %v1082_v61 = vrot.slane %v1080_v23, 2  ;;  %v1086_v25 = vrot.slane %v8781_v29, 7  ;;  %v14098_v39 = vld [vmem:[#allocation30_spill] sm:$0xff]  ;;  %v14101_v18 = vld [vmem:[#allocation11_spill] sm:$0xff] }
 0x1f2   : > { %v1642_v34 = vrot.slane %v1628_v9, %v8749_v3  ;;  %v1081_v22 = vsel %vm9524_vm13, %v1079_v42, %v1080_v23  ;;  %v1085_v40 = vrot.slane %v1083_v28, 2  ;;  %v1321_v7 = vcombine.low %v9719_v54, %v8832_v44  ;;  %v14103_v9 = vld [vmem:[#allocation7_spill] sm:$0xff] }
 0x1f3   : > { %7537 = vmatmul.mubr.msk.f32.gmra.mrb[18].mxu0 %vm408_vm1, %v2787_v56  ;;  %v2516_v30 = vcombine.low %v9480_v31, %v9508_v17  ;;  %v1084_v33 = vsel %vm9524_vm13, %v1082_v61, %v1083_v28  ;;  %v1337_v29 = vcombine.low %v8848_v51, %v14098_v39  ;;  %v1678_v53 = vcombine.low %v1078_v37, %v1081_v22  ;;  %v14107_v22 = vld [vmem:[#allocation31_spill] sm:$0xff] }
 0x1f4   : > { %7929 = vrot.lane.b32.xlu0 %v7928_v60, %s14097_s16  ;;  %v1643_v50 = vcombine.low %v1635_v12, %v1642_v34  ;;  %v1087_v47 = vsel %vm9524_vm13, %v1085_v40, %v1086_v25  ;;  %v9836_v44 = vrot.slane %v1321_v7, %v8749_v3  ;;  %v1088_v54 = vrot.slane %v1086_v25, 2  ;;  %v14106_v25 = vld [vmem:[#allocation12_spill] sm:$0xff]  ;;  %v14108_v40 = vld [vmem:[#allocation33_spill] sm:$0xff] }
 0x1f5   : > { %v9839_v11 = vrot.slane %v1337_v29, %v8749_v3  ;;  %v1679_v31 = vcombine.low %v1084_v33, %v1087_v47  ;;  %v9842_v17 = vrot.slane %v1678_v53, %v8749_v3  ;;  %v1089_v35 = vrot.slane %v14101_v18, 7 }
 0x1f6   : > { %v7943_v4 = vpack.i.bf16 %v1643_v50, %v2503_v26  ;;  %v7938_v60 = vpack.i.bf16 %v9756_v45, %v2516_v30  ;;  %v1092_v23 = vrot.slane %v14102_v6, 7  ;;  %v1096_v12 = vrot.slane %v14103_v9, 7 }
 0x1f7   : > { %14099 = vst [vmem:[#allocation30_spill] sm:$0xff] %v9839_v11  ;;  %14100 = vst [vmem:[#allocation133_spill] sm:$0xff] %v9842_v17  ;;  %v9849_v42 = vrot.slane %v1679_v31, %v8749_v3  ;;  %v2347_v28 = vcombine.low %v9836_v44, %v9839_v11  ;;  %v1090_v56 = vsel %vm9524_vm13, %v1088_v54, %v1089_v35  ;;  %v1091_v37 = vrot.slane %v1089_v35, 2  ;;  %v14164_v11 = vld [vmem:[#allocation60_spill] sm:$0xff] }
 0x1f8   : > { %7944 = vrot.lane.b32.xlu1 %v7943_v4, %s14097_s16  ;;  %7939 = vrot.lane.b32.xlu0 %v7938_v60, %s14097_s16  ;;  %v14105_v45 = vrot.slane %v8852_v52, 9  ;;  %v1098_v61 = vrot.slane %v1096_v12, 2  ;;  %v1099_v34 = vrot.slane %v14106_v25, 7  ;;  %v1338_v7 = vcombine.low %v14108_v40, %v14107_v22 }
 0x1f9   : > { %14104 = vst [vmem:[#allocation11_spill] sm:$0xff] %v9849_v42  ;;  %v1694_v30 = vcombine.low %v9842_v17, %v9849_v42  ;;  %v1093_v33 = vsel %vm9524_vm13, %v1091_v37, %v1092_v23  ;;  %v14109_v29 = vrot.slane %v8848_v51, 7  ;;  %v1064_v52 = vrot.slane %v14098_v39, 7  ;;  %v14112_v23 = vld [vmem:[#allocation36_spill] sm:$0xff]  ;;  %v14114_v37 = vld [vmem:[#allocation23_spill] sm:$0xff] }
 0x1fa   : > { %v1097_v26 = vsel %vm9524_vm13, %v14105_v45, %v1096_v12  ;;  %v1100_v50 = vsel %vm9524_vm13, %v1098_v61, %v1099_v34  ;;  %v9874_v47 = vrot.slane %v1338_v7, %v8749_v3  ;;  %v1695_v54 = vcombine.low %v1090_v56, %v1093_v33 }
 0x1fb   : > { %v1063_v53 = vrot.slane %v14109_v29, 2  ;;  %v1067_v31 = vrot.slane %v14108_v40, 7  ;;  %v7948_v18 = vpack.i.bf16 %v2347_v28, %v1694_v30  ;;  %v1696_v35 = vcombine.low %v1097_v26, %v1100_v50  ;;  %v14115_v29 = vld [vmem:[#allocation6_spill] sm:$0xff]  ;;  %v14140_v26 = vld [vmem:[#allocation35_spill] sm:$0xff] }
 0x1fc   : > { %14110 = vst [vmem:[#allocation5_spill] sm:$0xff] %v9874_v47  ;;  %v1066_v60 = vrot.slane %v1064_v52, 2  ;;  %v9880_v51 = vrot.slane %v1695_v54, %v8749_v3  ;;  %v1073_v9 = vrot.slane %v14112_v23, 7  ;;  %v1070_v56 = vrot.slane %v14107_v22, 7  ;;  %v14117_v22 = vld [vmem:[#allocation15_spill] sm:$0xff]  ;;  %v14118_v54 = vld [vmem:[#allocation18_spill] sm:$0xff] }
 0x1fd   : > { %v1065_v4 = vsel %vm9524_vm13, %v1063_v53, %v1064_v52  ;;  %v1069_v6 = vrot.slane %v1067_v31, 2  ;;  %7949 = vrot.lane.b32.xlu1 %v7948_v18, %s14090_s29  ;;  %v9887_v12 = vrot.slane %v1696_v35, %v8749_v3  ;;  %v2348_v45 = vcombine.low %v9874_v47, %v14114_v37  ;;  %v14116_v52 = vld [vmem:[#allocation16_spill] sm:$0xff]  ;;  %v14120_v35 = vld [vmem:[#allocation9_spill] sm:$0xff] }
 0x1fe   : > { %14111 = vst [vmem:[#allocation7_spill] sm:$0xff] %v9880_v51  ;;  %v1068_v28 = vsel %vm9524_vm13, %v1066_v60, %v1067_v31  ;;  %v1101_v25 = vrot.slane %v1099_v34, 2  ;;  %v1072_v33 = vrot.slane %v1070_v56, 2  ;;  %v1102_v53 = vrot.slane %v14115_v29, 7  ;;  %v14119_v31 = vld [vmem:[#allocation17_spill] sm:$0xff] }
 0x1ff   : > { %14113 = vst [vmem:[#allocation12_spill] sm:$0xff] %v9887_v12  ;;  %v1661_v61 = vcombine.low %v1065_v4, %v1068_v28  ;;  %v9898_v40 = vcombine.low %v9880_v51, %v9887_v12  ;;  %v1071_v7 = vsel %vm9524_vm13, %v1069_v6, %v1070_v56  ;;  %v2505_v50 = vcombine.low %v14117_v22, %v14116_v52  ;;  %v14121_v4 = vld [vmem:[#allocation8_spill] sm:$0xff]  ;;  %v14122_v52 = vld [vmem:[#allocation13_spill] sm:$0xff] }
 0x200   : > { %v2506_v18 = vcombine.low %v14119_v31, %v14118_v54  ;;  %v1105_v60 = vrot.slane %v14120_v35, 7  ;;  %v1108_v34 = vrot.slane %v14121_v4, 7  ;;  %v1074_v28 = vsel %vm9524_vm13, %v1072_v33, %v1073_v9  ;;  %v14123_v35 = vld [vmem:[#allocation28_spill] sm:$0xff] }
 0x201   : > { %v7953_v23 = vpack.i.bf16 %v2348_v45, %v9898_v40  ;;  %v1103_v6 = vsel %vm9524_vm13, %v1101_v25, %v1102_v53  ;;  %v1104_v56 = vrot.slane %v1102_v53, 2  ;;  %v1662_v37 = vcombine.low %v1071_v7, %v1074_v28 }
 0x202   : > { %v1107_v29 = vrot.slane %v1105_v60, 2  ;;  %v1110_v39 = vrot.slane %v1108_v34, 2  ;;  %v1111_v22 = vrot.slane %v14122_v52, 7  ;;  %v9917_v54 = vrot.slane %v1661_v61, %v8749_v3 }
 0x203   : > { %7954 = vrot.lane.b32.xlu0 %v7953_v23, %s14090_s29  ;;  %v7968_v31 = vpack.i.bf16 %v1694_v30, %v2506_v18  ;;  %v1106_v45 = vsel %vm9524_vm13, %v1104_v56, %v1105_v60  ;;  %v1115_v9 = vrot.slane %v14123_v35, 7  ;;  %v9923_v33 = vrot.slane %v1662_v37, %v8749_v3  ;;  %v14124_v23 = vld [vmem:[#allocation25_spill] sm:$0xff]  ;;  %v14125_v30 = vld [vmem:[#allocation27_spill] sm:$0xff]  ;;  %v14141_v56 = vld [vmem:[#allocation34_spill] sm:$0xff] }
 0x204   : > { %v1109_v25 = vsel %vm9524_vm13, %v1107_v29, %v1108_v34  ;;  %v1112_v7 = vsel %vm9524_vm13, %v1110_v39, %v1111_v22  ;;  %v1712_v53 = vcombine.low %v1103_v6, %v1106_v45  ;;  %v7219_v61 = vrot.slane %v14124_v23, 9  ;;  %v14127_v34 = vld [vmem:[#allocation29_spill] sm:$0xff]  ;;  %v14139_v35 = vld [vmem:[#allocation19_spill] sm:$0xff] }
 0x205   : > { %v1713_v4 = vcombine.low %v1109_v25, %v1112_v7  ;;  %v1117_v28 = vrot.slane %v1115_v9, 2  ;;  %v1118_v18 = vrot.slane %v14125_v30, 7  ;;  %v1677_v60 = vcombine.low %v9917_v54, %v9923_v33  ;;  %v14131_v30 = vld [vmem:[#allocation24_spill] sm:$0xff] }
 0x206   : > { %v9936_v37 = vrot.slane %v1712_v53, %v8749_v3  ;;  %v1121_v29 = vrot.slane %v14127_v34, 7  ;;  %v1116_v6 = vsel %vm9524_vm13, %v7219_v61, %v1115_v9  ;;  %v14129_v53 = vld [vmem:[#allocation62_spill] sm:$0xff] }
 0x207   : > { %7969 = vrot.lane.b32.xlu0 %v7968_v31, %s14097_s16  ;;  %v9941_v39 = vrot.slane %v1713_v4, %v8749_v3  ;;  %v1119_v52 = vsel %vm9524_vm13, %v1117_v28, %v1118_v18  ;;  %v1120_v22 = vrot.slane %v1118_v18, 2  ;;  %v7958_v45 = vpack.i.bf16 %v1677_v60, %v2505_v50  ;;  %v14130_v4 = vld [vmem:[#allocation20_spill] sm:$0xff]  ;;  %v14134_v60 = vld [vmem:[#allocation106_spill] sm:$0xff] }
 0x208   : > { %14126 = vst [vmem:[#allocation31_spill] sm:$0xff] %v9936_v37  ;;  %v1123_v25 = vrot.slane %v1121_v29, 2  ;;  %v1729_v7 = vcombine.low %v1116_v6, %v1119_v52  ;;  %v2349_v34 = vcombine.low %v14131_v30, %v14130_v4  ;;  %v14132_v50 = vrot.slane %v8941_v38, 7  ;;  %v14135_v6 = vld [vmem:[#allocation98_spill] sm:$0xff]  ;;  %v14136_v30 = vld [vmem:[#allocation40_spill] sm:$0xff] }
 0x209   : > { %14128 = vst [vmem:[#allocation33_spill] sm:$0xff] %v9941_v39  ;;  %v1728_v31 = vcombine.low %v9936_v37, %v9941_v39  ;;  %v1122_v9 = vsel %vm9524_vm13, %v1120_v22, %v1121_v29  ;;  %7959 = vrot.lane.b32.xlu1 %v7958_v45, %s14097_s16  ;;  %v9966_v18 = vcombine.high %v9521_v57, %v9521_v57  ;;  %v14137_v29 = vld [vmem:[#allocation21_spill] sm:$0xff]  ;;  %v14138_v45 = vld [vmem:[#allocation32_spill] sm:$0xff]  ;;  %v1149_v39 = vrot.slane %v14147_v8, 7  ;;  %v14153_v37 = vld [vmem:[#allocation38_spill] sm:$0xff] }
 0x20a   : > { %v1125_v61 = vsel %vm9524_vm13, %v1123_v25, %v14132_v50  ;;  %v9962_v28 = vrot.slane %v1729_v7, %v8749_v3  ;;  %v1575_v52 = vcombine.low %v14135_v6, %v14134_v60  ;;  %v2350_v22 = vcombine.low %v14137_v29, %v14136_v30  ;;  %v14146_v7 = vld [vmem:[#allocation44_spill] sm:$0xff] }
 0x20b   : > { %v1730_v4 = vcombine.low %v1122_v9, %v1125_v61  ;;  %v2507_v38 = vcombine.low %v14139_v35, %v14138_v45  ;;  %v2508_v25 = vcombine.low %v14141_v56, %v14140_v26  ;;  %v7963_v50 = vpack.i.bf16 %v2349_v34, %v1728_v31  ;;  %v14144_v35 = vld [vmem:[#allocation42_spill] sm:$0xff]  ;;  %v14145_v45 = vld [vmem:[#allocation43_spill] sm:$0xff] }
 0x20c   : > { %14133 = vst [vmem:[#allocation36_spill] sm:$0xff] %v9962_v28  ;;  %v1576_v23 = vcombine.low %v9966_v18, %v9539_v27  ;;  %v9981_v43 = vrot.slane %v1575_v52, %v8749_v3  ;;  %v14143_v61 = vrot.slane %v8999_v59, 7  ;;  %v1140_v29 = vrot.slane %v14144_v35, 7  ;;  %v14149_v59 = vld [vmem:[#allocation113_spill] sm:$0xff] }
 0x20d   : > { %v9984_v9 = vrot.slane %v1730_v4, %v8749_v3  ;;  %v1143_v26 = vrot.slane %v14145_v45, 7  ;;  %7964 = vrot.lane.b32.xlu1 %v7963_v50, %s14090_s29  ;;  %v7978_v56 = vpack.i.bf16 %v9898_v40, %v2507_v38  ;;  %v1146_v52 = vrot.slane %v14146_v7, 7 }
 0x20e   : > { %v1139_v30 = vrot.slane %v14143_v61, 2  ;;  %v9993_v34 = vrot.slane %v1576_v23, %v8749_v3  ;;  %v1142_v35 = vrot.slane %v1140_v29, 2  ;;  %v7988_v50 = vpack.i.bf16 %v1728_v31, %v2508_v25  ;;  %v14154_v31 = vld [vmem:[#allocation90_spill] sm:$0xff] }
 0x20f   : > { %14142 = vst [vmem:[#allocation23_spill] sm:$0xff] %v9984_v9  ;;  %v1745_v4 = vcombine.low %v9962_v28, %v9984_v9  ;;  %v1145_v23 = vrot.slane %v1143_v26, 2  ;;  %v1148_v38 = vrot.slane %v1146_v52, 2  ;;  %v1592_v45 = vcombine.low %v9557_v5, %v9544_v63  ;;  %v14152_v28 = vld [vmem:[#allocation51_spill] sm:$0xff] }
 0x210   : > { %v1141_v61 = vsel %vm9524_vm13, %v1139_v30, %v1140_v29  ;;  %v10005_v40 = vcombine.low %v9981_v43, %v9993_v34  ;;  %v1144_v8 = vsel %vm9524_vm13, %v1142_v35, %v1143_v26  ;;  %v1593_v49 = vcombine.low %v14149_v59, %v9563_v20  ;;  %v14150_v26 = vld [vmem:[#allocation54_spill] sm:$0xff]  ;;  %v14151_v35 = vld [vmem:[#allocation37_spill] sm:$0xff] }
 0x211   : > { %v7973_v7 = vpack.i.bf16 %v2350_v22, %v1745_v4  ;;  %7979 = vrot.lane.b32.xlu1 %v7978_v56, %s14097_s16  ;;  %v1147_v25 = vsel %vm9524_vm13, %v1145_v23, %v1146_v52  ;;  %v1150_v30 = vsel %vm9524_vm13, %v1148_v38, %v1149_v39  ;;  %v1763_v22 = vcombine.low %v1141_v61, %v1144_v8  ;;  %v14156_v39 = vld [vmem:[#allocation52_spill] sm:$0xff]  ;;  %v14157_v23 = vld [vmem:[#allocation45_spill] sm:$0xff] }
 0x212   : > { %14148 = vst [vmem:[#allocation6_spill] sm:$0xff] %v10005_v40  ;;  %v1764_v29 = vcombine.low %v1147_v25, %v1150_v30  ;;  %v2352_v9 = vcombine.low %v14151_v35, %v14150_v26  ;;  %v2509_v12 = vcombine.low %v14153_v37, %v14152_v28  ;;  %v10025_v56 = vrot.slane %v1592_v45, %v8749_v3  ;;  %v14159_v37 = vld [vmem:[#allocation49_spill] sm:$0xff]  ;;  %v14160_v45 = vld [vmem:[#allocation48_spill] sm:$0xff]  ;;  %v14161_v30 = vld [vmem:[#allocation47_spill] sm:$0xff] }
 0x213   : > { %7974 = vrot.lane.b32.xlu0 %v7973_v7, %s14090_s29  ;;  %v7983_v47 = vpack.i.bf16 %v14154_v31, %v10005_v40  ;;  %v10030_v52 = vrot.slane %v1763_v22, %v8749_v3  ;;  %v1153_v61 = vrot.slane %v14156_v39, 7  ;;  %v1156_v38 = vrot.slane %v14157_v23, 7 }
 0x214   : > { %v10035_v7 = vrot.slane %v1764_v29, %v8749_v3  ;;  %v10038_v8 = vrot.slane %v1593_v49, %v8749_v3  ;;  %v1159_v28 = vrot.slane %v14159_v37, 7  ;;  %v1162_v25 = vrot.slane %v14160_v45, 7 }
 0x215   : > { %14155 = vst [vmem:[#allocation16_spill] sm:$0xff] %v10030_v52  ;;  %7984 = vrot.lane.b32.xlu1 %v7983_v47, %s13848_s13  ;;  %v7221_v22 = vrot.slane %v14161_v30, 9  ;;  %v1155_v26 = vrot.slane %v1153_v61, 2  ;;  %v1158_v35 = vrot.slane %v1156_v38, 2  ;;  %v8003_v49 = vpack.i.bf16 %v1745_v4, %v2509_v12  ;;  %v14163_v30 = vld [vmem:[#allocation57_spill] sm:$0xff] }
 0x216   : > { %14158 = vst [vmem:[#allocation15_spill] sm:$0xff] %v10035_v7  ;;  %v1779_v29 = vcombine.low %v10030_v52, %v10035_v7  ;;  %v10051_v39 = vcombine.low %v10025_v56, %v10038_v8  ;;  %v1161_v23 = vrot.slane %v1159_v28, 2  ;;  %v1164_v45 = vrot.slane %v1162_v25, 2  ;;  %v14190_v7 = vld [vmem:[#allocation73_spill] sm:$0xff] }
 0x217   : > { %7989 = vrot.lane.b32.xlu0 %v7988_v50, %s14097_s16  ;;  %v1154_v47 = vsel %vm9524_vm13, %v7221_v22, %v1153_v61  ;;  %v1157_v37 = vsel %vm9524_vm13, %v1155_v26, %v1156_v38  ;;  %v1165_v31 = vrot.slane %v14163_v30, 7  ;;  %v1160_v50 = vsel %vm9524_vm13, %v1158_v35, %v1159_v28  ;;  %v14165_v22 = vld [vmem:[#allocation61_spill] sm:$0xff]  ;;  %v14166_v38 = vld [vmem:[#allocation107_spill] sm:$0xff]  ;;  %v14168_v28 = vld [vmem:[#allocation50_spill] sm:$0xff] }
 0x218   : > { %14162 = vst [vmem:[#allocation18_spill] sm:$0xff] %v10051_v39  ;;  %v7993_v40 = vpack.i.bf16 %v2352_v9, %v1779_v29  ;;  %v1163_v12 = vsel %vm9524_vm13, %v1161_v23, %v1162_v25  ;;  %v1780_v4 = vcombine.low %v1154_v47, %v1157_v37  ;;  %v1168_v61 = vrot.slane %v14164_v11, 7  ;;  %v14169_v35 = vld [vmem:[#allocation55_spill] sm:$0xff]  ;;  %v14170_v23 = vld [vmem:[#allocation64_spill] sm:$0xff] }
 0x219   : > { %8004 = vrot.lane.b32.xlu1 %v8003_v49, %s14097_s16  ;;  %v1781_v52 = vcombine.low %v1160_v50, %v1163_v12  ;;  %v1167_v58 = vrot.slane %v1165_v31, 2  ;;  %v1172_v51 = vrot.slane %v14165_v22, 7  ;;  %v7998_v9 = vpack.i.bf16 %v14166_v38, %v10051_v39  ;;  %v14173_v22 = vld [vmem:[#allocation71_spill] sm:$0xff]  ;;  %v14174_v38 = vld [vmem:[#allocation53_spill] sm:$0xff]  ;;  %v14185_v39 = vld [vmem:[#allocation80_spill] sm:$0xff] }
 0x21a   : > { %v10069_v26 = vrot.slane %v1780_v4, %v8749_v3  ;;  %v2353_v25 = vcombine.low %v14169_v35, %v14168_v28  ;;  %v1175_v47 = vrot.slane %v14170_v23, 7  ;;  %v1166_v11 = vsel %vm9524_vm13, %v1164_v45, %v1165_v31  ;;  %v14175_v45 = vld [vmem:[#allocation63_spill] sm:$0xff] }
 0x21b   : > { %7994 = vrot.lane.b32.xlu0 %v7993_v40, %s14090_s29  ;;  %v10075_v49 = vrot.slane %v1781_v52, %v8749_v3  ;;  %v1169_v40 = vsel %vm9524_vm13, %v1167_v58, %v1168_v61  ;;  %v1174_v37 = vrot.slane %v1172_v51, 2  ;;  %v14172_v50 = vrot.slane %v14129_v53, 9 }
 0x21c   : > { %14167 = vst [vmem:[#allocation17_spill] sm:$0xff] %v10069_v26  ;;  %v1797_v4 = vcombine.low %v1166_v11, %v1169_v40  ;;  %v2354_v52 = vcombine.low %v14174_v38, %v14173_v22  ;;  %v1177_v58 = vrot.slane %v1175_v47, 2  ;;  %v1178_v61 = vrot.slane %v14175_v45, 7  ;;  %v14178_v11 = vld [vmem:[#allocation66_spill] sm:$0xff]  ;;  %v14179_v22 = vld [vmem:[#allocation65_spill] sm:$0xff] }
 0x21d   : > { %14171 = vst [vmem:[#allocation9_spill] sm:$0xff] %v10075_v49  ;;  %v1173_v12 = vsel %vm9524_vm13, %v14172_v50, %v1172_v51  ;;  %v1796_v28 = vcombine.low %v10069_v26, %v10075_v49  ;;  %v1176_v31 = vsel %vm9524_vm13, %v1174_v37, %v1175_v47  ;;  %v14177_v51 = vld [vmem:[#allocation67_spill] sm:$0xff]  ;;  %v1184_v40 = vrot.slane %v14178_v11, 7  ;;  %v14180_v38 = vld [vmem:[#allocation58_spill] sm:$0xff] }
 0x21e   : > { %v1798_v35 = vcombine.low %v1173_v12, %v1176_v31  ;;  %v10096_v53 = vrot.slane %v1797_v4, %v8749_v3  ;;  %v1181_v23 = vrot.slane %v14177_v51, 7  ;;  %v2511_v30 = vcombine.low %v14180_v38, %v14179_v22  ;;  %v14182_v51 = vld [vmem:[#allocation74_spill] sm:$0xff]  ;;  %v14184_v38 = vld [vmem:[#allocation69_spill] sm:$0xff] }
 0x21f   : > { %7999 = vrot.lane.b32.xlu0 %v7998_v9, %s13848_s13  ;;  %v8008_v50 = vpack.i.bf16 %v2353_v25, %v1796_v28  ;;  %v1179_v37 = vsel %vm9524_vm13, %v1177_v58, %v1178_v61  ;;  %v1180_v47 = vrot.slane %v1178_v61, 2  ;;  %v1186_v4 = vrot.slane %v1184_v40, 2  ;;  %v14183_v25 = vld [vmem:[#allocation72_spill] sm:$0xff] }
 0x220   : > { %14176 = vst [vmem:[#allocation8_spill] sm:$0xff] %v10096_v53  ;;  %v10105_v45 = vrot.slane %v1798_v35, %v8749_v3  ;;  %v1183_v12 = vrot.slane %v1181_v23, 2  ;;  %v8018_v31 = vpack.i.bf16 %v1779_v29, %v2511_v30  ;;  %v2512_v11 = vcombine.low %v14183_v25, %v14182_v51  ;;  %v14186_v30 = vld [vmem:[#allocation79_spill] sm:$0xff]  ;;  %v14187_v51 = vld [vmem:[#allocation81_spill] sm:$0xff] }
 0x221   : > { %8009 = vrot.lane.b32.xlu1 %v8008_v50, %s14090_s29  ;;  %v1182_v22 = vsel %vm9524_vm13, %v1180_v47, %v1181_v23  ;;  %v1187_v58 = vrot.slane %v14184_v38, 7  ;;  %v1191_v49 = vrot.slane %v14185_v39, 7  ;;  %v1194_v50 = vrot.slane %v14186_v30, 7 }
 0x222   : > { %14181 = vst [vmem:[#allocation13_spill] sm:$0xff] %v10105_v45  ;;  %v1813_v61 = vcombine.low %v10096_v53, %v10105_v45  ;;  %v1185_v35 = vsel %vm9524_vm13, %v1183_v12, %v1184_v40  ;;  %v1814_v9 = vcombine.low %v1179_v37, %v1182_v22  ;;  %v8028_v26 = vpack.i.bf16 %v1796_v28, %v2512_v11  ;;  %v14189_v53 = vld [vmem:[#allocation68_spill] sm:$0xff]  ;;  %v14191_v40 = vld [vmem:[#allocation78_spill] sm:$0xff] }
 0x223   : > { %v1188_v29 = vsel %vm9524_vm13, %v1186_v4, %v1187_v58  ;;  %v1197_v25 = vrot.slane %v14187_v51, 7  ;;  %v2355_v42 = vcombine.low %v14190_v7, %v14189_v53  ;;  %v7223_v39 = vrot.slane %v14191_v40, 9  ;;  %v14194_v11 = vld [vmem:[#allocation70_spill] sm:$0xff]  ;;  %v14197_v40 = vld [vmem:[#allocation77_spill] sm:$0xff] }
 0x224   : > { %v8013_v23 = vpack.i.bf16 %v2354_v52, %v1813_v61  ;;  %v1815_v47 = vcombine.low %v1185_v35, %v1188_v29  ;;  %v10125_v38 = vrot.slane %v1814_v9, %v8749_v3  ;;  %v1193_v28 = vrot.slane %v1191_v49, 2  ;;  %v14193_v9 = vld [vmem:[#allocation82_spill] sm:$0xff] }
 0x225   : > { %8019 = vrot.lane.b32.xlu1 %v8018_v31, %s14097_s16  ;;  %v1196_v37 = vrot.slane %v1194_v50, 2  ;;  %v1199_v12 = vrot.slane %v1197_v25, 2  ;;  %v2356_v22 = vcombine.low %v14194_v11, %v14193_v9  ;;  %v2363_v7 = vcombine.low %v9634_v46, %v9656_v15 }
 0x226   : > { %14188 = vst [vmem:[#allocation28_spill] sm:$0xff] %v10125_v38  ;;  %8014 = vrot.lane.b32.xlu0 %v8013_v23, %s14090_s29  ;;  %v10133_v4 = vrot.slane %v1815_v47, %v8749_v3  ;;  %v1192_v53 = vsel %vm9524_vm13, %v7223_v39, %v1191_v49  ;;  %v1195_v31 = vsel %vm9524_vm13, %v1193_v28, %v1194_v50  ;;  %v14195_v35 = vrot.slane %v9305_v41, 7  ;;  %v14196_v47 = vld [vmem:[#allocation83_spill] sm:$0xff]  ;;  %v14198_v49 = vld [vmem:[#allocation125_spill] sm:$0xff] }
 0x227   : > { %v1198_v58 = vsel %vm9524_vm13, %v1196_v37, %v1197_v25  ;;  %v1831_v51 = vcombine.low %v1192_v53, %v1195_v31  ;;  %v2513_v9 = vcombine.low %v14197_v40, %v14196_v47  ;;  %v2372_v39 = vcombine.low %v14198_v49, %v9673_v48  ;;  %v14200_v25 = vld [vmem:[#allocation91_spill] sm:$0xff]  ;;  %v14201_v41 = vld [vmem:[#allocation93_spill] sm:$0xff]  ;;  %v14206_v40 = vld [vmem:[#allocation92_spill] sm:$0xff] }
 0x228   : > { %14192 = vst [vmem:[#allocation25_spill] sm:$0xff] %v10133_v4  ;;  %v1201_v29 = vsel %vm9524_vm13, %v1199_v12, %v14195_v35  ;;  %v1830_v30 = vcombine.low %v10125_v38, %v10133_v4  ;;  %v14199_v50 = vrot.slane %v9344_v13, 7  ;;  %v1216_v37 = vrot.slane %v14200_v25, 7  ;;  %v14208_v4 = vld [vmem:[#allocation103_spill] sm:$0xff]  ;;  %v14212_v38 = vld [vmem:[#allocation126_spill] sm:$0xff] }
 0x229   : > { %v1832_v23 = vcombine.low %v1198_v58, %v1201_v29  ;;  %v1219_v11 = vrot.slane %v14201_v41, 7  ;;  %v10163_v35 = vrot.slane %v1831_v51, %v8749_v3  ;;  %v10169_v31 = vrot.slane %v2363_v7, %v8749_v3  ;;  %v14204_v51 = vld [vmem:[#allocation85_spill] sm:$0xff] }
 0x22a   : > { %v1215_v28 = vrot.slane %v14199_v50, 2  ;;  %8029 = vrot.lane.b32.xlu0 %v8028_v26, %s14097_s16  ;;  %v8023_v12 = vpack.i.bf16 %v2355_v42, %v1830_v30  ;;  %v10172_v58 = vrot.slane %v2372_v39, %v8749_v3  ;;  %v1218_v29 = vrot.slane %v1216_v37, 2 }
 0x22b   : > { %14202 = vst [vmem:[#allocation27_spill] sm:$0xff] %v10163_v35  ;;  %v10166_v53 = vrot.slane %v1832_v23, %v8749_v3  ;;  %v1221_v47 = vrot.slane %v1219_v11, 2  ;;  %v14205_v23 = vld [vmem:[#allocation84_spill] sm:$0xff]  ;;  %v1222_v50 = vrot.slane %v14206_v40, 7  ;;  %v8038_v39 = vpack.i.bf16 %v1813_v61, %v2513_v9  ;;  %v14211_v9 = vld [vmem:[#allocation127_spill] sm:$0xff] }
 0x22c   : > { %v1217_v13 = vsel %vm9524_vm13, %v1215_v28, %v1216_v37  ;;  %8024 = vrot.lane.b32.xlu1 %v8023_v12, %s14090_s29  ;;  %v2514_v7 = vcombine.low %v14205_v23, %v14204_v51  ;;  %v2599_v25 = vcombine.low %v10169_v31, %v10172_v58  ;;  %v1220_v28 = vsel %vm9524_vm13, %v1218_v29, %v1219_v11  ;;  %v14207_v37 = vld [vmem:[#allocation94_spill] sm:$0xff]  ;;  %v14209_v51 = vld [vmem:[#allocation88_spill] sm:$0xff] }
 0x22d   : > { %14203 = vst [vmem:[#allocation29_spill] sm:$0xff] %v10166_v53  ;;  %v1847_v42 = vcombine.low %v10163_v35, %v10166_v53  ;;  %v1225_v41 = vrot.slane %v14207_v37, 7  ;;  %v1223_v52 = vsel %vm9524_vm13, %v1221_v47, %v1222_v50  ;;  %v1224_v53 = vrot.slane %v1222_v50, 2  ;;  %v14210_v40 = vld [vmem:[#allocation128_spill] sm:$0xff]  ;;  %v14215_v29 = vld [vmem:[#allocation86_spill] sm:$0xff] }
 0x22e   : > { %v1865_v26 = vcombine.low %v1217_v13, %v1220_v28  ;;  %v8048_v35 = vpack.i.bf16 %v1830_v30, %v2514_v7  ;;  %v2515_v23 = vcombine.low %v14209_v51, %v14208_v4  ;;  %v10195_v61 = vcombine.high %v14210_v40, %v14210_v40  ;;  %v14214_v30 = vld [vmem:[#allocation97_spill] sm:$0xff]  ;;  %v14216_v4 = vld [vmem:[#allocation100_spill] sm:$0xff] }
 0x22f   : > { %v8033_v12 = vpack.i.bf16 %v2356_v22, %v1847_v42  ;;  %v2373_v45 = vcombine.low %v14212_v38, %v14211_v9  ;;  %v14213_v22 = vld [vmem:[#allocation111_spill] sm:$0xff]  ;;  %v1226_v13 = vsel %vm9524_vm13, %v1224_v53, %v1225_v41  ;;  %v2358_v47 = vcombine.low %v14215_v29, %v14214_v30  ;;  %v14217_v51 = vld [vmem:[#allocation96_spill] sm:$0xff] }
 0x230   : > { %8039 = vrot.lane.b32.xlu1 %v8038_v39, %s14097_s16  ;;  %v8043_v11 = vpack.i.bf16 %v14213_v22, %v2599_v25  ;;  %v1229_v7 = vrot.slane %v14216_v4, 7  ;;  %v1866_v50 = vcombine.low %v1223_v52, %v1226_v13  ;;  %v10208_v28 = vrot.slane %v1865_v26, %v8749_v3  ;;  %v14219_v22 = vld [vmem:[#allocation95_spill] sm:$0xff] }
 0x231   : > { %8034 = vrot.lane.b32.xlu0 %v8033_v12, %s14090_s29  ;;  %v8063_v37 = vpack.i.bf16 %v1847_v42, %v2515_v23  ;;  %v7225_v17 = vrot.slane %v14217_v51, 9  ;;  %v10213_v39 = vrot.slane %v2373_v45, %v8749_v3  ;;  %v2600_v53 = vcombine.low %v10195_v61, %v9666_v16  ;;  %v14220_v13 = vld [vmem:[#allocation99_spill] sm:$0xff] }
 0x232   : > { %v1231_v25 = vrot.slane %v1229_v7, 2  ;;  %v10218_v41 = vrot.slane %v1866_v50, %v8749_v3  ;;  %v1232_v52 = vrot.slane %v14219_v22, 7  ;;  %v1235_v26 = vrot.slane %v14220_v13, 7 }
 0x233   : > { %v1238_v42 = vrot.slane %v14135_v6, 7  ;;  %v2607_v45 = vrot.slane %v2600_v53, %v8749_v3  ;;  %v1230_v23 = vsel %vm9524_vm13, %v7225_v17, %v1229_v7  ;;  %v1241_v30 = vrot.slane %v14134_v60, 7  ;;  %v14221_v7 = vld [vmem:[#allocation120_spill] sm:$0xff] }
 0x234   : > { %14218 = vst [vmem:[#allocation62_spill] sm:$0xff] %v10218_v41  ;;  %8044 = vrot.lane.b32.xlu1 %v8043_v11, %s13848_s13  ;;  %v1244_v29 = vrot.slane %v9521_v57, 7  ;;  %v1881_v4 = vcombine.low %v10208_v28, %v10218_v41  ;;  %v1233_v50 = vsel %vm9524_vm13, %v1231_v25, %v1232_v52  ;;  %v1234_v6 = vrot.slane %v1232_v52, 2 }
 0x235   : > { %8049 = vrot.lane.b32.xlu0 %v8048_v35, %s14097_s16  ;;  %v1237_v51 = vrot.slane %v1235_v26, 2  ;;  %v2608_v35 = vcombine.low %v10213_v39, %v2607_v45  ;;  %v1882_v11 = vcombine.low %v1230_v23, %v1233_v50  ;;  %v1240_v22 = vrot.slane %v1238_v42, 2  ;;  %v14222_v45 = vld [vmem:[#allocation101_spill] sm:$0xff]  ;;  %v14223_v23 = vld [vmem:[#allocation102_spill] sm:$0xff] }
 0x236   : > { %v1243_v53 = vrot.slane %v1241_v30, 2  ;;  %v8053_v13 = vpack.i.bf16 %v2358_v47, %v1881_v4  ;;  %v1236_v17 = vsel %vm9524_vm13, %v1234_v6, %v1235_v26  ;;  %v1248_v60 = vrot.slane %v9539_v27, 7  ;;  %v2896_v47 = vld [vmem:[%s13667_s3] sm:$0xff]  ;;  %v2897_v26 = vld [vmem:[%s13667_s3 + $0x8] sm:$0xff] }
 0x237   : > { %v1239_v57 = vsel %vm9524_vm13, %v1237_v51, %v1238_v42  ;;  %v8058_v25 = vpack.i.bf16 %v14221_v7, %v2608_v35  ;;  %v10243_v12 = vrot.slane %v1882_v11, %v8749_v3  ;;  %v2359_v50 = vcombine.low %v14223_v23, %v14222_v45  ;;  %v10259_v51 = vpop.permute.xlu1 %7859  ;;  %v14229_v7 = vld [vmem:[#allocation108_spill] sm:$0xff] }
 0x238   : > { %8064 = vrot.lane.b32.xlu1 %v8063_v37, %s14097_s16  ;;  %v1883_v52 = vcombine.low %v1236_v17, %v1239_v57  ;;  %v1242_v27 = vsel %vm9524_vm13, %v1240_v22, %v1241_v30  ;;  %v1245_v37 = vsel %vm9524_vm13, %v1243_v53, %v1244_v29  ;;  %v1250_v42 = vrot.slane %v1248_v60, 2  ;;  %v14226_v22 = vld [vmem:[#allocation115_spill] sm:$0xff]  ;;  %v14227_v53 = vld [vmem:[#allocation104_spill] sm:$0xff] }
 0x239   : > { %8054 = vrot.lane.b32.xlu0 %v8053_v13, %s14090_s29  ;;  %v1251_v6 = vrot.slane %v9557_v5, 7  ;;  %v14225_v17 = vrot.slane %v9966_v18, 9  ;;  %v1899_v30 = vcombine.low %v1242_v27, %v1245_v37  ;;  %v2360_v5 = vcombine.low %v14227_v53, %v14226_v22  ;;  %v14228_v57 = vld [vmem:[#allocation112_spill] sm:$0xff]  ;;  %v14230_v27 = vld [vmem:[#allocation117_spill] sm:$0xff] }
 0x23a   : > { %v10262_v35 = vrot.slane %v1883_v52, %v8749_v3  ;;  %v2517_v45 = vcombine.low %v14229_v7, %v14228_v57  ;;  %v7653_v52 = vpack.c.bf16 %v2897_v26, %v2896_v47  ;;  %v14231_v37 = vld [vmem:[#allocation116_spill] sm:$0xff]  ;;  %v1257_v47 = vrot.slane %v14149_v59, 7 }
 0x23b   : > { %v1249_v13 = vsel %vm9524_vm13, %v14225_v17, %v1248_v60  ;;  %v1252_v29 = vsel %vm9524_vm13, %v1250_v42, %v1251_v6  ;;  %v10279_v18 = vrot.slane %v1899_v30, %v8749_v3  ;;  %v1253_v41 = vrot.slane %v1251_v6, 2  ;;  %v10281_v60 = vpop.permute.xlu0 %7854  ;;  %v2899_v6 = vld [vmem:[%s13667_s3 + $0x18] sm:$0xff]  ;;  %v10303_v7 = vpop.permute.xlu1 %7869 }
 0x23c   : > { %14224 = vst [vmem:[#allocation20_spill] sm:$0xff] %v10262_v35  ;;  %v1898_v23 = vcombine.low %v10243_v12, %v10262_v35  ;;  %v1900_v11 = vcombine.low %v1249_v13, %v1252_v29  ;;  %7654 = vmatpush1.bf16.msra.mxu1 %v7653_v52  ;;  %v2518_v42 = vcombine.low %v14231_v37, %v14230_v27  ;;  %v1254_v17 = vrot.slane %v9544_v63, 7  ;;  %v2898_v13 = vld [vmem:[%s13667_s3 + $0x10] sm:$0xff] }
 0x23d   : > { %8059 = vrot.lane.b32.xlu0 %v8058_v25, %s13848_s13  ;;  %v1260_v26 = vrot.slane %v9563_v20, 7  ;;  %v8078_v63 = vpack.i.bf16 %v1881_v4, %v2517_v45  ;;  %v14232_v22 = vmov 0.0|0.0   ;;  %v1259_v53 = vrot.slane %v1257_v47, 2  ;;  %v14233_v52 = vld [vmem:[#allocation114_spill] sm:$0xff] }
 0x23e   : > { %v8068_v30 = vpack.i.bf16 %v2359_v50, %v1898_v23  ;;  %v10296_v25 = vrot.slane %v1900_v11, %v8749_v3  ;;  %7655 = vmatprep.subr.bf16.mxu1 %v14232_v22  ;;  %v1255_v20 = vsel %vm9524_vm13, %v1253_v41, %v1254_v17  ;;  %v1256_v59 = vrot.slane %v1254_v17, 2 }
 0x23f   : > { %v1262_v57 = vrot.slane %v1260_v26, 2  ;;  %v8088_v11 = vpack.i.bf16 %v1898_v23, %v2518_v42  ;;  %v1263_v27 = vrot.slane %v14233_v52, 7  ;;  %v7656_v37 = vpack.c.bf16 %v2899_v6, %v2898_v13  ;;  %v10318_v42 = vpop.permute.xlu0 %7864 }
 0x240   : > { %8069 = vrot.lane.b32.xlu1 %v8068_v30, %s14090_s29  ;;  %v1915_v50 = vcombine.low %v10279_v18, %v10296_v25  ;;  %v1258_v4 = vsel %vm9524_vm13, %v1256_v59, %v1257_v47  ;;  %v1261_v41 = vsel %vm9524_vm13, %v1259_v53, %v1260_v26  ;;  %v7227_v45 = vrot.slane %v9634_v46, 9  ;;  %v14234_v47 = vld [vmem:[#allocation119_spill] sm:$0xff]  ;;  %v2901_v46 = vld [vmem:[%s13667_s3 + $0x28] sm:$0xff] }
 0x241   : > { %v1267_v17 = vrot.slane %v9656_v15, 7  ;;  %v1264_v30 = vsel %vm9524_vm13, %v1262_v57, %v1263_v27  ;;  %v1916_v35 = vcombine.low %v1255_v20, %v1258_v4  ;;  %7657 = vmatpush1.bf16.msra.mxu1 %v7656_v37  ;;  %v1270_v23 = vrot.slane %v14198_v49, 7  ;;  %v2900_v15 = vld [vmem:[%s13667_s3 + $0x20] sm:$0xff]  ;;  %v14235_v27 = vld [vmem:[#allocation121_spill] sm:$0xff] }
 0x242   : > { %v8073_v29 = vpack.i.bf16 %v2360_v5, %v1915_v50  ;;  %v1917_v13 = vcombine.low %v1261_v41, %v1264_v30  ;;  %v2361_v6 = vcombine.low %v14234_v47, %v9981_v43  ;;  %v1273_v26 = vrot.slane %v9673_v48, 7  ;;  %7658 = vmatprep.subr.bf16.mxu1 %v14232_v22 }
 0x243   : > { %v1269_v59 = vrot.slane %v1267_v17, 2  ;;  %v10333_v49 = vrot.slane %v1916_v35, %v8749_v3  ;;  %v1268_v43 = vsel %vm9524_vm13, %v7227_v45, %v1267_v17  ;;  %v1272_v48 = vrot.slane %v1270_v23, 2 }
 0x244   : > { %8074 = vrot.lane.b32.xlu0 %v8073_v29, %s14090_s29  ;;  %8079 = vrot.lane.b32.xlu1 %v8078_v63, %s14097_s16  ;;  %v1276_v5 = vrot.slane %v14212_v38, 7  ;;  %v10339_v20 = vrot.slane %v1917_v13, %v8749_v3  ;;  %v1275_v57 = vrot.slane %v1273_v26, 2  ;;  %v2362_v29 = vcombine.low %v9993_v34, %v10025_v56  ;;  %v10345_v63 = vpop.permute.xlu1 %7879  ;;  %v14236_v34 = vld [vmem:[#allocation130_spill] sm:$0xff]  ;;  %v10364_v13 = vpop.permute.xlu0 %7874 }
 0x245   : > { %v1271_v53 = vsel %vm9524_vm13, %v1269_v59, %v1270_v23  ;;  %v2458_v35 = vcombine.low %v10296_v25, %v10333_v49  ;;  %v2527_v37 = vcombine.low %v14235_v27, %v9692_v24  ;;  %v7659_v38 = vpack.c.bf16 %v2901_v46, %v2900_v15 }
 0x246   : > { %v2459_v52 = vcombine.low %v1268_v43, %v1271_v53  ;;  %v1932_v4 = vcombine.low %v10333_v49, %v10339_v20  ;;  %v1274_v41 = vsel %vm9524_vm13, %v1272_v48, %v1273_v26  ;;  %v1277_v45 = vsel %vm9524_vm13, %v1275_v57, %v1276_v5  ;;  %v14238_v53 = vld [vmem:[#allocation129_spill] sm:$0xff] }
 0x247   : > { %v2544_v56 = vcombine.low %v14236_v34, %v9714_v62  ;;  %v2468_v30 = vcombine.low %v1274_v41, %v1277_v45  ;;  %7660 = vmatpush1.bf16.msra.mxu1 %v7659_v38  ;;  %v1278_v24 = vrot.slane %v1276_v5, 2  ;;  %v1279_v23 = vrot.slane %v14211_v9, 7  ;;  %v2902_v62 = vld [vmem:[%s13667_s3 + $0x30] sm:$0xff] }
 0x248   : > { %8089 = vrot.lane.b32.xlu0 %v8088_v11, %s14097_s16  ;;  %v10361_v17 = vrot.slane %v2459_v52, %v8749_v3  ;;  %v8083_v47 = vpack.i.bf16 %v2361_v6, %v1932_v4  ;;  %v8098_v59 = vpack.i.bf16 %v1915_v50, %v2527_v37  ;;  %v1286_v15 = vrot.slane %v9666_v16, 7  ;;  %7661 = vmatprep.subr.bf16.mxu1 %v14232_v22  ;;  %v2903_v11 = vld [vmem:[%s13667_s3 + $0x38] sm:$0xff]  ;;  %v10388_v52 = vpop.permute.xlu1 %7889 }
 0x249   : > { %v8113_v26 = vpack.i.bf16 %v1932_v4, %v2544_v56  ;;  %v10377_v46 = vrot.slane %v2468_v30, %v8749_v3  ;;  %v1281_v50 = vrot.slane %v1279_v23, 2  ;;  %v1282_v6 = vrot.slane %v14210_v40, 7 }
 0x24a   : > { %v2467_v9 = vcombine.low %v10339_v20, %v10361_v17  ;;  %8084 = vrot.lane.b32.xlu1 %v8083_v47, %s14090_s29  ;;  %v1280_v16 = vsel %vm9524_vm13, %v1278_v24, %v1279_v23  ;;  %v14237_v43 = vrot.slane %v10195_v61, 9  ;;  %v1288_v5 = vrot.slane %v1286_v15, 2  ;;  %v10399_v23 = vpop.permute.xlu0 %7884 }
 0x24b   : > { %v1289_v57 = vrot.slane %v14238_v53, 7  ;;  %v2680_v27 = vcombine.low %v10361_v17, %v10377_v46  ;;  %v1283_v40 = vsel %vm9524_vm13, %v1281_v50, %v1282_v6  ;;  %v7662_v37 = vpack.c.bf16 %v2903_v11, %v2902_v62  ;;  %v2905_v50 = vld [vmem:[%s13667_s3 + $0x48] sm:$0xff] }
 0x24c   : > { %v1287_v48 = vsel %vm9524_vm13, %v14237_v43, %v1286_v15  ;;  %v1292_v38 = vrot.slane %v9770_v55, 7  ;;  %v2469_v4 = vcombine.low %v1280_v16, %v1283_v40  ;;  %v1295_v45 = vrot.slane %v9783_v1, 7 }
 0x24d   : > { %v1290_v61 = vsel %vm9524_vm13, %v1288_v5, %v1289_v57  ;;  %v1291_v41 = vrot.slane %v1289_v57, 2  ;;  %v8093_v34 = vpack.i.bf16 %v2362_v29, %v2680_v27  ;;  %7663 = vmatpush1.bf16.msra.mxu1 %v7662_v37  ;;  %v1298_v24 = vrot.slane %v9774_v32, 7  ;;  %v2904_v29 = vld [vmem:[%s13667_s3 + $0x40] sm:$0xff]  ;;  %v10433_v27 = vpop.permute.xlu1 %7899 }
 0x24e   : > { %v2681_v56 = vcombine.low %v1287_v48, %v1290_v61  ;;  %v1294_v30 = vrot.slane %v1292_v38, 2  ;;  %8099 = vrot.lane.b32.xlu1 %v8098_v59, %s14097_s16  ;;  %v10403_v47 = vrot.slane %v2469_v4, %v8749_v3  ;;  %v1297_v62 = vrot.slane %v1295_v45, 2  ;;  %7664 = vmatprep.subr.bf16.mxu1 %v14232_v22 }
 0x24f   : > { %v1293_v15 = vsel %vm9524_vm13, %v1291_v41, %v1292_v38  ;;  %v1301_v11 = vrot.slane %v9791_v0, 7  ;;  %8094 = vrot.lane.b32.xlu0 %v8093_v34, %s14090_s29  ;;  %v2371_v59 = vcombine.low %v10038_v8, %v10169_v31  ;;  %v1300_v16 = vrot.slane %v1298_v24, 2  ;;  %v2906_v8 = vld [vmem:[%s13667_s3 + $0x50] sm:$0xff]  ;;  %v2907_v31 = vld [vmem:[%s13667_s3 + $0x58] sm:$0xff]  ;;  %v10443_v34 = vpop.permute.xlu0 %7894 }
 0x250   : > { %v2688_v6 = vrot.slane %v2681_v56, %v8749_v3  ;;  %v1296_v0 = vsel %vm9524_vm13, %v1294_v30, %v1295_v45  ;;  %v2484_v43 = vcombine.low %v10377_v46, %v10403_v47  ;;  %v1299_v48 = vsel %vm9524_vm13, %v1297_v62, %v1298_v24 }
 0x251   : > { %v2690_v5 = vcombine.low %v1293_v15, %v1296_v0  ;;  %v2609_v57 = vcombine.low %v14238_v53, %v9770_v55  ;;  %v1302_v37 = vsel %vm9524_vm13, %v1300_v16, %v1301_v11  ;;  %v2610_v38 = vcombine.low %v9783_v1, %v9774_v32  ;;  %v2908_v32 = vld [vmem:[%s13667_s3 + $0x60] sm:$0xff]  ;;  %v2909_v1 = vld [vmem:[%s13667_s3 + $0x68] sm:$0xff]  ;;  %v10457_v62 = vpop.permute.xlu1 %7909  ;;  %v2911_v0 = vld [vmem:[%s13667_s3 + $0x78] sm:$0xff] }
 0x252   : > { %v2689_v40 = vcombine.low %v10403_v47, %v2688_v6  ;;  %v7665_v61 = vpack.c.bf16 %v2905_v50, %v2904_v29  ;;  %v2691_v55 = vcombine.low %v1299_v48, %v1302_v37  ;;  %v7668_v45 = vpack.c.bf16 %v2907_v31, %v2906_v8  ;;  %v14239_v11 = vld [vmem:[#allocation124_spill] sm:$0xff]  ;;  %v2910_v6 = vld [vmem:[%s13667_s3 + $0x70] sm:$0xff]  ;;  %v2913_v48 = vld [vmem:[%s13667_s3 + $0x88] sm:$0xff] }
 0x253   : > { %v2617_v53 = vrot.slane %v2609_v57, %v8749_v3  ;;  %8114 = vrot.lane.b32.xlu0 %v8113_v26, %s14097_s16  ;;  %v2624_v41 = vrot.slane %v2610_v38, %v8749_v3  ;;  %v2698_v56 = vrot.slane %v2690_v5, %v8749_v3  ;;  %v2388_v24 = vcombine.low %v10172_v58, %v10213_v39  ;;  %v10468_v58 = vpop.permute.xlu0 %7904  ;;  %v2912_v16 = vld [vmem:[%s13667_s3 + $0x80] sm:$0xff]  ;;  %v2914_v31 = vld [vmem:[%s13667_s3 + $0x90] sm:$0xff] }
 0x254   : > { %v8103_v4 = vpack.i.bf16 %v2371_v59, %v2689_v40  ;;  %7666 = vmatpush1.bf16.msra.mxu1 %v7665_v61  ;;  %v2705_v30 = vrot.slane %v2691_v55, %v8749_v3  ;;  %v7671_v50 = vpack.c.bf16 %v2909_v1, %v2908_v32  ;;  %v7674_v39 = vpack.c.bf16 %v2911_v0, %v2910_v6  ;;  %v2915_v40 = vld [vmem:[%s13667_s3 + $0x98] sm:$0xff]  ;;  %v2916_v61 = vld [vmem:[%s13667_s3 + $0xa0] sm:$0xff]  ;;  %v2917_v55 = vld [vmem:[%s13667_s3 + $0xa8] sm:$0xff] }
 0x255   : > { %7667 = vmatprep.subr.bf16.mxu1 %v14232_v22  ;;  %v2625_v26 = vcombine.low %v2617_v53, %v2624_v41  ;;  %v10478_v5 = vpop.permute.xlu1 %7924  ;;  %v7677_v57 = vpack.c.bf16 %v2913_v48, %v2912_v16  ;;  %v7680_v38 = vpack.c.bf16 %v2915_v40, %v2914_v31  ;;  %v2923_v16 = vld [vmem:[%s13667_s3 + $0xd8] sm:$0xff]  ;;  %v1304_v31 = vcombine.low %v8915_v14, %v8935_v19  ;;  %v14240_v14 = vld [vmem:[#allocation14_spill] sm:$0xff] }
 0x256   : > { %8104 = vrot.lane.b32.xlu1 %v8103_v4, %s14090_s29  ;;  %v2706_v15 = vcombine.low %v2698_v56, %v2705_v30  ;;  %v2918_v56 = vld [vmem:[%s13667_s3 + $0xb0] sm:$0xff]  ;;  %v2919_v30 = vld [vmem:[%s13667_s3 + $0xb8] sm:$0xff] }
 0x257   : > { %v8108_v29 = vpack.i.bf16 %v14239_v11, %v2625_v26  ;;  %v10480_v8 = vpop.permute.xlu0 %7914  ;;  %v2443_v26 = vcombine.low %v9779_v2, %v9917_v54  ;;  %v2920_v11 = vld [vmem:[%s13667_s3 + $0xc0] sm:$0xff]  ;;  %v14241_v19 = vld [vmem:[#allocation10_spill] sm:$0xff] }
 0x258   : > { %7669 = vmatpush1.bf16.msra.mxu1 %v7668_v45  ;;  %v8118_v59 = vpack.i.bf16 %v2388_v24, %v2706_v15  ;;  %v7683_v45 = vpack.c.bf16 %v2917_v55, %v2916_v61  ;;  %v7686_v24 = vpack.c.bf16 %v2919_v30, %v2918_v56  ;;  %v2924_v55 = vld [vmem:[%s13667_s3 + $0xe0] sm:$0xff]  ;;  %v1320_v30 = vcombine.low %v14241_v19, %v14240_v14 }
 0x259   : > { %7670 = vmatprep.subr.bf16.mxu1 %v14232_v22 }
 0x25a   : > { %8109 = vrot.lane.b32.xlu1 %v8108_v29, %s13848_s13  ;;  %8119 = vrot.lane.b32.xlu0 %v8118_v59, %s14090_s29  ;;  %v2921_v29 = vld [vmem:[%s13667_s3 + $0xc8] sm:$0xff]  ;;  %v7856_v59 = vunpack.i.l.bf16 %v10281_v60 }
 0x25b   : > { %v7689_v54 = vpack.c.bf16 %v2921_v29, %v2920_v11  ;;  %v2926_v29 = vld [vmem:[%s13667_s3 + $0xf0] sm:$0xff] }
 0x25c   : > { %7672 = vmatpush1.bf16.msra.mxu1 %v7671_v50  ;;  %v10489_v37 = vpop.permute.xlu1 %7934 }
 0x25d   : > { %7673 = vmatprep.subr.bf16.mxu1 %v14232_v22 }
 0x25f   : > { %v10500_v4 = vpop.f32.mrb[2].mxu0 }
 0x260   : > { %7675 = vmatpush1.bf16.msra.mxu1 %v7674_v39  ;;  %v10502_v41 = vpop.f32.mrb[3].mxu0  ;;  %v2922_v39 = vld [vmem:[%s13667_s3 + $0xd0] sm:$0xff] }
 0x261   : > { %7676 = vmatprep.subr.bf16.mxu1 %v14232_v22  ;;  %v7692_v40 = vpack.c.bf16 %v2923_v16, %v2922_v39 }
 0x262   : > { %v10498_v53 = vpop.permute.xlu0 %7919 }
 0x263   : > { %v7921_v11 = vunpack.i.l.bf16 %v10498_v53 }
 0x264   : > { %7678 = vmatpush1.bf16.msra.mxu1 %v7677_v57 }
 0x265   : > { %7679 = vmatprep.subr.bf16.mxu1 %v14232_v22 }
 0x266   : > { %v10513_v15 = vpop.permute.xlu0 %7929 }
 0x268   : > { %7681 = vmatpush1.bf16.msra.mxu1 %v7680_v38  ;;  %v1303_v38 = vcombine.low %v8902_v10, %v8925_v21 }
 0x269   : > { %7682 = vmatprep.subr.bf16.mxu1 %v14232_v22 }
 0x26a   : > { %v7945_v32 = vpop.permute.xlu1 %7944  ;;  %v10533_v57 = vpop.permute.xlu0 %7939 }
 0x26b   : > { %v7946_v1 = vunpack.i.l.bf16 %v7945_v32  ;;  %v7947_v10 = vunpack.i.h.bf16 %v7945_v32  ;;  %v7922_v32 = vunpack.i.h.bf16 %v10498_v53  ;;  %v7861_v53 = vunpack.i.l.bf16 %v10259_v51 }
 0x26c   : > { %7684 = vmatpush1.bf16.msra.mxu1 %v7683_v45  ;;  %v2925_v45 = vld [vmem:[%s13667_s3 + $0xe8] sm:$0xff] }
 0x26d   : > { %7685 = vmatprep.subr.bf16.mxu1 %v14232_v22  ;;  %v2842_v50 = vsel %vm408_vm1, %v2443_v26, %v7946_v1  ;;  %v1318_v1 = vrot.slane %v1304_v31, %v8749_v3  ;;  %v7695_v21 = vpack.c.bf16 %v2925_v45, %v2924_v55  ;;  %v7857_v31 = vunpack.i.h.bf16 %v10281_v60  ;;  %v14242_v55 = vld [vmem:[#allocation133_spill] sm:$0xff] }
 0x26e   : > { %v2860_v0 = vsel %vm412_vm3, %v2842_v50, %v7856_v59  ;;  %v10539_v61 = vpop.f32.mrb[4].mxu0  ;;  %v2927_v50 = vld [vmem:[%s13667_s3 + $0xf8] sm:$0xff]  ;;  %v1328_v59 = vrot.slane %v1320_v30, %v8749_v3  ;;  %v14243_v45 = vcombine.low %v9923_v33, %v14242_v55  ;;  %v7862_v60 = vunpack.i.h.bf16 %v10259_v51 }
 0x26f   : > { %v7950_v6 = vpop.permute.xlu1 %7949  ;;  %v10548_v56 = vpop.f32.mrb[5].mxu0  ;;  %v7698_v16 = vpack.c.bf16 %v2927_v50, %v2926_v29  ;;  %v14244_v50 = vld [vmem:[#allocation11_spill] sm:$0xff] }
 0x270   : > { %v7951_v2 = vunpack.i.l.bf16 %v7950_v6  ;;  %7687 = vmatpush1.bf16.msra.mxu1 %v7686_v24  ;;  %v1311_v24 = vrot.slane %v1303_v38, %v8749_v3  ;;  %v7952_v39 = vunpack.i.h.bf16 %v7950_v6  ;;  %v2843_v14 = vsel %vm408_vm1, %v14243_v45, %v7921_v11 }
 0x271   : > { %7688 = vmatprep.subr.bf16.mxu1 %v14232_v22 }
 0x272   : > { %v2878_v48 = vsel %vm416_vm5, %v2860_v0, %v7951_v2  ;;  %v1319_v2 = vcombine.low %v1311_v24, %v1318_v1  ;;  %v1336_v0 = vcombine.low %v1328_v59, %v9836_v44  ;;  %v2861_v24 = vsel %vm412_vm3, %v2843_v14, %v7861_v53  ;;  %v14245_v59 = vld [vmem:[#allocation7_spill] sm:$0xff]  ;;  %v14248_v14 = vld [vmem:[#allocation5_spill] sm:$0xff] }
 0x273   : > { %3039 = vmatprep.mubr.f32.mxu1 %v2878_v48 }
 0x274   : > { %7690 = vmatpush1.bf16.msra.mxu1 %v7689_v54  ;;  %v2788_v48 = vsel %vm408_vm1, %v1319_v2, %v7947_v10  ;;  %v2789_v1 = vsel %vm408_vm1, %v1336_v0, %v7922_v32 }
 0x275   : > { %7691 = vmatprep.subr.bf16.mxu1 %v14232_v22  ;;  %v7955_v26 = vpop.permute.xlu0 %7954  ;;  %v2806_v6 = vsel %vm412_vm3, %v2788_v48, %v7857_v31  ;;  %v7866_v48 = vunpack.i.l.bf16 %v10318_v42  ;;  %v2807_v32 = vsel %vm412_vm3, %v2789_v1, %v7862_v60  ;;  %v7867_v1 = vunpack.i.h.bf16 %v10318_v42 }
 0x276   : > { %v7957_v44 = vunpack.i.h.bf16 %v7955_v26 }
 0x278   : > { %7693 = vmatpush1.bf16.msra.mxu1 %v7692_v40  ;;  %v7956_v40 = vunpack.i.l.bf16 %v7955_v26  ;;  %v14246_v26 = vcombine.low %v14244_v50, %v14245_v59  ;;  %v2825_v0 = vsel %vm416_vm5, %v2807_v32, %v7957_v44  ;;  %v14250_v44 = vld [vmem:[#allocation12_spill] sm:$0xff]  ;;  %v7876_v50 = vunpack.i.l.bf16 %v10364_v13 }
 0x279   : > { %7694 = vmatprep.subr.bf16.mxu1 %v14232_v22  ;;  %v7970_v19 = vpop.permute.xlu0 %7969 }
 0x27a   : > { %v7971_v33 = vunpack.i.l.bf16 %v7970_v19  ;;  %v2879_v11 = vsel %vm416_vm5, %v2861_v24, %v7956_v40 }
 0x27b   : > { %v7960_v54 = vpop.permute.xlu1 %7959 }
 0x27c   : > { %7696 = vmatpush1.bf16.msra.mxu1 %v7695_v21  ;;  %v7961_v38 = vunpack.i.l.bf16 %v7960_v54  ;;  %v7962_v10 = vunpack.i.h.bf16 %v7960_v54  ;;  %v2824_v21 = vsel %vm416_vm5, %v2806_v6, %v7952_v39  ;;  %v7972_v54 = vunpack.i.h.bf16 %v7970_v19 }
 0x27d   : > { %7697 = vmatprep.subr.bf16.mxu1 %v14232_v22  ;;  %v10585_v51 = vpop.f32.mrb[6].mxu0 }
 0x27e   : > { %v2844_v2 = vsel %vm408_vm1, %v14246_v26, %v7961_v38  ;;  %v14247_v38 = vld [vmem:[#allocation30_spill] sm:$0xff] }
 0x27f   : > { %v7965_v30 = vpop.permute.xlu1 %7964  ;;  %v2862_v45 = vsel %vm412_vm3, %v2844_v2, %v7866_v48  ;;  %v14249_v53 = vcombine.low %v14247_v38, %v14248_v14  ;;  %v14254_v2 = vld [vmem:[#allocation33_spill] sm:$0xff]  ;;  %v14255_v48 = vld [vmem:[#allocation36_spill] sm:$0xff] }
 0x280   : > { %7699 = vmatpush1.bf16.msra.mxu1 %v7698_v16  ;;  %v7966_v29 = vunpack.i.l.bf16 %v7965_v30  ;;  %v10588_v16 = vpop.f32.mrb[7].mxu0  ;;  %v7967_v31 = vunpack.i.h.bf16 %v7965_v30 }
 0x281   : > { %v2790_v6 = vsel %vm408_vm1, %v14249_v53, %v7962_v10  ;;  %v14253_v10 = vld [vmem:[#allocation26_spill] sm:$0xff]  ;;  %v7872_v53 = vunpack.i.h.bf16 %v10303_v7 }
 0x282   : > { %v2880_v19 = vsel %vm416_vm5, %v2862_v45, %v7966_v29  ;;  %v2808_v59 = vsel %vm412_vm3, %v2790_v6, %v7867_v1  ;;  %v2791_v42 = vsel %vm408_vm1, %v14253_v10, %v7972_v54  ;;  %v14256_v29 = vcombine.low %v14254_v2, %v14255_v48  ;;  %v14259_v10 = vld [vmem:[#allocation118_spill] sm:$0xff] }
 0x283   : > { %3040 = vmatmul.mubr.f32.vlgmr.msra.gmra.mrb[0].mxu1 %v2824_v21  ;;  %v7980_v39 = vpop.permute.xlu1 %7979  ;;  %v14251_v21 = vld [vmem:[#allocation31_spill] sm:$0xff]  ;;  %v7881_v48 = vunpack.i.l.bf16 %v10345_v63 }
 0x284   : > { %3044 = vmatprep.mubr.f32.mxu1 %v2879_v11  ;;  %v7981_v55 = vunpack.i.l.bf16 %v7980_v39  ;;  %v14252_v24 = vcombine.low %v14250_v44, %v14251_v21  ;;  %v7871_v11 = vunpack.i.l.bf16 %v10303_v7  ;;  %v7982_v38 = vunpack.i.h.bf16 %v7980_v39 }
 0x285   : > { %v7975_v40 = vpop.permute.xlu0 %7974  ;;  %v7926_v44 = vunpack.i.l.bf16 %v10478_v5 }
 0x286   : > { %v7976_v60 = vunpack.i.l.bf16 %v7975_v40  ;;  %v2845_v30 = vsel %vm408_vm1, %v14252_v24, %v7971_v33  ;;  %v2846_v32 = vsel %vm408_vm1, %v14256_v29, %v7981_v55  ;;  %v7977_v45 = vunpack.i.h.bf16 %v7975_v40  ;;  %v14257_v24 = vld [vmem:[#allocation22_spill] sm:$0xff] }
 0x287   : > { %3045 = vmatmul.mubr.f32.gmra.mrb[2].mxu1 %v2825_v0  ;;  %v10604_v26 = vpop.permute.xlu1 %7984  ;;  %v2826_v33 = vsel %vm416_vm5, %v2808_v59, %v7967_v31  ;;  %v2863_v0 = vsel %vm412_vm3, %v2845_v30, %v7871_v11  ;;  %v2864_v54 = vsel %vm412_vm3, %v2846_v32, %v7876_v50  ;;  %v2809_v55 = vsel %vm412_vm3, %v2791_v42, %v7872_v53  ;;  %v14258_v59 = vld [vmem:[#allocation23_spill] sm:$0xff] }
 0x288   : > { %3049 = vmatprep.mubr.f32.mxu1 %v2880_v19  ;;  %v2881_v1 = vsel %vm416_vm5, %v2863_v0, %v7976_v60  ;;  %v10619_v39 = vpop.f32.mrb[8].mxu0  ;;  %v2827_v31 = vsel %vm416_vm5, %v2809_v55, %v7977_v45  ;;  %v2792_v7 = vsel %vm408_vm1, %v14257_v24, %v7982_v38  ;;  %v7877_v60 = vunpack.i.h.bf16 %v10364_v13 }
 0x289   : > { %v7990_v14 = vpop.permute.xlu0 %7989  ;;  %v10624_v30 = vpop.f32.mrb[9].mxu0  ;;  %v2882_v11 = vsel %vm416_vm5, %v2864_v54, %v7926_v44  ;;  %v14260_v42 = vcombine.low %v14258_v59, %v14259_v10  ;;  %v7927_v32 = vunpack.i.h.bf16 %v10478_v5  ;;  %v7882_v53 = vunpack.i.h.bf16 %v10345_v63  ;;  %v14262_v5 = vld [vmem:[#allocation122_spill] sm:$0xff]  ;;  %v14263_v44 = vld [vmem:[#allocation16_spill] sm:$0xff] }
 0x28a   : > { %v7991_v6 = vunpack.i.l.bf16 %v7990_v14  ;;  %v7992_v19 = vunpack.i.h.bf16 %v7990_v14  ;;  %v2810_v45 = vsel %vm412_vm3, %v2792_v7, %v7877_v60  ;;  %v14261_v14 = vld [vmem:[#allocation41_spill] sm:$0xff]  ;;  %v14264_v55 = vcombine.low %v14262_v5, %v14263_v44 }
 0x28b   : > { %3050 = vmatmul.mubr.f32.gmra.mrb[4].mxu1 %v2826_v33  ;;  %v8005_v40 = vpop.permute.xlu1 %8004  ;;  %v7931_v24 = vunpack.i.l.bf16 %v10513_v15  ;;  %v7887_v10 = vunpack.i.h.bf16 %v10399_v23 }
 0x28c   : > { %3054 = vmatprep.mubr.f32.mxu1 %v2881_v1  ;;  %v2847_v2 = vsel %vm408_vm1, %v14260_v42, %v7991_v6  ;;  %v8006_v29 = vunpack.i.l.bf16 %v8005_v40  ;;  %v8007_v33 = vunpack.i.h.bf16 %v8005_v40  ;;  %v2793_v0 = vsel %vm408_vm1, %v14261_v14, %v7992_v19 }
 0x28d   : > { %v7995_v21 = vpop.permute.xlu0 %7994  ;;  %v2865_v13 = vsel %vm412_vm3, %v2847_v2, %v7881_v48  ;;  %v2828_v1 = vsel %vm416_vm5, %v2810_v45, %v7927_v32  ;;  %v7886_v40 = vunpack.i.l.bf16 %v10399_v23  ;;  %v2811_v63 = vsel %vm412_vm3, %v2793_v0, %v7882_v53  ;;  %v14266_v45 = vld [vmem:[#allocation15_spill] sm:$0xff] }
 0x28e   : > { %v7996_v50 = vunpack.i.l.bf16 %v7995_v21  ;;  %v7997_v38 = vunpack.i.h.bf16 %v7995_v21  ;;  %v7932_v21 = vunpack.i.h.bf16 %v10513_v15  ;;  %v7891_v23 = vunpack.i.l.bf16 %v10388_v52 }
 0x28f   : > { %3055 = vmatmul.mubr.f32.gmra.mrb[6].mxu1 %v2827_v31  ;;  %v2848_v31 = vsel %vm408_vm1, %v14264_v55, %v8006_v29 }
 0x290   : > { %3059 = vmatprep.mubr.f32.mxu1 %v2882_v11  ;;  %v2883_v6 = vsel %vm416_vm5, %v2865_v13, %v7996_v50  ;;  %v2829_v11 = vsel %vm416_vm5, %v2811_v63, %v7997_v38  ;;  %v14265_v50 = vld [vmem:[#allocation39_spill] sm:$0xff]  ;;  %v2866_v42 = vsel %vm412_vm3, %v2848_v31, %v7886_v40  ;;  %v14267_v13 = vld [vmem:[#allocation17_spill] sm:$0xff] }
 0x291   : > { %v10641_v54 = vpop.permute.xlu0 %7999  ;;  %v2794_v59 = vsel %vm408_vm1, %v14265_v50, %v8007_v33  ;;  %v14268_v38 = vcombine.low %v14266_v45, %v14267_v13  ;;  %v7892_v33 = vunpack.i.h.bf16 %v10388_v52  ;;  %v14271_v50 = vld [vmem:[#allocation8_spill] sm:$0xff] }
 0x292   : > { %v2812_v32 = vsel %vm412_vm3, %v2794_v59, %v7887_v10  ;;  %v14273_v10 = vld [vmem:[#allocation56_spill] sm:$0xff] }
 0x293   : > { %3060 = vmatmul.mubr.f32.gmra.mrb[8].mxu1 %v2828_v1  ;;  %v8010_v19 = vpop.permute.xlu1 %8009  ;;  %v10656_v2 = vpop.f32.mrb[10].mxu0  ;;  %v2849_v14 = vsel %vm408_vm1, %v14268_v38, %v7931_v24 }
 0x294   : > { %v8012_v7 = vunpack.i.h.bf16 %v8010_v19  ;;  %v8011_v60 = vunpack.i.l.bf16 %v8010_v19  ;;  %3064 = vmatprep.mubr.f32.mxu1 %v2883_v6  ;;  %v10659_v48 = vpop.f32.mrb[11].mxu0  ;;  %v14269_v6 = vld [vmem:[#allocation59_spill] sm:$0xff]  ;;  %v2867_v40 = vsel %vm412_vm3, %v2849_v14, %v7891_v23 }
 0x295   : > { %v2795_v1 = vsel %vm408_vm1, %v14269_v6, %v7932_v21  ;;  %v14274_v6 = vld [vmem:[#allocation13_spill] sm:$0xff] }
 0x296   : > { %v2884_v15 = vsel %vm416_vm5, %v2866_v42, %v8011_v60  ;;  %v2830_v53 = vsel %vm416_vm5, %v2812_v32, %v8012_v7  ;;  %v2813_v19 = vsel %vm412_vm3, %v2795_v1, %v7892_v33  ;;  %v14275_v1 = vld [vmem:[#allocation28_spill] sm:$0xff] }
 0x297   : > { %3065 = vmatmul.mubr.f32.gmra.mrb[10].mxu1 %v2829_v11  ;;  %v8020_v29 = vpop.permute.xlu1 %8019  ;;  %v14270_v11 = vld [vmem:[#allocation9_spill] sm:$0xff] }
 0x298   : > { %v8015_v0 = vpop.permute.xlu0 %8014  ;;  %3069 = vmatprep.mubr.f32.mxu1 %v2884_v15  ;;  %v8022_v55 = vunpack.i.h.bf16 %v8020_v29  ;;  %v8021_v31 = vunpack.i.l.bf16 %v8020_v29  ;;  %v14272_v21 = vcombine.low %v14270_v11, %v14271_v50  ;;  %v7897_v15 = vunpack.i.h.bf16 %v10443_v34 }
 0x299   : > { %v8017_v5 = vunpack.i.h.bf16 %v8015_v0  ;;  %v8016_v44 = vunpack.i.l.bf16 %v8015_v0  ;;  %v7896_v29 = vunpack.i.l.bf16 %v10443_v34 }
 0x29a   : > { %v2850_v59 = vsel %vm408_vm1, %v14272_v21, %v8021_v31  ;;  %v2796_v42 = vsel %vm408_vm1, %v14273_v10, %v8022_v55  ;;  %v7902_v31 = vunpack.i.h.bf16 %v10433_v27  ;;  %v7907_v21 = vunpack.i.h.bf16 %v10468_v58 }
 0x29b   : > { %3070 = vmatmul.mubr.f32.gmra.mrb[12].mxu1 %v2830_v53  ;;  %v2885_v24 = vsel %vm416_vm5, %v2867_v40, %v8016_v44  ;;  %v2831_v52 = vsel %vm416_vm5, %v2813_v19, %v8017_v5  ;;  %v2868_v33 = vsel %vm412_vm3, %v2850_v59, %v7896_v29  ;;  %v2814_v23 = vsel %vm412_vm3, %v2796_v42, %v7897_v15  ;;  %v14277_v44 = vld [vmem:[#allocation76_spill] sm:$0xff]  ;;  %v14278_v42 = vld [vmem:[#allocation25_spill] sm:$0xff]  ;;  %v14279_v15 = vld [vmem:[#allocation27_spill] sm:$0xff] }
 0x29c   : > { %v8030_v63 = vpop.permute.xlu0 %8029  ;;  %3074 = vmatprep.mubr.f32.mxu1 %v2885_v24  ;;  %v14276_v5 = vcombine.low %v14274_v6, %v14275_v1  ;;  %v7901_v40 = vunpack.i.l.bf16 %v10433_v27  ;;  %v7906_v59 = vunpack.i.l.bf16 %v10468_v58  ;;  %v14280_v29 = vcombine.low %v14278_v42, %v14279_v15 }
 0x29d   : > { %v8032_v60 = vunpack.i.h.bf16 %v8030_v63  ;;  %v8031_v7 = vunpack.i.l.bf16 %v8030_v63 }
 0x29e   : > { %v8025_v32 = vpop.permute.xlu1 %8024  ;;  %v10683_v45 = vpop.f32.mrb[12].mxu0 }
 0x29f   : > { %v8027_v13 = vunpack.i.h.bf16 %v8025_v32  ;;  %v8026_v38 = vunpack.i.l.bf16 %v8025_v32  ;;  %3075 = vmatmul.mubr.f32.gmra.mrb[14].mxu1 %v2831_v52  ;;  %v10685_v14 = vpop.f32.mrb[13].mxu0  ;;  %v2851_v34 = vsel %vm408_vm1, %v14276_v5, %v8031_v7  ;;  %v2797_v55 = vsel %vm408_vm1, %v14277_v44, %v8032_v60  ;;  %v14282_v5 = vld [vmem:[#allocation131_spill] sm:$0xff] }
 0x2a0   : > { %v2869_v7 = vsel %vm412_vm3, %v2851_v34, %v7901_v40  ;;  %v2815_v60 = vsel %vm412_vm3, %v2797_v55, %v7902_v31  ;;  %v14283_v34 = vld [vmem:[#allocation29_spill] sm:$0xff]  ;;  %v7937_v55 = vunpack.i.h.bf16 %v10489_v37 }
 0x2a1   : > { %v2886_v0 = vsel %vm416_vm5, %v2868_v33, %v8026_v38  ;;  %v2832_v53 = vsel %vm416_vm5, %v2814_v23, %v8027_v13  ;;  %v14281_v13 = vld [vmem:[#allocation75_spill] sm:$0xff]  ;;  %v7936_v33 = vunpack.i.l.bf16 %v10489_v37  ;;  %v2454_v44 = vcombine.low %v14283_v34, %v14282_v5 }
 0x2a2   : > { %v8040_v19 = vpop.permute.xlu1 %8039  ;;  %3079 = vmatprep.mubr.f32.mxu1 %v2886_v0  ;;  %v7942_v5 = vunpack.i.h.bf16 %v10533_v57  ;;  %v7941_v34 = vunpack.i.l.bf16 %v10533_v57 }
 0x2a3   : > { %v8035_v24 = vpop.permute.xlu0 %8034  ;;  %v8042_v11 = vunpack.i.h.bf16 %v8040_v19  ;;  %v8041_v50 = vunpack.i.l.bf16 %v8040_v19  ;;  %3080 = vmatmul.mubr.f32.gmra.mrb[16].mxu1 %v2832_v53 }
 0x2a4   : > { %v8037_v63 = vunpack.i.h.bf16 %v8035_v24  ;;  %v8036_v52 = vunpack.i.l.bf16 %v8035_v24 }
 0x2a5   : > { %v2852_v32 = vsel %vm408_vm1, %v14280_v29, %v8041_v50  ;;  %v2798_v38 = vsel %vm408_vm1, %v14281_v13, %v8042_v11  ;;  %v7912_v50 = vunpack.i.h.bf16 %v10457_v62  ;;  %v14285_v13 = vld [vmem:[#allocation132_spill] sm:$0xff] }
 0x2a6   : > { %v2887_v10 = vsel %vm416_vm5, %v2869_v7, %v8036_v52  ;;  %v2833_v27 = vsel %vm416_vm5, %v2815_v60, %v8037_v63  ;;  %v10712_v58 = vpop.permute.xlu1 %8044  ;;  %v2870_v0 = vsel %vm412_vm3, %v2852_v32, %v7906_v59  ;;  %v2816_v1 = vsel %vm412_vm3, %v2798_v38, %v7907_v21  ;;  %v14284_v63 = vld [vmem:[#allocation87_spill] sm:$0xff] }
 0x2a7   : > { %v8050_v23 = vpop.permute.xlu0 %8049  ;;  %3084 = vmatprep.mubr.f32.mxu1 %v2887_v10  ;;  %v2888_v31 = vsel %vm416_vm5, %v2870_v0, %v7936_v33  ;;  %v2834_v24 = vsel %vm416_vm5, %v2816_v1, %v7937_v55  ;;  %v7911_v21 = vunpack.i.l.bf16 %v10457_v62  ;;  %v2455_v38 = vcombine.low %v14285_v13, %v10208_v28 }
 0x2a8   : > { %v8052_v53 = vunpack.i.h.bf16 %v8050_v23  ;;  %v8051_v6 = vunpack.i.l.bf16 %v8050_v23  ;;  %3085 = vmatmul.mubr.f32.gmra.mrb[18].mxu1 %v2833_v27  ;;  %v14286_v23 = vld [vmem:[#allocation89_spill] sm:$0xff]  ;;  %v7987_v55 = vunpack.i.h.bf16 %v10604_v26 }
 0x2a9   : > { %3089 = vmatprep.mubr.f32.mxu1 %v2888_v31  ;;  %v7986_v31 = vunpack.i.l.bf16 %v10604_v26 }
 0x2aa   : > { %v8065_v40 = vpop.permute.xlu1 %8064  ;;  %v2853_v19 = vsel %vm408_vm1, %v2454_v44, %v8051_v6  ;;  %v2799_v52 = vsel %vm408_vm1, %v14284_v63, %v8052_v53  ;;  %v7917_v53 = vunpack.i.h.bf16 %v10480_v8  ;;  %v7916_v6 = vunpack.i.l.bf16 %v10480_v8 }
 0x2ab   : > { %v10724_v11 = vpop.f32.mrb[14].mxu0  ;;  %v8055_v59 = vpop.permute.xlu0 %8054  ;;  %v8067_v10 = vunpack.i.h.bf16 %v8065_v40  ;;  %v8066_v27 = vunpack.i.l.bf16 %v8065_v40  ;;  %v2871_v42 = vsel %vm412_vm3, %v2853_v19, %v7911_v21  ;;  %v2817_v15 = vsel %vm412_vm3, %v2799_v52, %v7912_v50 }
 0x2ac   : > { %3090 = vmatmul.mubr.f32.gmra.mrb[20].mxu1 %v2834_v24  ;;  %v10728_v37 = vpop.f32.mrb[15].mxu0  ;;  %v8057_v7 = vunpack.i.h.bf16 %v8055_v59  ;;  %v8056_v60 = vunpack.i.l.bf16 %v8055_v59  ;;  %v14287_v59 = vld [vmem:[#allocation62_spill] sm:$0xff] }
 0x2ad   : > { %v2854_v33 = vsel %vm408_vm1, %v2455_v38, %v8066_v27  ;;  %v2800_v0 = vsel %vm408_vm1, %v14286_v23, %v8067_v10 }
 0x2ae   : > { %v2889_v29 = vsel %vm416_vm5, %v2871_v42, %v8056_v60  ;;  %v2835_v32 = vsel %vm416_vm5, %v2817_v15, %v8057_v7  ;;  %v2872_v40 = vsel %vm412_vm3, %v2854_v33, %v7916_v6  ;;  %v2818_v24 = vsel %vm412_vm3, %v2800_v0, %v7917_v53  ;;  %v14289_v60 = vld [vmem:[#allocation105_spill] sm:$0xff] }
 0x2af   : > { %3094 = vmatprep.mubr.f32.mxu1 %v2889_v29  ;;  %v10736_v62 = vpop.permute.xlu0 %8059  ;;  %v14288_v7 = vcombine.low %v14287_v59, %v10243_v12  ;;  %v2801_v10 = vsel %vm408_vm1, %v14289_v60, %v7942_v5  ;;  %v14290_v12 = vld [vmem:[#allocation20_spill] sm:$0xff]  ;;  %v14292_v53 = vld [vmem:[#allocation109_spill] sm:$0xff]  ;;  %v8001_v5 = vunpack.i.l.bf16 %v10641_v54 }
 0x2b0   : > { %3095 = vmatmul.mubr.f32.gmra.mrb[22].mxu1 %v2835_v32  ;;  %v2819_v32 = vsel %vm412_vm3, %v2801_v10, %v7987_v55  ;;  %v14291_v23 = vcombine.low %v14290_v12, %v10279_v18  ;;  %v8061_v12 = vunpack.i.l.bf16 %v10736_v62 }
 0x2b1   : > { %v2855_v26 = vsel %vm408_vm1, %v14288_v7, %v7941_v34 }
 0x2b2   : > { %v8070_v1 = vpop.permute.xlu1 %8069  ;;  %v2873_v29 = vsel %vm412_vm3, %v2855_v26, %v7986_v31 }
 0x2b3   : > { %v8072_v44 = vunpack.i.h.bf16 %v8070_v1  ;;  %v8071_v28 = vunpack.i.l.bf16 %v8070_v1  ;;  %v8002_v1 = vunpack.i.h.bf16 %v10641_v54 }
 0x2b5   : > { %v2890_v19 = vsel %vm416_vm5, %v2872_v40, %v8071_v28  ;;  %v2836_v63 = vsel %vm416_vm5, %v2818_v24, %v8072_v44 }
 0x2b6   : > { %v10751_v8 = vpop.f32.mrb[16].mxu0  ;;  %v8075_v52 = vpop.permute.xlu0 %8074  ;;  %3099 = vmatprep.mubr.f32.mxu1 %v2890_v19 }
 0x2b7   : > { %v8080_v50 = vpop.permute.xlu1 %8079  ;;  %v8077_v57 = vunpack.i.h.bf16 %v8075_v52  ;;  %v8076_v21 = vunpack.i.l.bf16 %v8075_v52  ;;  %3100 = vmatmul.mubr.f32.gmra.mrb[24].mxu1 %v2836_v63  ;;  %v10759_v27 = vpop.f32.mrb[17].mxu0  ;;  %v14293_v52 = vld [vmem:[#allocation123_spill] sm:$0xff] }
 0x2b8   : > { %v8082_v42 = vunpack.i.h.bf16 %v8080_v50  ;;  %v8081_v15 = vunpack.i.l.bf16 %v8080_v50 }
 0x2b9   : > { %v2891_v13 = vsel %vm416_vm5, %v2873_v29, %v8076_v21  ;;  %v2837_v38 = vsel %vm416_vm5, %v2819_v32, %v8077_v57  ;;  %v8047_v57 = vunpack.i.h.bf16 %v10712_v58  ;;  %v8046_v21 = vunpack.i.l.bf16 %v10712_v58 }
 0x2ba   : > { %v8090_v33 = vpop.permute.xlu0 %8089  ;;  %3104 = vmatprep.mubr.f32.mxu1 %v2891_v13  ;;  %v2856_v0 = vsel %vm408_vm1, %v14291_v23, %v8081_v15  ;;  %v2802_v6 = vsel %vm408_vm1, %v14292_v53, %v8082_v42  ;;  %v14296_v13 = vld [vmem:[#allocation6_spill] sm:$0xff] }
 0x2bb   : > { %3105 = vmatmul.mubr.f32.gmra.mrb[26].mxu1 %v2837_v38  ;;  %v8092_v34 = vunpack.i.h.bf16 %v8090_v33  ;;  %v8091_v44 = vunpack.i.l.bf16 %v8090_v33  ;;  %v2874_v40 = vsel %vm412_vm3, %v2856_v0, %v8001_v5  ;;  %v2820_v24 = vsel %vm412_vm3, %v2802_v6, %v8002_v1 }
 0x2bc   : > { %v8085_v28 = vpop.permute.xlu1 %8084  ;;  %v8062_v33 = vunpack.i.h.bf16 %v10736_v62 }
 0x2bd   : > { %v8087_v55 = vunpack.i.h.bf16 %v8085_v28  ;;  %v8086_v31 = vunpack.i.l.bf16 %v8085_v28  ;;  %v2857_v54 = vsel %vm408_vm1, %v2458_v35, %v8091_v44  ;;  %v2803_v50 = vsel %vm408_vm1, %v14293_v52, %v8092_v34 }
 0x2be   : > { %v2875_v42 = vsel %vm412_vm3, %v2857_v54, %v8046_v21  ;;  %v2821_v15 = vsel %vm412_vm3, %v2803_v50, %v8047_v57  ;;  %v10818_v50 = vld [vmem:[%s13668_s4] ss:$0 sm:$0xff] }
 0x2bf   : > { %v2892_v18 = vsel %vm416_vm5, %v2874_v40, %v8086_v31  ;;  %v2838_v19 = vsel %vm416_vm5, %v2820_v24, %v8087_v55  ;;  %v14297_v24 = vld [vmem:[#allocation18_spill] sm:$0xff] }
 0x2c0   : > { %v8100_v63 = vpop.permute.xlu1 %8099  ;;  %3109 = vmatprep.mubr.f32.mxu1 %v2892_v18 }
 0x2c1   : > { %v8095_v59 = vpop.permute.xlu0 %8094  ;;  %3110 = vmatmul.mubr.f32.gmra.mrb[28].mxu1 %v2838_v19  ;;  %v8102_v60 = vunpack.i.h.bf16 %v8100_v63  ;;  %v8101_v10 = vunpack.i.l.bf16 %v8100_v63 }
 0x2c2   : > { %v8097_v7 = vunpack.i.h.bf16 %v8095_v59  ;;  %v8096_v26 = vunpack.i.l.bf16 %v8095_v59 }
 0x2c3   : > { %v2858_v32 = vsel %vm408_vm1, %v2467_v9, %v8101_v10  ;;  %v2804_v38 = vsel %vm408_vm1, %v14296_v13, %v8102_v60 }
 0x2c4   : > { %v2893_v25 = vsel %vm416_vm5, %v2875_v42, %v8096_v26  ;;  %v2839_v49 = vsel %vm416_vm5, %v2821_v15, %v8097_v7  ;;  %v2876_v5 = vsel %vm412_vm3, %v2858_v32, %v8061_v12  ;;  %v2822_v34 = vsel %vm412_vm3, %v2804_v38, %v8062_v33 }
 0x2c5   : > { %3114 = vmatprep.mubr.f32.mxu1 %v2893_v25  ;;  %v8115_v58 = vpop.permute.xlu0 %8114 }
 0x2c6   : > { %v10789_v35 = vpop.f32.mrb[18].mxu0  ;;  %3115 = vmatmul.mubr.f32.gmra.mrb[30].mxu1 %v2839_v49  ;;  %v8117_v6 = vunpack.i.h.bf16 %v8115_v58  ;;  %v8116_v1 = vunpack.i.l.bf16 %v8115_v58 }
 0x2c7   : > { %14294 = vst [vmem:[#allocation24_spill] sm:$0xff] %v10789_v35  ;;  %v10791_v29 = vpop.f32.mrb[19].mxu0 }
 0x2c8   : > { %14295 = vst [vmem:[#allocation106_spill] sm:$0xff] %v10791_v29  ;;  %v8105_v23 = vpop.permute.xlu1 %8104  ;;  %v2859_v40 = vsel %vm408_vm1, %v2484_v43, %v8116_v1  ;;  %v2805_v18 = vsel %vm408_vm1, %v14297_v24, %v8117_v6 }
 0x2c9   : > { %v8107_v0 = vunpack.i.h.bf16 %v8105_v23  ;;  %v8106_v53 = vunpack.i.l.bf16 %v8105_v23 }
 0x2cb   : > { %v2894_v20 = vsel %vm416_vm5, %v2876_v5, %v8106_v53  ;;  %v2840_v17 = vsel %vm416_vm5, %v2822_v34, %v8107_v0 }
 0x2cc   : > { %v8110_v9 = vpop.permute.xlu1 %8109  ;;  %3119 = vmatprep.mubr.f32.mxu1 %v2894_v20  ;;  %v8120_v44 = vpop.permute.xlu0 %8119 }
 0x2cd   : > { %v8112_v28 = vunpack.i.h.bf16 %v8110_v9  ;;  %v8111_v55 = vunpack.i.l.bf16 %v8110_v9  ;;  %3120 = vmatmul.mubr.f32.gmra.mrb[32].mxu1 %v2840_v17  ;;  %v8122_v62 = vunpack.i.h.bf16 %v8120_v44  ;;  %v8121_v31 = vunpack.i.l.bf16 %v8120_v44 }
 0x2cf   : > { %v2877_v19 = vsel %vm412_vm3, %v2859_v40, %v8111_v55  ;;  %v2823_v63 = vsel %vm412_vm3, %v2805_v18, %v8112_v28 }
 0x2d0   : > { %v2895_v54 = vsel %vm416_vm5, %v2877_v19, %v8121_v31  ;;  %v2841_v52 = vsel %vm416_vm5, %v2823_v63, %v8122_v62 }
 0x2d1   : > { %3124 = vmatprep.mubr.f32.mxu1 %v2895_v54 }
 0x2d2   : > { %3125 = vmatmul.mubr.f32.gmra.mrb[34].mxu1 %v2841_v52 }
 0x356   : > { %v3041_v46 = vpop.f32.mrb[0].mxu1 }
 0x357   : > { %v3042_v47 = vadd.f32 %v10818_v50, %v3041_v46  ;;  %v3043_v43 = vpop.f32.mrb[1].mxu1 }
 0x359   : > { %v3197_v57 = vadd.f32 %v10502_v41, %v3042_v47 }
 0x35a   : > { %v3046_v21 = vpop.f32.mrb[2].mxu1 }
 0x35b   : > { %v3285_v59 = vmax.f32 %v3197_v57, 0.0  ;;  %v3047_v7 = vadd.f32 %v10818_v50, %v3046_v21  ;;  %v3048_v26 = vpop.f32.mrb[3].mxu1 }
 0x35d   : > { %v3321_v60 = vcombine.high %v3285_v59, %v3285_v59  ;;  %v10824_v10 = vrot.slane %v3285_v59, %v8749_v3  ;;  %v3202_v42 = vadd.f32 %v10500_v4, %v3047_v7 }
 0x35e   : > { %v3051_v15 = vpop.f32.mrb[4].mxu1 }
 0x35f   : > { %14298 = vst [vmem:[#allocation98_spill] sm:$0xff] %v10824_v10  ;;  %v10829_v25 = vcombine.high %v10824_v10, %v10824_v10  ;;  %v10832_v49 = vrot.slane %v3321_v60, %v8749_v3  ;;  %v3286_v41 = vmax.f32 %v3202_v42, 0.0  ;;  %v3053_v58 = vpop.f32.mrb[5].mxu1  ;;  %v7248_v32 = vrot.slane %v10824_v10, 9 }
 0x360   : > { %v3052_v13 = vadd.f32 %v10818_v50, %v3051_v15 }
 0x361   : > { %14299 = vst [vmem:[#allocation40_spill] sm:$0xff] %v10829_v25  ;;  %14300 = vst [vmem:[#allocation21_spill] sm:$0xff] %v10832_v49  ;;  %v10838_v38 = vcombine.high %v10832_v49, %v10832_v49  ;;  %v3581_v4 = vrot.slane %v10829_v25, 7  ;;  %v3584_v33 = vrot.slane %v10832_v49, 7  ;;  %v3322_v23 = vcombine.high %v3286_v41, %v3286_v41 }
 0x362   : > { %v10845_v0 = vrot.slane %v3286_v41, %v8749_v3  ;;  %v3207_v53 = vadd.f32 %v10548_v56, %v3052_v13  ;;  %v3056_v6 = vpop.f32.mrb[6].mxu1  ;;  %v4295_v17 = vcombine.low %v10829_v25, %v10832_v49 }
 0x363   : > { %14301 = vst [vmem:[#allocation32_spill] sm:$0xff] %v10838_v38  ;;  %v3057_v1 = vadd.f32 %v10818_v50, %v3056_v6  ;;  %v3058_v5 = vpop.f32.mrb[7].mxu1  ;;  %v3582_v34 = vsel %vm9524_vm13, %v7248_v32, %v3581_v4  ;;  %v3583_v20 = vrot.slane %v3581_v4, 2  ;;  %v10854_v9 = vrot.slane %v3322_v23, %v8749_v3 }
 0x364   : > { %v3287_v44 = vmax.f32 %v3207_v53, 0.0  ;;  %v3586_v28 = vrot.slane %v3584_v33, 2  ;;  %v3587_v55 = vrot.slane %v10838_v38, 7  ;;  %v3590_v31 = vrot.slane %v10845_v0, 7 }
 0x365   : > { %v3212_v56 = vadd.f32 %v10539_v61, %v3057_v1  ;;  %v3585_v62 = vsel %vm9524_vm13, %v3583_v20, %v3584_v33  ;;  %v4296_v40 = vcombine.low %v10838_v38, %v10845_v0  ;;  %v10868_v63 = vcombine.high %v10854_v9, %v10854_v9 }
 0x366   : > { %v3323_v24 = vcombine.high %v3287_v44, %v3287_v44  ;;  %v10864_v18 = vrot.slane %v3287_v44, %v8749_v3  ;;  %v3061_v19 = vpop.f32.mrb[8].mxu1  ;;  %v3588_v61 = vsel %vm9524_vm13, %v3586_v28, %v3587_v55  ;;  %v3589_v47 = vrot.slane %v3587_v55, 2 }
 0x367   : > { %v3288_v54 = vmax.f32 %v3212_v56, 0.0  ;;  %v3062_v52 = vadd.f32 %v10818_v50, %v3061_v19  ;;  %v3063_v46 = vpop.f32.mrb[9].mxu1  ;;  %v3836_v43 = vcombine.low %v10845_v0, %v10854_v9  ;;  %v4044_v6 = vcombine.low %v3582_v34, %v3585_v62 }
 0x368   : > { %v10877_v57 = vcombine.high %v10864_v18, %v10864_v18  ;;  %v10880_v21 = vrot.slane %v3323_v24, %v8749_v3  ;;  %v3600_v59 = vrot.slane %v10864_v18, 7  ;;  %v3837_v7 = vcombine.low %v10868_v63, %v10864_v18 }
 0x369   : > { %v3324_v26 = vcombine.high %v3288_v54, %v3288_v54  ;;  %v10886_v60 = vrot.slane %v3288_v54, %v8749_v3  ;;  %v3217_v42 = vadd.f32 %v10588_v16, %v3062_v52  ;;  %v3591_v15 = vsel %vm9524_vm13, %v3589_v47, %v3590_v31 }
 0x36a   : > { %v10895_v41 = vrot.slane %v3600_v59, 2  ;;  %v3066_v58 = vpop.f32.mrb[10].mxu1  ;;  %v10898_v32 = vrot.slane %v3836_v43, %v8749_v3  ;;  %v10901_v13 = vrot.slane %v3837_v7, %v8749_v3  ;;  %v3853_v4 = vcombine.low %v10877_v57, %v10880_v21 }
 0x36b   : > { %v10906_v16 = vrot.slane %v3324_v26, %v8749_v3  ;;  %v3289_v33 = vmax.f32 %v3217_v42, 0.0  ;;  %v3067_v23 = vadd.f32 %v10818_v50, %v3066_v58  ;;  %v3068_v53 = vpop.f32.mrb[11].mxu1  ;;  %v4045_v20 = vcombine.low %v3588_v61, %v3591_v15 }
 0x36c   : > { %14302 = vst [vmem:[#allocation19_spill] sm:$0xff] %v10898_v32  ;;  %14303 = vst [vmem:[#allocation35_spill] sm:$0xff] %v10901_v13  ;;  %v10912_v5 = vrot.slane %v3853_v4, %v8749_v3  ;;  %v10916_v44 = vcombine.high %v10886_v60, %v10886_v60  ;;  %v4052_v19 = vrot.slane %v4044_v6, %v8749_v3 }
 0x36d   : > { %v10920_v28 = vcombine.high %v10906_v16, %v10906_v16  ;;  %v3325_v56 = vcombine.high %v3289_v33, %v3289_v33  ;;  %v10924_v34 = vrot.slane %v3289_v33, %v8749_v3  ;;  %v3222_v62 = vadd.f32 %v10585_v51, %v3067_v23 }
 0x36e   : > { %14304 = vst [vmem:[#allocation34_spill] sm:$0xff] %v10912_v5  ;;  %v3071_v24 = vpop.f32.mrb[12].mxu1  ;;  %v4059_v61 = vrot.slane %v4045_v20, %v8749_v3  ;;  %v4916_v54 = vcombine.low %v10901_v13, %v10912_v5  ;;  %v3854_v43 = vcombine.low %v10886_v60, %v10916_v44  ;;  %v4303_v42 = vrot.slane %v4295_v17, %v8749_v3 }
 0x36f   : > { %v10932_v52 = vrot.slane %v3325_v56, %v8749_v3  ;;  %v3072_v46 = vadd.f32 %v10818_v50, %v3071_v24  ;;  %v3073_v47 = vpop.f32.mrb[13].mxu1  ;;  %v3870_v51 = vcombine.low %v10906_v16, %v10920_v28  ;;  %v3290_v7 = vmax.f32 %v3222_v62, 0.0 }
 0x370   : > { %v4060_v26 = vcombine.low %v4052_v19, %v4059_v61  ;;  %v4310_v15 = vrot.slane %v4296_v40, %v8749_v3  ;;  %v10943_v4 = vrot.slane %v3854_v43, %v8749_v3  ;;  %v3569_v23 = vcombine.high %v10845_v0, %v10845_v0 }
 0x371   : > { %v3227_v58 = vadd.f32 %v10624_v30, %v3072_v46  ;;  %v10946_v33 = vrot.slane %v3870_v51, %v8749_v3  ;;  %v3326_v53 = vcombine.high %v3290_v7, %v3290_v7  ;;  %v10951_v6 = vrot.slane %v3290_v7, %v8749_v3 }
 0x372   : > { %14305 = vst [vmem:[#allocation42_spill] sm:$0xff] %v10943_v4  ;;  %v8123_v20 = vpack.i.bf16 %v4060_v26, %v4916_v54  ;;  %v3076_v56 = vpop.f32.mrb[14].mxu1  ;;  %v4311_v17 = vcombine.low %v4303_v42, %v4310_v15  ;;  %v3592_v47 = vrot.slane %v3590_v31, 2  ;;  %v7251_v25 = vrot.slane %v10932_v52, 9 }
 0x373   : > { %14306 = vst [vmem:[#allocation43_spill] sm:$0xff] %v10946_v33  ;;  %v3291_v62 = vmax.f32 %v3227_v58, 0.0  ;;  %v3077_v40 = vadd.f32 %v10818_v50, %v3076_v56  ;;  %v3078_v30 = vpop.f32.mrb[15].mxu1  ;;  %v5055_v19 = vcombine.low %v10943_v4, %v10946_v33  ;;  %v10960_v61 = vcombine.high %v10951_v6, %v10951_v6 }
 0x374   : > { %v10963_v46 = vrot.slane %v3326_v53, %v8749_v3  ;;  %v13850_v54 = vrot.slane %v10951_v6, 7  ;;  %8124 = vrot.lane.b32.xlu1 %v8123_v20, %s14097_s16  ;;  %v3593_v58 = vrot.slane %v3569_v23, 7  ;;  %v7249_v53 = vrot.slane %v10854_v9, 9 }
 0x375   : > { %v3327_v43 = vcombine.high %v3291_v62, %v3291_v62  ;;  %v10970_v51 = vrot.slane %v3291_v62, %v8749_v3  ;;  %v3232_v7 = vadd.f32 %v10619_v39, %v3077_v40  ;;  %v8128_v26 = vpack.i.bf16 %v4311_v17, %v5055_v19 }
 0x376   : > { %v10975_v42 = vrot.slane %v13850_v54, 2  ;;  %v3081_v15 = vpop.f32.mrb[16].mxu1  ;;  %v3597_v20 = vrot.slane %v10868_v63, 7  ;;  %v13851_v39 = vrot.slane %v10877_v57, 7  ;;  %v3594_v17 = vsel %vm9524_vm13, %v3592_v47, %v3593_v58 }
 0x377   : > { %v10980_v56 = vrot.slane %v3327_v43, %v8749_v3  ;;  %v3292_v31 = vmax.f32 %v3232_v7, 0.0  ;;  %v3082_v62 = vadd.f32 %v10818_v50, %v3081_v15  ;;  %v3083_v30 = vpop.f32.mrb[17].mxu1  ;;  %8129 = vrot.lane.b32.xlu0 %v8128_v26, %s14307_s15  ;;  %v7265_v19 = vcombine.high %v10880_v21, %v10886_v60 }
 0x378   : > { %v10989_v23 = vsel %vm9524_vm13, %v7249_v53, %v3597_v20  ;;  %v3599_v40 = vrot.slane %v3597_v20, 2  ;;  %v11013_v20 = vsel %vm9524_vm13, %v10895_v41, %v13851_v39  ;;  %v11139_v32 = vcombine.high %v10880_v21, %v10880_v21 }
 0x379   : > { %14308 = vst [vmem:[#allocation44_spill] sm:$0xff] %v10989_v23  ;;  %v10995_v43 = vcombine.high %v10980_v56, %v10980_v56  ;;  %v3328_v26 = vcombine.high %v3292_v31, %v3292_v31  ;;  %v10999_v15 = vrot.slane %v3292_v31, %v8749_v3  ;;  %v3237_v47 = vadd.f32 %v10659_v48, %v3082_v62 }
 0x37a   : > { %v11006_v53 = vsel %vm9524_vm13, %v3599_v40, %v3600_v59  ;;  %v4061_v30 = vcombine.low %v3594_v17, %v10989_v23  ;;  %v4924_v17 = vrot.slane %v7265_v19, %v8749_v3  ;;  %v7260_v19 = vcombine.high %v10845_v0, %v10854_v9 }
 0x37b   : > { %v3086_v58 = vpop.f32.mrb[18].mxu1  ;;  %14309 = vst [vmem:[#allocation46_spill] sm:$0xff] %v11006_v53  ;;  %v11019_v48 = vrot.slane %v3328_v26, %v8749_v3  ;;  %v4062_v59 = vcombine.low %v11006_v53, %v11013_v20  ;;  %v3293_v40 = vmax.f32 %v3237_v47, 0.0  ;;  %v11032_v26 = vcombine.high %v10932_v52, %v10932_v52 }
 0x37c   : > { %v3087_v62 = vadd.f32 %v10818_v50, %v3086_v58  ;;  %v3088_v24 = vpop.f32.mrb[19].mxu1  ;;  %v4069_v1 = vrot.slane %v4061_v30, %v8749_v3  ;;  %v4925_v30 = vcombine.low %v4924_v17, %v10946_v33  ;;  %v4320_v55 = vrot.slane %v7260_v19, %v8749_v3 }
 0x37d   : > { %v4076_v7 = vrot.slane %v4062_v59, %v8749_v3  ;;  %v3871_v24 = vcombine.low %v10924_v34, %v10932_v52  ;;  %v3329_v58 = vcombine.high %v3293_v40, %v3293_v40  ;;  %v11037_v47 = vrot.slane %v3293_v40, %v8749_v3 }
 0x37e   : > { %v3242_v12 = vadd.f32 %v10656_v2, %v3087_v62  ;;  %v3887_v31 = vcombine.low %v11032_v26, %v10951_v6  ;;  %v3629_v10 = vrot.slane %v11032_v26, 7 }
 0x37f   : > { %v3091_v41 = vpop.f32.mrb[20].mxu1  ;;  %v4077_v62 = vcombine.low %v4069_v1, %v4076_v7  ;;  %v11043_v59 = vrot.slane %v3871_v24, %v8749_v3  ;;  %v11049_v39 = vcombine.high %v11037_v47, %v11037_v47  ;;  %v11052_v40 = vrot.slane %v3329_v58, %v8749_v3 }
 0x380   : > { %v3294_v2 = vmax.f32 %v3242_v12, 0.0  ;;  %v3093_v54 = vpop.f32.mrb[21].mxu1  ;;  %v13853_v17 = vrot.slane %v11037_v47, 7  ;;  %v4313_v12 = vcombine.low %v10864_v18, %v10877_v57  ;;  %v11067_v58 = vrot.slane %v3887_v31, %v8749_v3 }
 0x381   : > { %14310 = vst [vmem:[#allocation113_spill] sm:$0xff] %v11043_v59  ;;  %v8133_v7 = vpack.i.bf16 %v4077_v62, %v4925_v30  ;;  %v3092_v30 = vadd.f32 %v10818_v50, %v3091_v41  ;;  %v14313_v62 = vrot.slane %v10906_v16, 7 }
 0x382   : > { %v3330_v0 = vcombine.high %v3294_v2, %v3294_v2  ;;  %v11058_v1 = vrot.slane %v3294_v2, %v8749_v3  ;;  %v11064_v24 = vrot.slane %v13853_v17, 2  ;;  %14312 = vst [vmem:[#allocation37_spill] sm:$0xff] %v11067_v58  ;;  %v11071_v4 = vrot.slane %v4313_v12, %v8749_v3 }
 0x383   : > { %8134 = vrot.lane.b32.xlu0 %v8133_v7, %s14097_s16  ;;  %v3571_v2 = vcombine.high %v10924_v34, %v10924_v34  ;;  %v3618_v54 = vrot.slane %v14313_v62, 2  ;;  %v3096_v31 = vpop.f32.mrb[22].mxu1  ;;  %v5056_v19 = vcombine.low %v11043_v59, %v11067_v58  ;;  %v3619_v12 = vrot.slane %v10920_v28, 7 }
 0x384   : > { %14311 = vst [vmem:[#allocation54_spill] sm:$0xff] %v11058_v1  ;;  %v11074_v18 = vrot.slane %v3330_v0, %v8749_v3  ;;  %v4328_v17 = vcombine.low %v4320_v55, %v11071_v4  ;;  %v3622_v0 = vrot.slane %v10924_v34, 7  ;;  %v3098_v33 = vpop.f32.mrb[23].mxu1  ;;  %v3247_v5 = vadd.f32 %v10685_v14, %v3092_v30 }
 0x385   : > { %v3625_v62 = vrot.slane %v3571_v2, 7  ;;  %v11095_v55 = vsel %vm9524_vm13, %v3618_v54, %v3619_v12  ;;  %v3621_v59 = vrot.slane %v3619_v12, 2  ;;  %v3888_v54 = vcombine.low %v10960_v61, %v10963_v46 }
 0x386   : > { %v11089_v41 = vcombine.high %v11074_v18, %v11074_v18  ;;  %v8138_v22 = vpack.i.bf16 %v4328_v17, %v5056_v19  ;;  %14315 = vst [vmem:[#allocation38_spill] sm:$0xff] %v11095_v55  ;;  %v3624_v13 = vrot.slane %v3622_v0, 2  ;;  %v3295_v33 = vmax.f32 %v3247_v5, 0.0 }
 0x387   : > { %v11104_v14 = vsel %vm9524_vm13, %v3621_v59, %v3622_v0  ;;  %v7266_v5 = vcombine.high %v10963_v46, %v10970_v51  ;;  %v3606_v0 = vrot.slane %v10880_v21, 7  ;;  %v3097_v23 = vadd.f32 %v10818_v50, %v3096_v31 }
 0x388   : > { %14314 = vst [vmem:[#allocation51_spill] sm:$0xff] %v11089_v41  ;;  %8139 = vrot.lane.b32.xlu1 %v8138_v22, %s14307_s15  ;;  %14316 = vst [vmem:[#allocation90_spill] sm:$0xff] %v11104_v14  ;;  %v11108_v17 = vsel %vm9524_vm13, %v3624_v13, %v3625_v62  ;;  %v3331_v30 = vcombine.high %v3295_v33, %v3295_v33  ;;  %v11115_v19 = vrot.slane %v3295_v33, %v8749_v3 }
 0x389   : > { %14317 = vst [vmem:[#allocation52_spill] sm:$0xff] %v11108_v17  ;;  %v11119_v22 = vsel %vm9524_vm13, %v7251_v25, %v3629_v10  ;;  %v4095_v59 = vcombine.low %v11095_v55, %v11104_v14  ;;  %v11124_v13 = vrot.slane %v3888_v54, %v8749_v3  ;;  %v4942_v62 = vrot.slane %v7266_v5, %v8749_v3 }
 0x38a   : > { %14318 = vst [vmem:[#allocation45_spill] sm:$0xff] %v11119_v22  ;;  %v4096_v12 = vcombine.low %v11108_v17, %v11119_v22  ;;  %v3101_v33 = vpop.f32.mrb[24].mxu1  ;;  %v11132_v7 = vrot.slane %v3331_v30, %v8749_v3  ;;  %v14320_v54 = vrot.slane %v10877_v57, 7  ;;  %v7250_v30 = vrot.slane %v10886_v60, 9 }
 0x38b   : > { %14319 = vst [vmem:[#allocation49_spill] sm:$0xff] %v11124_v13  ;;  %v11135_v25 = vrot.slane %v4095_v59, %v8749_v3  ;;  %v3103_v38 = vpop.f32.mrb[25].mxu1  ;;  %v4943_v5 = vcombine.low %v11124_v13, %v4942_v62  ;;  %v3609_v59 = vrot.slane %v11139_v32, 7  ;;  %v3613_v17 = vrot.slane %v10916_v44, 7 }
 0x38c   : > { %v3605_v49 = vrot.slane %v14320_v54, 2  ;;  %v11144_v53 = vrot.slane %v4096_v12, %v8749_v3  ;;  %v4926_v14 = vcombine.low %v10924_v34, %v3571_v2  ;;  %v3608_v12 = vrot.slane %v3606_v0, 2 }
 0x38d   : > { %v3631_v62 = vrot.slane %v3629_v10, 2  ;;  %v11163_v35 = vsel %vm9524_vm13, %v7250_v30, %v3613_v17  ;;  %v3615_v1 = vrot.slane %v3613_v17, 2  ;;  %v3252_v10 = vadd.f32 %v10683_v45, %v3097_v23 }
 0x38e   : > { %v4111_v38 = vcombine.low %v11135_v25, %v11144_v53  ;;  %v11157_v57 = vsel %vm9524_vm13, %v3605_v49, %v3606_v0  ;;  %v11159_v54 = vpop.f32.mrb[26].mxu1  ;;  %v4933_v31 = vrot.slane %v4926_v14, %v8749_v3  ;;  %v11170_v49 = vsel %vm9524_vm13, %v3608_v12, %v3609_v59 }
 0x38f   : > { %v3108_v29 = vpop.f32.mrb[27].mxu1  ;;  %v14321_v0 = vrot.slane %v10951_v6, 7  ;;  %v14323_v17 = vrot.slane %v10906_v16, 7  ;;  %v3296_v59 = vmax.f32 %v3252_v10, 0.0  ;;  %v4330_v12 = vcombine.low %v10916_v44, %v10906_v16 }
 0x390   : > { %v8153_v41 = vpack.i.bf16 %v4111_v38, %v4943_v5  ;;  %v4078_v29 = vcombine.low %v11157_v57, %v11170_v49  ;;  %v4934_v45 = vcombine.low %v4933_v31, %v11067_v58  ;;  %v11245_v58 = vcombine.high %v10970_v51, %v10970_v51 }
 0x391   : > { %v11177_v30 = vsel %vm9524_vm13, %v3631_v62, %v14321_v0  ;;  %v11183_v2 = vsel %vm9524_vm13, %v3615_v1, %v14323_v17  ;;  %v13871_v1 = vrot.slane %v10960_v61, 7  ;;  %v4555_v62 = vcombine.low %v10880_v21, %v10886_v60 }
 0x392   : > { %14322 = vst [vmem:[#allocation48_spill] sm:$0xff] %v11177_v30  ;;  %8154 = vrot.lane.b32.xlu0 %v8153_v41, %s14097_s16  ;;  %v4079_v23 = vcombine.low %v11163_v35, %v11183_v2  ;;  %v4086_v38 = vrot.slane %v4078_v29, %v8749_v3  ;;  %v3332_v0 = vcombine.high %v3296_v59, %v3296_v59  ;;  %v14338_v22 = vrot.slane %v10980_v56, 7 }
 0x393   : > { %v11205_v17 = vrot.slane %v3296_v59, %v8749_v3  ;;  %v11212_v10 = vsel %vm9524_vm13, %v10975_v42, %v13871_v1  ;;  %v11217_v60 = vrot.slane %v4330_v12, %v8749_v3  ;;  %v4562_v44 = vrot.slane %v4555_v62, %v8749_v3 }
 0x394   : > { %v4093_v31 = vrot.slane %v4079_v23, %v8749_v3  ;;  %14324 = vst [vmem:[#allocation47_spill] sm:$0xff] %v11212_v10  ;;  %v4112_v16 = vcombine.low %v11177_v30, %v11212_v10  ;;  %v4546_v29 = vcombine.low %v10854_v9, %v10868_v63  ;;  %v11222_v23 = vpop.f32.mrb[28].mxu1  ;;  %v11229_v42 = vrot.slane %v3332_v0, %v8749_v3 }
 0x395   : > { %14325 = vst [vmem:[#allocation57_spill] sm:$0xff] %v11217_v60  ;;  %v11226_v41 = vcombine.high %v11205_v17, %v11205_v17  ;;  %v13873_v5 = vrot.slane %v11205_v17, 7  ;;  %v3113_v14 = vpop.f32.mrb[29].mxu1  ;;  %v4563_v62 = vcombine.low %v4562_v44, %v11217_v60  ;;  %v3102_v0 = vadd.f32 %v10818_v50, %v3101_v33 }
 0x396   : > { %v4094_v59 = vcombine.low %v4086_v38, %v4093_v31  ;;  %v11233_v12 = vrot.slane %v4112_v16, %v8749_v3  ;;  %v4553_v9 = vrot.slane %v4546_v29, %v8749_v3  ;;  %v5136_v63 = vcombine.low %v4093_v31, %v11135_v25 }
 0x397   : > { %v11240_v1 = vrot.slane %v13873_v5, 2  ;;  %v14326_v25 = vcombine.low %v10980_v56, %v10995_v43  ;;  %v4329_v31 = vcombine.low %v10880_v21, %v11139_v32  ;;  %v3257_v33 = vadd.f32 %v10728_v37, %v3102_v0 }
 0x398   : > { %v8143_v38 = vpack.i.bf16 %v4094_v59, %v4934_v45  ;;  %v5137_v14 = vcombine.low %v11144_v53, %v11233_v12  ;;  %v4554_v16 = vcombine.low %v4553_v9, %v11071_v4  ;;  %v3904_v44 = vcombine.low %v10970_v51, %v11245_v58 }
 0x399   : > { %v11254_v45 = vrot.slane %v14326_v25, %v8749_v3  ;;  %v3921_v53 = vcombine.low %v10999_v15, %v11019_v48  ;;  %v4346_v4 = vcombine.low %v10920_v28, %v10924_v34  ;;  %v11266_v29 = vpop.f32.mrb[30].mxu1  ;;  %v4337_v25 = vrot.slane %v4329_v31, %v8749_v3 }
 0x39a   : > { %8144 = vrot.lane.b32.xlu1 %v8143_v38, %s14097_s16  ;;  %v8158_v59 = vpack.i.bf16 %v4563_v62, %v5137_v14  ;;  %v8148_v9 = vpack.i.bf16 %v4554_v16, %v5136_v63  ;;  %v7261_v21 = vcombine.high %v10924_v34, %v10932_v52  ;;  %v3118_v32 = vpop.f32.mrb[31].mxu1  ;;  %v3297_v37 = vmax.f32 %v3257_v33, 0.0 }
 0x39b   : > { %14327 = vst [vmem:[#allocation60_spill] sm:$0xff] %v11254_v45  ;;  %v11272_v38 = vrot.slane %v3904_v44, %v8749_v3  ;;  %v11275_v0 = vrot.slane %v3921_v53, %v8749_v3  ;;  %v11278_v5 = vrot.slane %v4346_v4, %v8749_v3  ;;  %v4345_v28 = vcombine.low %v4337_v25, %v11217_v60 }
 0x39c   : > { %8159 = vrot.lane.b32.xlu0 %v8158_v59, %s14090_s29  ;;  %v11283_v62 = vrot.slane %v7261_v21, %v8749_v3  ;;  %v3107_v34 = vadd.f32 %v10818_v50, %v11159_v54  ;;  %v11289_v63 = vcombine.high %v11019_v48, %v11019_v48  ;;  %v3333_v14 = vcombine.high %v3297_v37, %v3297_v37 }
 0x39d   : > { %14328 = vst [vmem:[#allocation61_spill] sm:$0xff] %v11272_v38  ;;  %14329 = vst [vmem:[#allocation107_spill] sm:$0xff] %v11275_v0  ;;  %v11293_v16 = vrot.slane %v3297_v37, %v8749_v3  ;;  %v5057_v33 = vcombine.low %v11124_v13, %v11272_v38  ;;  %v5058_v54 = vcombine.low %v11254_v45, %v11275_v0  ;;  %v3645_v13 = vrot.slane %v11245_v58, 7 }
 0x39e   : > { %14330 = vst [vmem:[#allocation50_spill] sm:$0xff] %v11278_v5  ;;  %14331 = vst [vmem:[#allocation55_spill] sm:$0xff] %v11283_v62  ;;  %8149 = vrot.lane.b32.xlu1 %v8148_v9, %s14090_s29  ;;  %v4362_v44 = vcombine.low %v11278_v5, %v11283_v62  ;;  %v3262_v4 = vadd.f32 %v10724_v11, %v3107_v34  ;;  %v11307_v59 = vrot.slane %v3333_v14, %v8749_v3 }
 0x39f   : > { %v8163_v9 = vpack.i.bf16 %v4345_v28, %v5057_v33  ;;  %v3572_v25 = vcombine.high %v10963_v46, %v10963_v46  ;;  %v3922_v21 = vcombine.low %v11289_v63, %v11037_v47  ;;  %v3938_v62 = vcombine.low %v11049_v39, %v11052_v40 }
 0x3a0   : > { %v11313_v32 = vpop.f32.mrb[32].mxu1  ;;  %v8168_v37 = vpack.i.bf16 %v4362_v44, %v5058_v54  ;;  %v3298_v31 = vmax.f32 %v3262_v4, 0.0  ;;  %v4363_v11 = vcombine.low %v10951_v6, %v10960_v61  ;;  %v11321_v28 = vcombine.high %v11307_v59, %v11307_v59 }
 0x3a1   : > { %v3123_v34 = vpop.f32.mrb[33].mxu1  ;;  %8164 = vrot.lane.b32.xlu0 %v8163_v9, %s14307_s15  ;;  %v3641_v33 = vrot.slane %v3572_v25, 7  ;;  %v11326_v53 = vrot.slane %v3922_v21, %v8749_v3  ;;  %v11333_v6 = vrot.slane %v3938_v62, %v8749_v3  ;;  %v4364_v4 = vcombine.low %v10963_v46, %v3572_v25 }
 0x3a2   : > { %8169 = vrot.lane.b32.xlu1 %v8168_v37, %s14307_s15  ;;  %v3334_v44 = vcombine.high %v3298_v31, %v3298_v31  ;;  %v11330_v54 = vrot.slane %v3298_v31, %v8749_v3  ;;  %v11339_v9 = vrot.slane %v4363_v11, %v8749_v3  ;;  %v3573_v21 = vcombine.high %v10999_v15, %v10999_v15 }
 0x3a3   : > { %14332 = vst [vmem:[#allocation64_spill] sm:$0xff] %v11326_v53  ;;  %14333 = vst [vmem:[#allocation71_spill] sm:$0xff] %v11333_v6  ;;  %v14335_v37 = vrot.slane %v10960_v61, 7  ;;  %v11349_v62 = vrot.slane %v4364_v4, %v8749_v3  ;;  %v11353_v25 = vcombine.low %v11326_v53, %v11333_v6  ;;  %v3638_v34 = vrot.slane %v10963_v46, 7 }
 0x3a4   : > { %14334 = vst [vmem:[#allocation53_spill] sm:$0xff] %v11339_v9  ;;  %v11346_v31 = vrot.slane %v3334_v44, %v8749_v3  ;;  %v3657_v60 = vrot.slane %v3573_v21, 7  ;;  %v4944_v0 = vcombine.low %v10999_v15, %v3573_v21  ;;  %v3112_v61 = vadd.f32 %v10818_v50, %v11222_v23 }
 0x3a5   : > { %v3637_v14 = vrot.slane %v14335_v37, 2  ;;  %14336 = vst [vmem:[#allocation63_spill] sm:$0xff] %v11349_v62  ;;  %v11356_v11 = vpop.f32.mrb[34].mxu1  ;;  %v7252_v44 = vrot.slane %v10970_v51, 9  ;;  %v4379_v4 = vcombine.low %v11339_v9, %v11349_v62  ;;  %v3640_v38 = vrot.slane %v3638_v34, 2 }
 0x3a6   : > { %v3128_v37 = vpop.f32.mrb[35].mxu1  ;;  %v4951_v21 = vrot.slane %v4944_v0, %v8749_v3  ;;  %v3267_v23 = vadd.f32 %v10759_v27, %v3112_v61  ;;  %v3651_v61 = vrot.slane %v10995_v43, 7  ;;  %v4582_v6 = vcombine.low %v11019_v48, %v11289_v63 }
 0x3a7   : > { %v11366_v53 = vsel %vm9524_vm13, %v3637_v14, %v3638_v34  ;;  %v3650_v37 = vrot.slane %v14338_v22, 2  ;;  %v8183_v55 = vpack.i.bf16 %v4379_v4, %v11353_v25  ;;  %v11378_v62 = vsel %vm9524_vm13, %v3640_v38, %v3641_v33 }
 0x3a8   : > { %14337 = vst [vmem:[#allocation67_spill] sm:$0xff] %v11366_v53  ;;  %v11382_v14 = vsel %vm9524_vm13, %v7252_v44, %v3645_v13  ;;  %v3647_v34 = vrot.slane %v3645_v13, 2  ;;  %v4113_v30 = vcombine.low %v11366_v53, %v11378_v62  ;;  %v4952_v0 = vcombine.low %v11254_v45, %v4951_v21 }
 0x3a9   : > { %14339 = vst [vmem:[#allocation66_spill] sm:$0xff] %v11382_v14  ;;  %v3299_v27 = vmax.f32 %v3267_v23, 0.0  ;;  %8184 = vrot.lane.b32.xlu0 %v8183_v55, %s14307_s15  ;;  %v3654_v33 = vrot.slane %v10999_v15, 7  ;;  %v4564_v44 = vcombine.low %v10932_v52, %v11032_v26  ;;  %v11406_v55 = vsel %vm9524_vm13, %v3650_v37, %v3651_v61 }
 0x3aa   : > { %v11393_v38 = vsel %vm9524_vm13, %v3647_v34, %v14338_v22  ;;  %v4127_v4 = vrot.slane %v4113_v30, %v8749_v3  ;;  %v3653_v34 = vrot.slane %v3651_v61, 2 }
 0x3ab   : > { %14340 = vst [vmem:[#allocation65_spill] sm:$0xff] %v11393_v38  ;;  %v3335_v21 = vcombine.high %v3299_v27, %v3299_v27  ;;  %v11402_v23 = vrot.slane %v3299_v27, %v8749_v3  ;;  %v4129_v22 = vcombine.low %v11382_v14, %v11393_v38  ;;  %v4571_v45 = vrot.slane %v4564_v44, %v8749_v3 }
 0x3ac   : > { %v4128_v52 = vcombine.low %v11233_v12, %v4127_v4  ;;  %v11424_v27 = vsel %vm9524_vm13, %v3653_v34, %v3654_v33  ;;  %v3117_v12 = vadd.f32 %v10818_v50, %v11266_v29  ;;  %v3656_v53 = vrot.slane %v3654_v33, 2 }
 0x3ad   : > { %v11416_v26 = vcombine.high %v11402_v23, %v11402_v23  ;;  %v11419_v30 = vrot.slane %v3335_v21, %v8749_v3  ;;  %v13889_v37 = vrot.slane %v11402_v23, 7  ;;  %14341 = vst [vmem:[#allocation58_spill] sm:$0xff] %v11424_v27  ;;  %v4137_v61 = vrot.slane %v4129_v22, %v8749_v3 }
 0x3ae   : > { %v4572_v13 = vcombine.low %v11278_v5, %v4571_v45  ;;  %v8173_v44 = vpack.i.bf16 %v4128_v52, %v4952_v0  ;;  %v4130_v21 = vcombine.low %v11406_v55, %v11424_v27  ;;  %v3272_v34 = vadd.f32 %v10751_v8, %v3117_v12 }
 0x3af   : > { %v11432_v38 = vrot.slane %v13889_v37, 2  ;;  %v5138_v10 = vcombine.low %v4127_v4, %v4137_v61  ;;  %v7253_v14 = vrot.slane %v11019_v48, 9  ;;  %v3661_v22 = vrot.slane %v11289_v63, 7 }
 0x3b0   : > { %8174 = vrot.lane.b32.xlu1 %v8173_v44, %s14097_s16  ;;  %v4144_v45 = vrot.slane %v4130_v21, %v8749_v3  ;;  %v11443_v29 = vsel %vm9524_vm13, %v3656_v53, %v3657_v60  ;;  %v4573_v0 = vcombine.low %v10963_v46, %v10970_v51  ;;  %v11449_v33 = vcombine.high %v11052_v40, %v11052_v40 }
 0x3b1   : > { %14342 = vst [vmem:[#allocation74_spill] sm:$0xff] %v11443_v29  ;;  %v8178_v8 = vpack.i.bf16 %v4572_v13, %v5138_v10  ;;  %v3300_v4 = vmax.f32 %v3272_v34, 0.0  ;;  %v11453_v52 = vsel %vm9524_vm13, %v7253_v14, %v3661_v22  ;;  %v3663_v46 = vrot.slane %v3661_v22, 2 }
 0x3b2   : > { %14343 = vst [vmem:[#allocation72_spill] sm:$0xff] %v11453_v52  ;;  %v4145_v44 = vcombine.low %v4137_v61, %v4144_v45  ;;  %v4146_v60 = vcombine.low %v11443_v29, %v11453_v52  ;;  %v4580_v53 = vrot.slane %v4573_v0, %v8749_v3  ;;  %v3667_v10 = vrot.slane %v11049_v39, 7 }
 0x3b3   : > { %v3336_v51 = vcombine.high %v3300_v4, %v3300_v4  ;;  %v11461_v21 = vrot.slane %v3300_v4, %v8749_v3  ;;  %v3670_v13 = vrot.slane %v11052_v40, 7  ;;  %v14344_v0 = vrot.slane %v11037_v47, 7 }
 0x3b4   : > { %v8188_v14 = vpack.i.bf16 %v4145_v44, %v11353_v25  ;;  %8179 = vrot.lane.b32.xlu1 %v8178_v8, %s14090_s29  ;;  %v11468_v61 = vrot.slane %v4146_v60, %v8749_v3  ;;  %v4581_v34 = vcombine.low %v11339_v9, %v4580_v53  ;;  %v11483_v25 = vsel %vm9524_vm13, %v11064_v24, %v3667_v10 }
 0x3b5   : > { %v11475_v22 = vsel %vm9524_vm13, %v3663_v46, %v14344_v0  ;;  %v11478_v4 = vrot.slane %v3336_v51, %v8749_v3  ;;  %14346 = vst [vmem:[#allocation80_spill] sm:$0xff] %v11483_v25  ;;  %v3669_v8 = vrot.slane %v3667_v10, 2  ;;  %v3672_v44 = vrot.slane %v3670_v13, 2 }
 0x3b6   : > { %14345 = vst [vmem:[#allocation69_spill] sm:$0xff] %v11475_v22  ;;  %8189 = vrot.lane.b32.xlu0 %v8188_v14, %s14097_s16  ;;  %v5139_v60 = vcombine.low %v4144_v45, %v11468_v61  ;;  %v3673_v53 = vrot.slane %v11449_v33, 7  ;;  %v4147_v46 = vcombine.low %v11475_v22, %v11483_v25  ;;  %v4380_v51 = vcombine.low %v11245_v58, %v10980_v56 }
 0x3b7   : > { %v11495_v24 = vsel %vm9524_vm13, %v3669_v8, %v3670_v13  ;;  %v4381_v10 = vcombine.low %v10995_v43, %v10999_v15  ;;  %v11523_v8 = vcombine.high %v11132_v7, %v11132_v7  ;;  %v4398_v45 = vcombine.low %v11037_v47, %v11049_v39  ;;  %v14361_v47 = vld [vmem:[#allocation24_spill] sm:$0xff] }
 0x3b8   : > { %14347 = vst [vmem:[#allocation79_spill] sm:$0xff] %v11495_v24  ;;  %v8193_v14 = vpack.i.bf16 %v4581_v34, %v5139_v60  ;;  %v11503_v12 = vsel %vm9524_vm13, %v3672_v44, %v3673_v53  ;;  %v11506_v37 = vrot.slane %v4147_v46, %v8749_v3  ;;  %v11509_v56 = vrot.slane %v4380_v51, %v8749_v3  ;;  %v14351_v60 = vld [vmem:[#allocation51_spill] sm:$0xff] }
 0x3b9   : > { %14348 = vst [vmem:[#allocation81_spill] sm:$0xff] %v11503_v12  ;;  %v4163_v58 = vcombine.low %v11495_v24, %v11503_v12  ;;  %v11514_v13 = vrot.slane %v4381_v10, %v8749_v3  ;;  %v3122_v34 = vadd.f32 %v10818_v50, %v11313_v32  ;;  %v3956_v44 = vcombine.low %v11115_v19, %v11132_v7 }
 0x3ba   : > { %14349 = vst [vmem:[#allocation68_spill] sm:$0xff] %v11509_v56  ;;  %8194 = vrot.lane.b32.xlu0 %v8193_v14, %s14090_s29  ;;  %v14352_v53 = vcombine.low %v11074_v18, %v14351_v60  ;;  %v7262_v51 = vcombine.high %v10999_v15, %v11019_v48  ;;  %v14354_v14 = vld [vmem:[#allocation106_spill] sm:$0xff]  ;;  %v3127_v39 = vadd.f32 %v10818_v50, %v11356_v11 }
 0x3bb   : > { %14350 = vst [vmem:[#allocation73_spill] sm:$0xff] %v11514_v13  ;;  %v11536_v32 = vrot.slane %v4163_v58, %v8749_v3  ;;  %v4396_v10 = vcombine.low %v11509_v56, %v11514_v13  ;;  %v3277_v43 = vadd.f32 %v14354_v14, %v3122_v34  ;;  %v11544_v0 = vrot.slane %v3956_v44, %v8749_v3  ;;  %v14357_v15 = vld [vmem:[#allocation54_spill] sm:$0xff] }
 0x3bc   : > { %v11531_v46 = vrot.slane %v14352_v53, %v8749_v3  ;;  %v3972_v53 = vcombine.low %v11523_v8, %v11205_v17  ;;  %v11549_v9 = vrot.slane %v7262_v51, %v8749_v3  ;;  %v11553_v58 = vcombine.high %v14357_v15, %v14357_v15 }
 0x3bd   : > { %14355 = vst [vmem:[#allocation82_spill] sm:$0xff] %v11544_v0  ;;  %v5140_v13 = vcombine.low %v11506_v37, %v11536_v32  ;;  %v3301_v34 = vmax.f32 %v3277_v43, 0.0  ;;  %v11558_v14 = vrot.slane %v4398_v45, %v8749_v3  ;;  %v3575_v56 = vcombine.high %v11115_v19, %v11115_v19 }
 0x3be   : > { %14353 = vst [vmem:[#allocation78_spill] sm:$0xff] %v11531_v46  ;;  %14356 = vst [vmem:[#allocation70_spill] sm:$0xff] %v11549_v9  ;;  %v11565_v44 = vrot.slane %v3972_v53, %v8749_v3  ;;  %v3939_v51 = vcombine.low %v14357_v15, %v11553_v58  ;;  %v3282_v24 = vadd.f32 %v14361_v47, %v3127_v39  ;;  %v7254_v25 = vrot.slane %v14357_v15, 9 }
 0x3bf   : > { %14358 = vst [vmem:[#allocation83_spill] sm:$0xff] %v11558_v14  ;;  %v8198_v5 = vpack.i.bf16 %v4396_v10, %v5140_v13  ;;  %v3337_v43 = vcombine.high %v3301_v34, %v3301_v34  ;;  %v11572_v45 = vrot.slane %v3301_v34, %v8749_v3  ;;  %v4413_v50 = vcombine.low %v11549_v9, %v11558_v14 }
 0x3c0   : > { %14359 = vst [vmem:[#allocation77_spill] sm:$0xff] %v11565_v44  ;;  %v5060_v11 = vcombine.low %v11544_v0, %v11565_v44  ;;  %v11579_v53 = vrot.slane %v3939_v51, %v8749_v3  ;;  %v3677_v34 = vrot.slane %v11553_v58, 7  ;;  %v3689_v22 = vrot.slane %v3575_v56, 7 }
 0x3c1   : > { %8199 = vrot.lane.b32.xlu1 %v8198_v5, %s14090_s29  ;;  %v11585_v13 = vrot.slane %v3337_v43, %v8749_v3  ;;  %v4963_v9 = vcombine.low %v11115_v19, %v3575_v56  ;;  %v3302_v39 = vmax.f32 %v3282_v24, 0.0  ;;  %v14363_v24 = vrot.slane %v11074_v18, 7 }
 0x3c2   : > { %14360 = vst [vmem:[#allocation125_spill] sm:$0xff] %v11579_v53  ;;  %v8213_v52 = vpack.i.bf16 %v4413_v50, %v5060_v11  ;;  %v5059_v51 = vcombine.low %v11579_v53, %v11531_v46  ;;  %v11596_v5 = vsel %vm9524_vm13, %v7254_v25, %v3677_v34  ;;  %v3679_v43 = vrot.slane %v3677_v34, 2 }
 0x3c3   : > { %14362 = vst [vmem:[#allocation91_spill] sm:$0xff] %v11596_v5  ;;  %v4970_v29 = vrot.slane %v4963_v9, %v8749_v3  ;;  %v3338_v50 = vcombine.high %v3302_v39, %v3302_v39  ;;  %v11601_v11 = vrot.slane %v3302_v39, %v8749_v3  ;;  %v4162_v9 = vcombine.low %v11468_v61, %v11506_v37 }
 0x3c4   : > { %8214 = vrot.lane.b32.xlu0 %v8213_v52, %s14307_s15  ;;  %v8203_v56 = vpack.i.bf16 %v4396_v10, %v5059_v51  ;;  %v11609_v47 = vsel %vm9524_vm13, %v3679_v43, %v14363_v24  ;;  %v7267_v52 = vcombine.high %v11052_v40, %v14357_v15  ;;  %v14365_v37 = vmov %v14363_v24 }
 0x3c5   : > { %v4971_v25 = vcombine.low %v4970_v29, %v11565_v44  ;;  %v11619_v10 = vcombine.high %v11601_v11, %v11601_v11  ;;  %v11622_v34 = vrot.slane %v3338_v50, %v8749_v3  ;;  %v13905_v51 = vrot.slane %v11601_v11, 7 }
 0x3c6   : > { %8204 = vrot.lane.b32.xlu1 %v8203_v56, %s14307_s15  ;;  %v4164_v29 = vcombine.low %v11596_v5, %v11609_v47  ;;  %v4961_v39 = vrot.slane %v7267_v52, %v8749_v3  ;;  %v3682_v61 = vrot.slane %v14365_v37, 2  ;;  %v3683_v43 = vrot.slane %v14351_v60, 7 }
 0x3c7   : > { %14364 = vst [vmem:[#allocation93_spill] sm:$0xff] %v11622_v34  ;;  %v3686_v56 = vrot.slane %v11115_v19, 7  ;;  %v11634_v24 = vcombine.high %v11622_v34, %v11622_v34  ;;  %v11638_v50 = vrot.slane %v13905_v51, 2  ;;  %v7255_v0 = vrot.slane %v11132_v7, 9 }
 0x3c8   : > { %v4178_v44 = vrot.slane %v4164_v29, %v8749_v3  ;;  %v4962_v52 = vcombine.low %v4961_v39, %v11531_v46  ;;  %v11645_v37 = vsel %vm9524_vm13, %v3682_v61, %v3683_v43  ;;  %v3685_v53 = vrot.slane %v3683_v43, 2 }
 0x3c9   : > { %14366 = vst [vmem:[#allocation85_spill] sm:$0xff] %v11634_v24  ;;  %v3688_v12 = vrot.slane %v3686_v56, 2  ;;  %v4589_v39 = vrot.slane %v4582_v6, %v8749_v3  ;;  %v3693_v61 = vrot.slane %v11523_v8, 7 }
 0x3ca   : > { %v4179_v5 = vcombine.low %v11536_v32, %v4178_v44  ;;  %v8208_v27 = vpack.i.bf16 %v4162_v9, %v4962_v52  ;;  %v11655_v29 = vsel %vm9524_vm13, %v3685_v53, %v3686_v56  ;;  %v3973_v32 = vcombine.low %v11226_v41, %v11229_v42 }
 0x3cb   : > { %v4180_v48 = vcombine.low %v11645_v37, %v11655_v29  ;;  %v11663_v63 = vsel %vm9524_vm13, %v3688_v12, %v3689_v22  ;;  %v4590_v53 = vcombine.low %v4589_v39, %v11558_v14  ;;  %v11671_v6 = vsel %vm9524_vm13, %v7255_v0, %v3693_v61 }
 0x3cc   : > { %v8218_v43 = vpack.i.bf16 %v4179_v5, %v4971_v25  ;;  %8209 = vrot.lane.b32.xlu1 %v8208_v27, %s14097_s16  ;;  %v7268_v25 = vcombine.high %v11229_v42, %v11293_v16  ;;  %v11680_v22 = vrot.slane %v3973_v32, %v8749_v3  ;;  %v4181_v27 = vcombine.low %v11663_v63, %v11671_v6 }
 0x3cd   : > { %v4188_v12 = vrot.slane %v4180_v48, %v8749_v3  ;;  %v3990_v0 = vcombine.low %v11307_v59, %v11321_v28  ;;  %v4006_v56 = vcombine.low %v11330_v54, %v11346_v31  ;;  %v4431_v52 = vcombine.low %v14351_v60, %v11115_v19 }
 0x3ce   : > { %8219 = vrot.lane.b32.xlu0 %v8218_v43, %s14097_s16  ;;  %14367 = vst [vmem:[#allocation84_spill] sm:$0xff] %v11680_v22  ;;  %v4979_v9 = vrot.slane %v7268_v25, %v8749_v3  ;;  %v7263_v39 = vcombine.high %v11115_v19, %v11132_v7  ;;  %v4195_v48 = vrot.slane %v4181_v27, %v8749_v3  ;;  %v3695_v5 = vrot.slane %v3693_v61, 2 }
 0x3cf   : > { %v5141_v43 = vcombine.low %v4178_v44, %v4188_v12  ;;  %v11695_v32 = vrot.slane %v3990_v0, %v8749_v3  ;;  %v11699_v25 = vrot.slane %v4006_v56, %v8749_v3  ;;  %v11702_v14 = vrot.slane %v4431_v52, %v8749_v3 }
 0x3d0   : > { %v4980_v51 = vcombine.low %v11680_v22, %v4979_v9  ;;  %v11705_v60 = vrot.slane %v7263_v39, %v8749_v3  ;;  %v4196_v19 = vcombine.low %v4188_v12, %v4195_v48  ;;  %v14372_v44 = vrot.slane %v11205_v17, 7 }
 0x3d1   : > { %14368 = vst [vmem:[#allocation92_spill] sm:$0xff] %v11695_v32  ;;  %14369 = vst [vmem:[#allocation94_spill] sm:$0xff] %v11699_v25  ;;  %v8223_v46 = vpack.i.bf16 %v4590_v53, %v5141_v43  ;;  %v3699_v61 = vrot.slane %v11226_v41, 7  ;;  %v5062_v9 = vcombine.low %v11695_v32, %v11699_v25  ;;  %v4415_v56 = vcombine.low %v11553_v58, %v11074_v18 }
 0x3d2   : > { %14370 = vst [vmem:[#allocation103_spill] sm:$0xff] %v11702_v14  ;;  %14371 = vst [vmem:[#allocation88_spill] sm:$0xff] %v11705_v60  ;;  %v11711_v27 = vsel %vm9524_vm13, %v3695_v5, %v14372_v44  ;;  %v4447_v0 = vcombine.low %v11702_v14, %v11705_v60  ;;  %v4591_v53 = vcombine.low %v11052_v40, %v14357_v15 }
 0x3d3   : > { %8224 = vrot.lane.b32.xlu0 %v8223_v46, %s14090_s29  ;;  %v8228_v12 = vpack.i.bf16 %v4196_v19, %v4980_v51  ;;  %v11726_v5 = vsel %vm9524_vm13, %v11240_v1, %v3699_v61  ;;  %v3576_v39 = vcombine.high %v11229_v42, %v11229_v42  ;;  %v11735_v15 = vrot.slane %v4415_v56, %v8749_v3 }
 0x3d4   : > { %14373 = vst [vmem:[#allocation128_spill] sm:$0xff] %v11726_v5  ;;  %v8243_v43 = vpack.i.bf16 %v4447_v0, %v5062_v9  ;;  %v4197_v18 = vcombine.low %v11711_v27, %v11726_v5  ;;  %v4598_v46 = vrot.slane %v4591_v53, %v8749_v3  ;;  %v11741_v1 = vcombine.high %v11330_v54, %v11330_v54 }
 0x3d5   : > { %14374 = vst [vmem:[#allocation127_spill] sm:$0xff] %v11735_v15  ;;  %8229 = vrot.lane.b32.xlu1 %v8228_v12, %s14097_s16  ;;  %v3701_v58 = vrot.slane %v3699_v61, 2  ;;  %v3702_v51 = vrot.slane %v11229_v42, 7  ;;  %v3705_v19 = vrot.slane %v3576_v39, 7  ;;  %v11748_v9 = vcombine.high %v11293_v16, %v11293_v16 }
 0x3d6   : > { %v4205_v44 = vrot.slane %v4197_v18, %v8749_v3  ;;  %v4599_v0 = vcombine.low %v4598_v46, %v11735_v15  ;;  %v4414_v56 = vcombine.low %v11052_v40, %v11449_v33  ;;  %v4981_v18 = vcombine.low %v11330_v54, %v11741_v1 }
 0x3d7   : > { %8244 = vrot.lane.b32.xlu0 %v8243_v43, %s14307_s15  ;;  %v11755_v53 = vsel %vm9524_vm13, %v3701_v58, %v3702_v51  ;;  %v3704_v61 = vrot.slane %v3702_v51, 2  ;;  %v3989_v60 = vcombine.low %v11293_v16, %v11748_v9  ;;  %v7256_v58 = vrot.slane %v11293_v16, 9 }
 0x3d8   : > { %v5142_v46 = vcombine.low %v4195_v48, %v4205_v44  ;;  %v11765_v40 = vrot.slane %v4414_v56, %v8749_v3  ;;  %v4988_v43 = vrot.slane %v4981_v18, %v8749_v3  ;;  %v3709_v51 = vrot.slane %v11748_v9, 7 }
 0x3d9   : > { %v11769_v33 = vsel %vm9524_vm13, %v3704_v61, %v3705_v19  ;;  %v11777_v12 = vrot.slane %v3989_v60, %v8749_v3  ;;  %v4600_v18 = vcombine.low %v11132_v7, %v11523_v8  ;;  %v11805_v8 = vcombine.high %v11346_v31, %v11346_v31 }
 0x3da   : > { %14375 = vst [vmem:[#allocation126_spill] sm:$0xff] %v11765_v40  ;;  %v8233_v48 = vpack.i.bf16 %v4599_v0, %v5142_v46  ;;  %v4198_v52 = vcombine.low %v11755_v53, %v11769_v33  ;;  %v4430_v56 = vcombine.low %v11765_v40, %v11735_v15  ;;  %v4989_v5 = vcombine.low %v11695_v32, %v4988_v43 }
 0x3db   : > { %14376 = vst [vmem:[#allocation111_spill] sm:$0xff] %v11777_v12  ;;  %v11784_v19 = vsel %vm9524_vm13, %v7256_v58, %v3709_v51  ;;  %v3711_v61 = vrot.slane %v3709_v51, 2  ;;  %v5061_v46 = vcombine.low %v11680_v22, %v11777_v12  ;;  %v14377_v58 = vrot.slane %v11307_v59, 7 }
 0x3dc   : > { %8234 = vrot.lane.b32.xlu1 %v8233_v48, %s14090_s29  ;;  %v4212_v0 = vrot.slane %v4198_v52, %v8749_v3  ;;  %v4607_v7 = vrot.slane %v4600_v18, %v8749_v3  ;;  %v4023_v52 = vcombine.low %v11416_v26, %v11419_v30  ;;  %v4448_v15 = vcombine.low %v11205_v17, %v11226_v41 }
 0x3dd   : > { %v11800_v51 = vsel %vm9524_vm13, %v3711_v61, %v14377_v58  ;;  %v8238_v60 = vpack.i.bf16 %v4430_v56, %v5061_v46  ;;  %v4007_v18 = vcombine.low %v11805_v8, %v11402_v23  ;;  %v4449_v40 = vcombine.low %v11229_v42, %v3576_v39 }
 0x3de   : > { %v4213_v48 = vcombine.low %v4205_v44, %v4212_v0  ;;  %v4214_v43 = vcombine.low %v11784_v19, %v11800_v51  ;;  %v4608_v61 = vcombine.low %v11702_v14, %v4607_v7  ;;  %v11817_v58 = vrot.slane %v4023_v52, %v8749_v3 }
 0x3df   : > { %v11825_v56 = vrot.slane %v4448_v15, %v8749_v3  ;;  %v11829_v41 = vcombine.high %v11419_v30, %v11419_v30  ;;  %v11832_v17 = vrot.slane %v4007_v18, %v8749_v3  ;;  %v11835_v46 = vrot.slane %v4449_v40, %v8749_v3 }
 0x3e0   : > { %14378 = vst [vmem:[#allocation97_spill] sm:$0xff] %v11817_v58  ;;  %v8248_v32 = vpack.i.bf16 %v4213_v48, %v4989_v5  ;;  %8239 = vrot.lane.b32.xlu1 %v8238_v60, %s14307_s15  ;;  %v11822_v44 = vrot.slane %v4214_v43, %v8749_v3  ;;  %v3725_v5 = vrot.slane %v11805_v8, 7  ;;  %v3731_v39 = vrot.slane %v11416_v26, 7 }
 0x3e1   : > { %14379 = vst [vmem:[#allocation86_spill] sm:$0xff] %v11825_v56  ;;  %14380 = vst [vmem:[#allocation100_spill] sm:$0xff] %v11832_v17  ;;  %v3734_v15 = vrot.slane %v11419_v30, 7  ;;  %v3737_v43 = vrot.slane %v11829_v41, 7  ;;  %v4465_v7 = vcombine.low %v11748_v9, %v11307_v59  ;;  %v4464_v40 = vcombine.low %v11825_v56, %v11835_v46 }
 0x3e2   : > { %14381 = vst [vmem:[#allocation96_spill] sm:$0xff] %v11835_v46  ;;  %8249 = vrot.lane.b32.xlu0 %v8248_v32, %s14097_s16  ;;  %v5143_v60 = vcombine.low %v4212_v0, %v11822_v44  ;;  %v4990_v48 = vcombine.low %v11832_v17, %v11817_v58  ;;  %v3727_v18 = vrot.slane %v3725_v5, 2  ;;  %v11854_v0 = vsel %vm9524_vm13, %v11432_v38, %v3731_v39 }
 0x3e3   : > { %14382 = vst [vmem:[#allocation95_spill] sm:$0xff] %v11854_v0  ;;  %v3733_v14 = vrot.slane %v3731_v39, 2  ;;  %v3736_v12 = vrot.slane %v3734_v15, 2  ;;  %v14383_v9 = vrot.slane %v11402_v23, 7  ;;  %v4466_v25 = vcombine.low %v11321_v28, %v11330_v54 }
 0x3e4   : > { %v8253_v32 = vpack.i.bf16 %v4608_v61, %v5143_v60  ;;  %v8258_v22 = vpack.i.bf16 %v4464_v40, %v4990_v48  ;;  %v11865_v58 = vrot.slane %v4465_v7, %v8749_v3  ;;  %v14387_v60 = vrot.slane %v11307_v59, 7 }
 0x3e5   : > { %v11860_v52 = vsel %vm9524_vm13, %v3727_v18, %v14383_v9  ;;  %v11870_v38 = vsel %vm9524_vm13, %v3733_v14, %v3734_v15  ;;  %v11874_v61 = vsel %vm9524_vm13, %v3736_v12, %v3737_v43  ;;  %v11884_v18 = vrot.slane %v4466_v25, %v8749_v3 }
 0x3e6   : > { %14384 = vst [vmem:[#allocation99_spill] sm:$0xff] %v11860_v52  ;;  %14385 = vst [vmem:[#allocation120_spill] sm:$0xff] %v11865_v58  ;;  %8254 = vrot.lane.b32.xlu0 %v8253_v32, %s14090_s29  ;;  %v4232_v39 = vcombine.low %v11860_v52, %v11854_v0  ;;  %v3714_v40 = vrot.slane %v14387_v60, 2  ;;  %8259 = vrot.lane.b32.xlu1 %v8258_v22, %s14307_s15  ;;  %v4248_v7 = vcombine.low %v11870_v38, %v11874_v61 }
 0x3e7   : > { %14386 = vst [vmem:[#allocation101_spill] sm:$0xff] %v11870_v38  ;;  %14388 = vst [vmem:[#allocation102_spill] sm:$0xff] %v11884_v18  ;;  %v3715_v12 = vrot.slane %v11321_v28, 7  ;;  %v3718_v43 = vrot.slane %v11330_v54, 7  ;;  %v11893_v59 = vcombine.high %v11461_v21, %v11461_v21  ;;  %v11897_v22 = vcombine.high %v11478_v4, %v11478_v4 }
 0x3e8   : > { %v4246_v15 = vrot.slane %v4232_v39, %v8749_v3  ;;  %v11900_v25 = vrot.slane %v4248_v7, %v8749_v3  ;;  %v4481_v32 = vcombine.low %v11865_v58, %v11884_v18  ;;  %v14390_v38 = vrot.slane %v11741_v1, 7 }
 0x3e9   : > { %v11906_v28 = vsel %vm9524_vm13, %v3714_v40, %v3715_v12  ;;  %v3717_v9 = vrot.slane %v3715_v12, 2  ;;  %v4992_v60 = vcombine.low %v11478_v4, %v11897_v22  ;;  %v5063_v14 = vcombine.low %v11461_v21, %v11893_v59 }
 0x3ea   : > { %14389 = vst [vmem:[#allocation115_spill] sm:$0xff] %v11906_v28  ;;  %v3720_v17 = vrot.slane %v3718_v43, 2  ;;  %v5145_v7 = vcombine.low %v4246_v15, %v11900_v25  ;;  %v7257_v40 = vrot.slane %v11346_v31, 9  ;;  %v4609_v12 = vcombine.low %v11229_v42, %v11293_v16 }
 0x3eb   : > { %v11917_v18 = vsel %vm9524_vm13, %v3717_v9, %v3718_v43  ;;  %v5006_v46 = vrot.slane %v4992_v60, %v8749_v3  ;;  %v5070_v58 = vrot.slane %v5063_v14, %v8749_v3  ;;  %v3786_v14 = vcombine.high %v11585_v13, %v11585_v13 }
 0x3ec   : > { %v4215_v39 = vcombine.low %v11906_v28, %v11917_v18  ;;  %v11930_v0 = vsel %vm9524_vm13, %v3720_v17, %v14390_v38  ;;  %v8273_v43 = vpack.i.bf16 %v4481_v32, %v5145_v7  ;;  %v11934_v9 = vsel %vm9524_vm13, %v7257_v40, %v3725_v5 }
 0x3ed   : > { %v4616_v42 = vrot.slane %v4609_v12, %v8749_v3  ;;  %v5071_v28 = vcombine.low %v5070_v58, %v5006_v46  ;;  %v4231_v1 = vcombine.low %v11930_v0, %v11934_v9  ;;  %v7269_v5 = vcombine.high %v11419_v30, %v11461_v21 }
 0x3ee   : > { %v4229_v60 = vrot.slane %v4215_v39, %v8749_v3  ;;  %8274 = vrot.lane.b32.xlu0 %v8273_v43, %s14090_s29  ;;  %v7264_v39 = vcombine.high %v11330_v54, %v11346_v31  ;;  %v4483_v12 = vcombine.low %v11402_v23, %v11416_v26  ;;  %v5072_v16 = vcombine.low %v11572_v45, %v11585_v13 }
 0x3ef   : > { %v4617_v38 = vcombine.low %v11825_v56, %v4616_v42  ;;  %v8278_v7 = vpack.i.bf16 %v4481_v32, %v5071_v28  ;;  %v4239_v40 = vrot.slane %v4231_v1, %v8749_v3  ;;  %v4999_v43 = vrot.slane %v7269_v5, %v8749_v3 }
 0x3f0   : > { %v4230_v58 = vcombine.low %v11822_v44, %v4229_v60  ;;  %v3805_v42 = vrot.slane %v3786_v14, 7  ;;  %v11958_v17 = vrot.slane %v7264_v39, %v8749_v3  ;;  %v11963_v44 = vrot.slane %v4483_v12, %v8749_v3 }
 0x3f1   : > { %v5144_v52 = vcombine.low %v4229_v60, %v4239_v40  ;;  %v4247_v54 = vcombine.low %v4239_v40, %v4246_v15  ;;  %v5007_v32 = vcombine.low %v4999_v43, %v5006_v46  ;;  %v5073_v23 = vcombine.low %v3786_v14, %v11601_v11 }
 0x3f2   : > { %v8263_v56 = vpack.i.bf16 %v4230_v58, %v4990_v48  ;;  %8279 = vrot.lane.b32.xlu0 %v8278_v7, %s14307_s15  ;;  %v5080_v26 = vrot.slane %v5072_v16, %v8749_v3  ;;  %v3762_v28 = vcombine.high %v11572_v45, %v11572_v45  ;;  %v4498_v48 = vcombine.low %v11958_v17, %v11963_v44 }
 0x3f3   : > { %v8268_v1 = vpack.i.bf16 %v4617_v38, %v5144_v52  ;;  %v3774_v15 = vrot.slane %v11572_v45, 7  ;;  %v14391_v60 = vrot.slane %v11585_v13, 9  ;;  %v8283_v5 = vpack.i.bf16 %v4247_v54, %v5007_v32 }
 0x3f4   : > { %8264 = vrot.lane.b32.xlu1 %v8263_v56, %s14097_s16  ;;  %v5087_v14 = vrot.slane %v5073_v23, %v8749_v3  ;;  %v3777_v16 = vrot.slane %v3762_v28, 7  ;;  %v3807_v39 = vrot.slane %v3805_v42, 2  ;;  %v3811_v7 = vrot.slane %v11619_v10, 7 }
 0x3f5   : > { %v3806_v46 = vsel %vm9524_vm13, %v14391_v60, %v3805_v42  ;;  %v3776_v58 = vrot.slane %v3774_v15, 2  ;;  %v4627_v56 = vcombine.low %v11419_v30, %v11461_v21  ;;  %v4628_v52 = vcombine.low %v11893_v59, %v11478_v4 }
 0x3f6   : > { %8284 = vrot.lane.b32.xlu0 %v8283_v5, %s14097_s16  ;;  %v5088_v38 = vcombine.low %v5080_v26, %v5087_v14  ;;  %v14392_v40 = vrot.slane %v11601_v11, 7  ;;  %v7258_v43 = vrot.slane %v11461_v21, 9  ;;  %v3765_v42 = vrot.slane %v11893_v59, 7 }
 0x3f7   : > { %v11994_v54 = vsel %vm9524_vm13, %v3776_v58, %v3777_v16  ;;  %v3812_v32 = vsel %vm9524_vm13, %v11638_v50, %v3811_v7  ;;  %v4635_v23 = vrot.slane %v4627_v56, %v8749_v3  ;;  %v12001_v26 = vrot.slane %v4628_v52, %v8749_v3 }
 0x3f8   : > { %v3809_v12 = vsel %vm9524_vm13, %v3807_v39, %v14392_v40  ;;  %8269 = vrot.lane.b32.xlu1 %v8268_v1, %s14090_s29  ;;  %14393 = vst [vmem:[#allocation104_spill] sm:$0xff] %v11994_v54  ;;  %v8288_v60 = vpack.i.bf16 %v4498_v48, %v5088_v38  ;;  %v5163_v21 = vcombine.low %v11994_v54, %v3806_v46  ;;  %v3767_v14 = vrot.slane %v3765_v42, 2 }
 0x3f9   : > { %v5164_v5 = vcombine.low %v3809_v12, %v3812_v32  ;;  %v12006_v59 = vsel %vm9524_vm13, %v7258_v43, %v3765_v42  ;;  %v4643_v1 = vcombine.low %v4635_v23, %v12001_v26  ;;  %v14394_v16 = vrot.slane %v11478_v4, 7 }
 0x3fa   : > { %v3771_v50 = vrot.slane %v11897_v22, 7  ;;  %v5171_v58 = vrot.slane %v5163_v21, %v8749_v3  ;;  %v4618_v48 = vcombine.low %v11346_v31, %v11805_v8  ;;  %v4499_v43 = vcombine.low %v11419_v30, %v11829_v41 }
 0x3fb   : > { %v3770_v39 = vrot.slane %v14394_v16, 2  ;;  %v5178_v56 = vrot.slane %v5164_v5, %v8749_v3  ;;  %v14395_v52 = vmov %v14394_v16  ;;  %v5008_v30 = vcombine.low %v11572_v45, %v3762_v28  ;;  %v5358_v16 = vld [vmem:[%s13669_s5 + $0x88] sm:$0xff] }
 0x3fc   : > { %8289 = vrot.lane.b32.xlu1 %v8288_v60, %s14307_s15  ;;  %v12023_v38 = vsel %vm9524_vm13, %v3767_v14, %v14395_v52  ;;  %v3773_v12 = vrot.slane %v3771_v50, 2  ;;  %v4625_v8 = vrot.slane %v4618_v48, %v8749_v3  ;;  %v12041_v23 = vrot.slane %v4499_v43, %v8749_v3  ;;  %v5342_v48 = vld [vmem:[%s13669_s5 + $0x8] sm:$0xff] }
 0x3fd   : > { %v12027_v40 = vsel %vm9524_vm13, %v3770_v39, %v3771_v50  ;;  %v5179_v31 = vcombine.low %v5171_v58, %v5178_v56  ;;  %v5146_v4 = vcombine.low %v12006_v59, %v12023_v38  ;;  %v5089_v60 = vcombine.low %v11619_v10, %v11622_v34  ;;  %v12057_v39 = vpop.permute.xlu1 %8124  ;;  %v5341_v56 = vld [vmem:[%s13669_s5] sm:$0xff] }
 0x3fe   : > { %v12038_v32 = vsel %vm9524_vm13, %v3773_v12, %v3774_v15  ;;  %v4626_v21 = vcombine.low %v4625_v8, %v11963_v44  ;;  %v5357_v15 = vld [vmem:[%s13669_s5 + $0x80] sm:$0xff]  ;;  %v5015_v50 = vrot.slane %v5008_v30, %v8749_v3  ;;  %v3813_v58 = vrot.slane %v3811_v7, 2  ;;  %v5359_v8 = vld [vmem:[%s13669_s5 + $0x90] sm:$0xff] }
 0x3ff   : > { %14396 = vst [vmem:[#allocation112_spill] sm:$0xff] %v12038_v32  ;;  %v8303_v41 = vpack.i.bf16 %v4643_v1, %v5179_v31  ;;  %v5147_v14 = vcombine.low %v12027_v40, %v12038_v32  ;;  %v5154_v28 = vrot.slane %v5146_v4, %v8749_v3  ;;  %v5096_v1 = vrot.slane %v5089_v60, %v8749_v3  ;;  %v5360_v4 = vld [vmem:[%s13669_s5 + $0x98] sm:$0xff] }
 0x400   : > { %v14397_v12 = vrot.slane %v11622_v34, 7  ;;  %v3817_v31 = vrot.slane %v11634_v24, 7  ;;  %v4644_v7 = vcombine.low %v11897_v22, %v11572_v45  ;;  %v8298_v60 = vpack.i.bf16 %v11900_v25, %v5015_v50  ;;  %v5343_v22 = vld [vmem:[%s13669_s5 + $0x10] sm:$0xff] }
 0x401   : > { %8304 = vrot.lane.b32.xlu0 %v8303_v41, %s14090_s29  ;;  %v5161_v52 = vrot.slane %v5147_v14, %v8749_v3  ;;  %v7708_v14 = vpack.c.bf16 %v5358_v16, %v5357_v15  ;;  %v8308_v42 = vpack.i.bf16 %v12041_v23, %v5096_v1  ;;  %v7710_v50 = vpack.c.bf16 %v5342_v48, %v5341_v56  ;;  %v5362_v15 = vld [vmem:[%s13669_s5 + $0xa8] sm:$0xff]  ;;  %v12101_v16 = vpop.permute.xlu0 %8129  ;;  %v14425_v24 = vld [vmem:[#allocation74_spill] sm:$0xff] }
 0x402   : > { %v3816_v43 = vrot.slane %v14397_v12, 2  ;;  %v14398_v30 = vmov %v14397_v12  ;;  %v5344_v12 = vld [vmem:[%s13669_s5 + $0x18] sm:$0xff] }
 0x403   : > { %v3815_v41 = vsel %vm9524_vm13, %v3813_v58, %v14398_v30  ;;  %v5162_v5 = vcombine.low %v5154_v28, %v5161_v52  ;;  %v5361_v58 = vld [vmem:[%s13669_s5 + $0xa0] sm:$0xff]  ;;  %v12103_v30 = vpop.permute.xlu1 %8139  ;;  %7709 = vmatprep.subr.bf16.mxu0 %v7708_v14  ;;  %v7712_v28 = vpack.c.bf16 %v5360_v4, %v5359_v8  ;;  %v7714_v56 = vpack.c.bf16 %v5344_v12, %v5343_v22  ;;  %v5347_v22 = vld [vmem:[%s13669_s5 + $0x30] sm:$0xff]  ;;  %v5348_v12 = vld [vmem:[%s13669_s5 + $0x38] sm:$0xff] }
 0x404   : > { %v3818_v25 = vsel %vm9524_vm13, %v3816_v43, %v3817_v31  ;;  %7711 = vmatpush3.bf16.msra.mxu0 %v7710_v50  ;;  %v7716_v48 = vpack.c.bf16 %v5362_v15, %v5361_v58  ;;  %v5345_v43 = vld [vmem:[%s13669_s5 + $0x20] sm:$0xff]  ;;  %v5346_v31 = vld [vmem:[%s13669_s5 + $0x28] sm:$0xff]  ;;  %v8126_v15 = vunpack.i.l.bf16 %v12057_v39 }
 0x405   : > { %v8293_v52 = vpack.i.bf16 %v4626_v21, %v5162_v5  ;;  %8309 = vrot.lane.b32.xlu0 %v8308_v42, %s14307_s15  ;;  %v5180_v1 = vcombine.low %v3815_v41, %v3818_v25  ;;  %7713 = vmatprep.subr.bf16.mxu0 %v7712_v28  ;;  %v5363_v21 = vld [vmem:[%s13669_s5 + $0xb0] sm:$0xff]  ;;  %v5364_v42 = vld [vmem:[%s13669_s5 + $0xb8] sm:$0xff]  ;;  %v7718_v8 = vpack.c.bf16 %v5346_v31, %v5345_v43  ;;  %v12120_v4 = vpop.permute.xlu0 %8134  ;;  %v5365_v50 = vld [vmem:[%s13669_s5 + $0xc0] sm:$0xff] }
 0x406   : > { %v7720_v14 = vpack.c.bf16 %v5364_v42, %v5363_v21  ;;  %v12132_v25 = vrot.slane %v4644_v7, %v8749_v3  ;;  %v5366_v58 = vld [vmem:[%s13669_s5 + $0xc8] sm:$0xff]  ;;  %v14400_v7 = vld [vmem:[#allocation46_spill] sm:$0xff]  ;;  %v14402_v43 = vcombine.low %v11013_v20, %v11157_v57  ;;  %v8131_v21 = vunpack.i.l.bf16 %v12101_v16 }
 0x407   : > { %8294 = vrot.lane.b32.xlu1 %v8293_v52, %s14090_s29  ;;  %v5187_v5 = vrot.slane %v5180_v1, %v8749_v3  ;;  %v7722_v52 = vpack.c.bf16 %v5348_v12, %v5347_v22  ;;  %v7724_v42 = vpack.c.bf16 %v5366_v58, %v5365_v50  ;;  %v14403_v22 = vcombine.low %v11170_v49, %v11163_v35  ;;  %v14404_v20 = vld [vmem:[#allocation38_spill] sm:$0xff]  ;;  %v5368_v58 = vld [vmem:[%s13669_s5 + $0xd8] sm:$0xff] }
 0x408   : > { %7715 = vmatpush3.bf16.msra.mxu0 %v7714_v56  ;;  %v4706_v31 = vrot.slane %v14402_v43, %v8749_v3  ;;  %v14405_v57 = vcombine.low %v11183_v2, %v14404_v20  ;;  %v5367_v50 = vld [vmem:[%s13669_s5 + $0xd0] sm:$0xff]  ;;  %v14407_v2 = vld [vmem:[#allocation52_spill] sm:$0xff] }
 0x409   : > { %7717 = vmatprep.subr.bf16.mxu0 %v7716_v48  ;;  %v8313_v28 = vpack.i.bf16 %v12132_v25, %v5187_v5  ;;  %v5349_v5 = vld [vmem:[%s13669_s5 + $0x40] sm:$0xff]  ;;  %v12163_v12 = vrot.slane %v14403_v22, %v8749_v3 }
 0x40a   : > { %v14410_v22 = vld [vmem:[#allocation48_spill] sm:$0xff] }
 0x40b   : > { %8299 = vrot.lane.b32.xlu1 %v8298_v60, %s14097_s16  ;;  %v14399_v60 = vld [vmem:[#allocation44_spill] sm:$0xff] }
 0x40c   : > { %v12122_v41 = vpop.permute.xlu1 %8144  ;;  %7719 = vmatpush3.bf16.msra.mxu0 %v7718_v8  ;;  %v14401_v56 = vcombine.low %v14399_v60, %v14400_v7  ;;  %v5350_v8 = vld [vmem:[%s13669_s5 + $0x48] sm:$0xff]  ;;  %v12178_v60 = vpop.permute.xlu0 %8154  ;;  %v14406_v7 = vld [vmem:[#allocation90_spill] sm:$0xff] }
 0x40d   : > { %7721 = vmatprep.subr.bf16.mxu0 %v7720_v14  ;;  %v12169_v14 = vrot.slane %v14405_v57, %v8749_v3  ;;  %v7726_v36 = vpack.c.bf16 %v5350_v8, %v5349_v5  ;;  %v14416_v8 = vld [vmem:[#allocation47_spill] sm:$0xff] }
 0x40e   : > { %v4699_v48 = vrot.slane %v14401_v56, %v8749_v3  ;;  %v14408_v56 = vcombine.low %v14406_v7, %v14407_v2 }
 0x40f   : > { %8314 = vrot.lane.b32.xlu1 %v8313_v28, %s14090_s29  ;;  %v14409_v28 = vld [vmem:[#allocation45_spill] sm:$0xff] }
 0x410   : > { %v12142_v1 = vpop.permute.xlu1 %8149  ;;  %v4707_v49 = vcombine.low %v4699_v48, %v4706_v31  ;;  %v12185_v43 = vrot.slane %v14408_v56, %v8749_v3  ;;  %v14411_v20 = vcombine.low %v14409_v28, %v14410_v22  ;;  %7723 = vmatpush3.bf16.msra.mxu0 %v7722_v52  ;;  %v14412_v31 = vld [vmem:[#allocation66_spill] sm:$0xff]  ;;  %v14414_v56 = vld [vmem:[#allocation32_spill] sm:$0xff]  ;;  %v14415_v28 = vld [vmem:[#allocation21_spill] sm:$0xff] }
 0x411   : > { %v8151_v35 = vunpack.i.l.bf16 %v12142_v1  ;;  %v14413_v7 = vcombine.low %v11378_v62, %v14412_v31  ;;  %v3820_v22 = vcombine.low %v14415_v28, %v14414_v56  ;;  %7725 = vmatprep.subr.bf16.mxu0 %v7724_v42  ;;  %v5351_v52 = vld [vmem:[%s13669_s5 + $0x50] sm:$0xff]  ;;  %v14417_v62 = vld [vmem:[#allocation67_spill] sm:$0xff]  ;;  %v5369_v42 = vld [vmem:[%s13669_s5 + $0xe0] sm:$0xff] }
 0x412   : > { %v12191_v57 = vrot.slane %v14411_v20, %v8749_v3  ;;  %v5302_v34 = vsel %vm408_vm1, %v4707_v49, %v8126_v15  ;;  %v7728_v20 = vpack.c.bf16 %v5368_v58, %v5367_v50  ;;  %v5352_v15 = vld [vmem:[%s13669_s5 + $0x58] sm:$0xff]  ;;  %v14418_v49 = vcombine.low %v14416_v8, %v14417_v62  ;;  %v5370_v50 = vld [vmem:[%s13669_s5 + $0xe8] sm:$0xff]  ;;  %v14419_v56 = vld [vmem:[#allocation98_spill] sm:$0xff] }
 0x413   : > { %v12202_v2 = vrot.slane %v14413_v7, %v8749_v3  ;;  %v5315_v5 = vsel %vm412_vm3, %v5302_v34, %v8131_v21  ;;  %v5353_v34 = vld [vmem:[%s13669_s5 + $0x60] sm:$0xff]  ;;  %v5354_v21 = vld [vmem:[%s13669_s5 + $0x68] sm:$0xff]  ;;  %v3834_v32 = vrot.slane %v3820_v22, %v8749_v3 }
 0x414   : > { %v12217_v31 = vrot.slane %v14418_v49, %v8749_v3  ;;  %v5328_v58 = vsel %vm416_vm5, %v5315_v5, %v8151_v35  ;;  %v14420_v28 = vld [vmem:[#allocation40_spill] sm:$0xff]  ;;  %7727 = vmatpush3.bf16.msra.mxu0 %v7726_v36  ;;  %v7730_v49 = vpack.c.bf16 %v5352_v15, %v5351_v52  ;;  %v12238_v35 = vpop.permute.xlu0 %8159  ;;  %v14422_v5 = vld [vmem:[#allocation65_spill] sm:$0xff]  ;;  %v8132_v36 = vunpack.i.h.bf16 %v12101_v16 }
 0x415   : > { %5474 = vmatprep.mubr.f32.mxu0 %v5328_v58  ;;  %v14421_v8 = vcombine.low %v14419_v56, %v14420_v28  ;;  %v14423_v48 = vcombine.low %v14422_v5, %v11406_v55  ;;  %v14424_v58 = vld [vmem:[#allocation58_spill] sm:$0xff]  ;;  %v8127_v56 = vunpack.i.h.bf16 %v12057_v39  ;;  %7729 = vmatprep.subr.bf16.mxu0 %v7728_v20  ;;  %v7732_v52 = vpack.c.bf16 %v5370_v50, %v5369_v42  ;;  %v14428_v22 = vld [vmem:[#allocation69_spill] sm:$0xff]  ;;  %v14430_v16 = vld [vmem:[#allocation80_spill] sm:$0xff] }
 0x416   : > { %v14426_v54 = vcombine.low %v14424_v58, %v14425_v24  ;;  %v5371_v55 = vld [vmem:[%s13669_s5 + $0xf0] sm:$0xff]  ;;  %v7734_v15 = vpack.c.bf16 %v5354_v21, %v5353_v34  ;;  %v14431_v20 = vld [vmem:[#allocation79_spill] sm:$0xff]  ;;  %v14436_v21 = vcombine.low %v11609_v47, %v11645_v37  ;;  %v14439_v47 = vld [vmem:[#allocation128_spill] sm:$0xff] }
 0x417   : > { %v3827_v62 = vrot.slane %v14421_v8, %v8749_v3  ;;  %v12244_v46 = vrot.slane %v14423_v48, %v8749_v3  ;;  %v5372_v48 = vld [vmem:[%s13669_s5 + $0xf8] sm:$0xff]  ;;  %v14432_v42 = vcombine.low %v14430_v16, %v14431_v20  ;;  %v14433_v8 = vld [vmem:[#allocation81_spill] sm:$0xff]  ;;  %v14440_v37 = vcombine.low %v14439_v47, %v11755_v53 }
 0x418   : > { %v12250_v7 = vrot.slane %v14426_v54, %v8749_v3  ;;  %v14427_v54 = vld [vmem:[#allocation72_spill] sm:$0xff]  ;;  %v14434_v5 = vld [vmem:[#allocation91_spill] sm:$0xff]  ;;  %v12285_v24 = vrot.slane %v14436_v21, %v8749_v3  ;;  %7731 = vmatpush3.bf16.msra.mxu0 %v7730_v49  ;;  %v7736_v20 = vpack.c.bf16 %v5372_v48, %v5371_v55  ;;  %v12336_v21 = vpop.permute.xlu0 %8164 }
 0x419   : > { %v14429_v39 = vcombine.low %v14427_v54, %v14428_v22  ;;  %v12273_v50 = vrot.slane %v14432_v42, %v8749_v3  ;;  %v14435_v58 = vcombine.low %v14433_v8, %v14434_v5  ;;  %v14437_v54 = vcombine.low %v11655_v29, %v11663_v63  ;;  %7733 = vmatprep.subr.bf16.mxu0 %v7732_v52 }
 0x41a   : > { %v12305_v8 = vrot.slane %v14440_v37, %v8749_v3  ;;  %v14441_v29 = vcombine.low %v11769_v33, %v11784_v19  ;;  %v14442_v33 = vld [vmem:[#allocation115_spill] sm:$0xff]  ;;  %v14444_v52 = vcombine.low %v11917_v18, %v11930_v0  ;;  %v3835_v5 = vcombine.low %v3827_v62, %v3834_v32  ;;  %v14448_v32 = vld [vmem:[#allocation101_spill] sm:$0xff] }
 0x41b   : > { %v12267_v28 = vrot.slane %v14429_v39, %v8749_v3  ;;  %v12279_v34 = vrot.slane %v14435_v58, %v8749_v3  ;;  %v12291_v22 = vrot.slane %v14437_v54, %v8749_v3  ;;  %v14438_v39 = vcombine.low %v11671_v6, %v11711_v27  ;;  %v5355_v6 = vld [vmem:[%s13669_s5 + $0x70] sm:$0xff]  ;;  %v5356_v27 = vld [vmem:[%s13669_s5 + $0x78] sm:$0xff]  ;;  %v12338_v54 = vpop.permute.xlu1 %8169 }
 0x41c   : > { %v12311_v63 = vrot.slane %v14441_v29, %v8749_v3  ;;  %v14443_v19 = vcombine.low %v11800_v51, %v14442_v33  ;;  %v12333_v48 = vrot.slane %v14444_v52, %v8749_v3  ;;  %v8136_v58 = vunpack.i.l.bf16 %v12120_v4  ;;  %v14445_v51 = vld [vmem:[#allocation99_spill] sm:$0xff]  ;;  %7735 = vmatpush3.bf16.msra.mxu0 %v7734_v15 }
 0x41d   : > { %v12297_v16 = vrot.slane %v14438_v39, %v8749_v3  ;;  %v4792_v42 = vcombine.low %v12267_v28, %v12273_v50  ;;  %v4809_v53 = vcombine.low %v12279_v34, %v12285_v24  ;;  %v14446_v47 = vcombine.low %v11934_v9, %v14445_v51  ;;  %v14447_v18 = vld [vmem:[#allocation95_spill] sm:$0xff]  ;;  %7737 = vmatprep.subr.bf16.mxu0 %v7736_v20 }
 0x41e   : > { %v12327_v55 = vrot.slane %v14443_v19, %v8749_v3  ;;  %v4843_v39 = vcombine.low %v12305_v8, %v12311_v63  ;;  %v14449_v62 = vcombine.low %v14447_v18, %v14448_v32  ;;  %v14450_v33 = vcombine.low %v11874_v61, %v12006_v59  ;;  %v5373_v61 = vld [vmem:[%s13669_s5 + $0x100] sm:$0xff]  ;;  %v5374_v59 = vld [vmem:[%s13669_s5 + $0x108] sm:$0xff]  ;;  %v14474_v50 = vld [vmem:[#allocation107_spill] sm:$0xff] }
 0x41f   : > { %v4826_v49 = vcombine.low %v12291_v22, %v12297_v16  ;;  %v12346_v37 = vrot.slane %v14446_v47, %v8749_v3  ;;  %v14451_v9 = vcombine.low %v12023_v38, %v12027_v40  ;;  %v8137_v51 = vunpack.i.h.bf16 %v12120_v4 }
 0x420   : > { %v4860_v0 = vcombine.low %v12327_v55, %v12333_v48  ;;  %v12354_v29 = vrot.slane %v14449_v62, %v8749_v3  ;;  %v12360_v19 = vrot.slane %v14450_v33, %v8749_v3  ;;  %v8152_v47 = vunpack.i.h.bf16 %v12142_v1  ;;  %v14455_v33 = vld [vmem:[#allocation102_spill] sm:$0xff] }
 0x421   : > { %v12366_v52 = vrot.slane %v14451_v9, %v8749_v3  ;;  %v7738_v18 = vpack.c.bf16 %v5356_v27, %v5355_v6  ;;  %v5263_v32 = vsel %vm408_vm1, %v3835_v5, %v8127_v56  ;;  %v8142_v62 = vunpack.i.h.bf16 %v12103_v30  ;;  %v14453_v6 = vld [vmem:[#allocation120_spill] sm:$0xff]  ;;  %v14457_v5 = vld [vmem:[#allocation35_spill] sm:$0xff] }
 0x422   : > { %v5276_v4 = vsel %vm412_vm3, %v5263_v32, %v8132_v36  ;;  %v8141_v1 = vunpack.i.l.bf16 %v12103_v30  ;;  %v8161_v56 = vunpack.i.l.bf16 %v12238_v35  ;;  %v14452_v15 = vcombine.low %v12163_v12, %v12169_v14  ;;  %v14454_v27 = vld [vmem:[#allocation96_spill] sm:$0xff]  ;;  %v12398_v32 = vpop.permute.xlu0 %8184  ;;  %v12400_v12 = vpop.permute.xlu1 %8174 }
 0x423   : > { %7739 = vmatpush3.bf16.msra.mxu0 %v7738_v18  ;;  %v5289_v30 = vsel %vm416_vm5, %v5276_v4, %v8152_v47  ;;  %v7741_v14 = vpack.c.bf16 %v5374_v59, %v5373_v61  ;;  %v8147_v9 = vunpack.i.h.bf16 %v12122_v41  ;;  %v8146_v40 = vunpack.i.l.bf16 %v12122_v41  ;;  %v14456_v18 = vld [vmem:[#allocation19_spill] sm:$0xff] }
 0x424   : > { %v5303_v20 = vsel %vm408_vm1, %v14452_v15, %v8136_v58  ;;  %v7270_v58 = vcombine.high %v11572_v45, %v11585_v13  ;;  %v5239_v15 = vcombine.low %v11601_v11, %v11619_v10  ;;  %v8162_v36 = vunpack.i.h.bf16 %v12238_v35  ;;  %v5375_v45 = vld [vmem:[%s13669_s5 + $0x110] sm:$0xff]  ;;  %v5376_v13 = vld [vmem:[%s13669_s5 + $0x118] sm:$0xff] }
 0x425   : > { %v14458_v47 = vcombine.low %v14456_v18, %v14457_v5  ;;  %v14459_v38 = vmov 0.0|0.0   ;;  %v8166_v11 = vunpack.i.l.bf16 %v12336_v21  ;;  %v5316_v10 = vsel %vm412_vm3, %v5303_v20, %v8141_v1 }
 0x426   : > { %7740 = vmatprep.subr.bf16.mxu0 %v14459_v38  ;;  %v12423_v41 = vrot.slane %v7270_v58, %v8749_v3  ;;  %v12426_v35 = vrot.slane %v5239_v15, %v8749_v3  ;;  %5475 = vmatmul.mubr.f32.vlgmr.msra.gmra.mrb[20].mxu0 %v5289_v30  ;;  %v5329_v61 = vsel %vm416_vm5, %v5316_v10, %v8161_v56  ;;  %v8180_v59 = vpop.permute.xlu1 %8179 }
 0x427   : > { %v5264_v4 = vsel %vm408_vm1, %v14458_v47, %v8137_v51  ;;  %v8167_v51 = vunpack.i.h.bf16 %v12336_v21  ;;  %5479 = vmatprep.mubr.f32.mxu0 %v5329_v61  ;;  %7742 = vmatpush3.bf16.msra.mxu0 %v7741_v14  ;;  %v7744_v5 = vpack.c.bf16 %v5376_v13, %v5375_v45  ;;  %v8182_v20 = vunpack.i.h.bf16 %v8180_v59  ;;  %v14461_v14 = vld [vmem:[#allocation34_spill] sm:$0xff] }
 0x428   : > { %v5254_v18 = vcombine.low %v12423_v41, %v12426_v35  ;;  %v5277_v1 = vsel %vm412_vm3, %v5264_v4, %v8142_v62  ;;  %v8181_v58 = vunpack.i.l.bf16 %v8180_v59  ;;  %v14460_v15 = vcombine.low %v12185_v43, %v12191_v57  ;;  %7743 = vmatprep.subr.bf16.mxu0 %v14459_v38  ;;  %v8190_v56 = vpop.permute.xlu0 %8189  ;;  %v14462_v45 = vld [vmem:[#allocation42_spill] sm:$0xff] }
 0x429   : > { %v5290_v21 = vsel %vm416_vm5, %v5277_v1, %v8162_v36  ;;  %v14463_v13 = vcombine.low %v14461_v14, %v14462_v45  ;;  %v8157_v62 = vunpack.i.h.bf16 %v12178_v60  ;;  %v8156_v4 = vunpack.i.l.bf16 %v12178_v60  ;;  %v14469_v45 = vld [vmem:[#allocation37_spill] sm:$0xff] }
 0x42a   : > { %v5304_v47 = vsel %vm408_vm1, %v14460_v15, %v8146_v40  ;;  %5480 = vmatmul.mubr.f32.gmra.mrb[22].mxu0 %v5290_v21  ;;  %v8172_v40 = vunpack.i.h.bf16 %v12338_v54  ;;  %v8171_v36 = vunpack.i.l.bf16 %v12338_v54  ;;  %v14464_v60 = vcombine.low %v12217_v31, %v12202_v2  ;;  %v14468_v31 = vld [vmem:[#allocation49_spill] sm:$0xff] }
 0x42b   : > { %v5317_v30 = vsel %vm412_vm3, %v5304_v47, %v8166_v11  ;;  %v5265_v10 = vsel %vm408_vm1, %v14463_v13, %v8147_v9  ;;  %7745 = vmatpush3.bf16.msra.mxu0 %v7744_v5  ;;  %v8176_v47 = vunpack.i.l.bf16 %v12400_v12  ;;  %v8177_v21 = vunpack.i.h.bf16 %v12400_v12 }
 0x42c   : > { %v5330_v43 = vsel %vm416_vm5, %v5317_v30, %v8181_v58  ;;  %v5278_v57 = vsel %vm412_vm3, %v5265_v10, %v8167_v51  ;;  %7786 = vmatprep.subr.bf16.mxu0 %v14459_v38  ;;  %v8195_v9 = vpop.permute.xlu0 %8194  ;;  %v5305_v1 = vsel %vm408_vm1, %v14464_v60, %v8156_v4  ;;  %v14465_v51 = vld [vmem:[#allocation43_spill] sm:$0xff]  ;;  %v14466_v58 = vld [vmem:[#allocation113_spill] sm:$0xff]  ;;  %v8186_v2 = vunpack.i.l.bf16 %v12398_v32 }
 0x42d   : > { %5484 = vmatprep.mubr.f32.mxu0 %v5330_v43  ;;  %v5291_v11 = vsel %vm416_vm5, %v5278_v57, %v8182_v20  ;;  %v8197_v61 = vunpack.i.h.bf16 %v8195_v9  ;;  %v8196_v59 = vunpack.i.l.bf16 %v8195_v9  ;;  %v14467_v15 = vcombine.low %v14465_v51, %v14466_v58 }
 0x42e   : > { %5485 = vmatmul.mubr.f32.gmra.mrb[24].mxu0 %v5291_v11  ;;  %v5318_v5 = vsel %vm412_vm3, %v5305_v1, %v8171_v36  ;;  %v3903_v13 = vcombine.low %v14469_v45, %v14468_v31  ;;  %v8187_v10 = vunpack.i.h.bf16 %v12398_v32  ;;  %v8191_v60 = vunpack.i.l.bf16 %v8190_v56 }
 0x42f   : > { %v5266_v54 = vsel %vm408_vm1, %v14467_v15, %v8157_v62  ;;  %v5331_v30 = vsel %vm416_vm5, %v5318_v5, %v8196_v59  ;;  %v14470_v62 = vcombine.low %v12244_v46, %v12250_v7  ;;  %v8192_v7 = vunpack.i.h.bf16 %v8190_v56 }
 0x430   : > { %v5279_v20 = vsel %vm412_vm3, %v5266_v54, %v8172_v40  ;;  %5489 = vmatprep.mubr.f32.mxu0 %v5331_v30  ;;  %v5267_v12 = vsel %vm408_vm1, %v3903_v13, %v8177_v21  ;;  %v5307_v5 = vsel %vm408_vm1, %v4792_v42, %v8191_v60  ;;  %v14472_v21 = vld [vmem:[#allocation60_spill] sm:$0xff] }
 0x431   : > { %v5292_v14 = vsel %vm416_vm5, %v5279_v20, %v8197_v61  ;;  %v5306_v4 = vsel %vm408_vm1, %v14470_v62, %v8176_v47  ;;  %v5280_v9 = vsel %vm412_vm3, %v5267_v12, %v8187_v10  ;;  %v14471_v20 = vld [vmem:[#allocation61_spill] sm:$0xff]  ;;  %v14475_v42 = vld [vmem:[#allocation64_spill] sm:$0xff] }
 0x432   : > { %5490 = vmatmul.mubr.f32.gmra.mrb[26].mxu0 %v5292_v14  ;;  %v5319_v36 = vsel %vm412_vm3, %v5306_v4, %v8186_v2  ;;  %v14473_v30 = vcombine.low %v14471_v20, %v14472_v21  ;;  %v14476_v4 = vcombine.low %v14474_v50, %v14475_v42  ;;  %v14478_v20 = vld [vmem:[#allocation125_spill] sm:$0xff] }
 0x433   : > { %v8200_v43 = vpop.permute.xlu1 %8199 }
 0x434   : > { %v8202_v57 = vunpack.i.h.bf16 %v8200_v43  ;;  %v8201_v40 = vunpack.i.l.bf16 %v8200_v43  ;;  %v5268_v14 = vsel %vm408_vm1, %v14473_v30, %v8192_v7 }
 0x436   : > { %v5332_v11 = vsel %vm416_vm5, %v5319_v36, %v8201_v40  ;;  %v5293_v61 = vsel %vm416_vm5, %v5280_v9, %v8202_v57  ;;  %v8215_v32 = vpop.permute.xlu0 %8214 }
 0x437   : > { %5494 = vmatprep.mubr.f32.mxu0 %v5332_v11  ;;  %v8217_v12 = vunpack.i.h.bf16 %v8215_v32  ;;  %v8216_v57 = vunpack.i.l.bf16 %v8215_v32 }
 0x438   : > { %5495 = vmatmul.mubr.f32.gmra.mrb[28].mxu0 %v5293_v61  ;;  %v8205_v59 = vpop.permute.xlu1 %8204 }
 0x439   : > { %v8207_v51 = vunpack.i.h.bf16 %v8205_v59  ;;  %v8206_v58 = vunpack.i.l.bf16 %v8205_v59 }
 0x43b   : > { %v5320_v2 = vsel %vm412_vm3, %v5307_v5, %v8206_v58  ;;  %v5281_v56 = vsel %vm412_vm3, %v5268_v14, %v8207_v51  ;;  %v14477_v5 = vld [vmem:[#allocation71_spill] sm:$0xff] }
 0x43c   : > { %v14479_v21 = vcombine.low %v14477_v5, %v14478_v20 }
 0x43e   : > { %v8210_v1 = vpop.permute.xlu1 %8209 }
 0x43f   : > { %v8212_v10 = vunpack.i.h.bf16 %v8210_v1  ;;  %v8211_v62 = vunpack.i.l.bf16 %v8210_v1 }
 0x440   : > { %v8220_v46 = vpop.permute.xlu0 %8219 }
 0x441   : > { %v5308_v28 = vsel %vm408_vm1, %v4809_v53, %v8211_v62  ;;  %v5269_v43 = vsel %vm408_vm1, %v14476_v4, %v8212_v10  ;;  %v8222_v60 = vunpack.i.h.bf16 %v8220_v46  ;;  %v8221_v1 = vunpack.i.l.bf16 %v8220_v46 }
 0x442   : > { %v5321_v61 = vsel %vm412_vm3, %v5308_v28, %v8216_v57  ;;  %v5282_v59 = vsel %vm412_vm3, %v5269_v43, %v8217_v12 }
 0x443   : > { %v5270_v30 = vsel %vm408_vm1, %v14479_v21, %v8222_v60 }
 0x445   : > { %v8225_v15 = vpop.permute.xlu0 %8224 }
 0x446   : > { %v8227_v54 = vunpack.i.h.bf16 %v8225_v15  ;;  %v8226_v47 = vunpack.i.l.bf16 %v8225_v15 }
 0x447   : > { %v8230_v31 = vpop.permute.xlu1 %8229 }
 0x448   : > { %v5333_v45 = vsel %vm416_vm5, %v5320_v2, %v8226_v47  ;;  %v5294_v13 = vsel %vm416_vm5, %v5281_v56, %v8227_v54  ;;  %v5309_v47 = vsel %vm408_vm1, %v4826_v49, %v8221_v1  ;;  %v8231_v22 = vunpack.i.l.bf16 %v8230_v31  ;;  %v14483_v1 = vld [vmem:[#allocation84_spill] sm:$0xff] }
 0x449   : > { %5499 = vmatprep.mubr.f32.mxu0 %v5333_v45  ;;  %v8245_v40 = vpop.permute.xlu0 %8244  ;;  %v8232_v49 = vunpack.i.h.bf16 %v8230_v31 }
 0x44a   : > { %5500 = vmatmul.mubr.f32.gmra.mrb[30].mxu0 %v5294_v13  ;;  %v8247_v10 = vunpack.i.h.bf16 %v8245_v40  ;;  %v8246_v62 = vunpack.i.l.bf16 %v8245_v40  ;;  %v5310_v43 = vsel %vm408_vm1, %v4843_v39, %v8231_v22  ;;  %v14487_v22 = vld [vmem:[#allocation92_spill] sm:$0xff] }
 0x44c   : > { %v5323_v40 = vsel %vm412_vm3, %v5310_v43, %v8246_v62 }
 0x44e   : > { %v8235_v36 = vpop.permute.xlu1 %8234 }
 0x44f   : > { %v8237_v11 = vunpack.i.h.bf16 %v8235_v36  ;;  %v8236_v9 = vunpack.i.l.bf16 %v8235_v36 }
 0x451   : > { %v5334_v7 = vsel %vm416_vm5, %v5321_v61, %v8236_v9  ;;  %v5295_v24 = vsel %vm416_vm5, %v5282_v59, %v8237_v11  ;;  %v14480_v11 = vld [vmem:[#allocation78_spill] sm:$0xff] }
 0x452   : > { %5504 = vmatprep.mubr.f32.mxu0 %v5334_v7  ;;  %v8240_v34 = vpop.permute.xlu1 %8239  ;;  %v14481_v9 = vld [vmem:[#allocation82_spill] sm:$0xff] }
 0x453   : > { %5505 = vmatmul.mubr.f32.gmra.mrb[32].mxu0 %v5295_v24  ;;  %v8242_v51 = vunpack.i.h.bf16 %v8240_v34  ;;  %v8241_v32 = vunpack.i.l.bf16 %v8240_v34  ;;  %v14482_v61 = vcombine.low %v14480_v11, %v14481_v9 }
 0x454   : > { %v8250_v53 = vpop.permute.xlu0 %8249 }
 0x455   : > { %v5322_v14 = vsel %vm412_vm3, %v5309_v47, %v8241_v32  ;;  %v5283_v2 = vsel %vm412_vm3, %v5270_v30, %v8242_v51  ;;  %v8251_v28 = vunpack.i.l.bf16 %v8250_v53  ;;  %v5271_v59 = vsel %vm408_vm1, %v14482_v61, %v8232_v49  ;;  %v14490_v61 = vld [vmem:[#allocation94_spill] sm:$0xff] }
 0x456   : > { %v8252_v31 = vunpack.i.h.bf16 %v8250_v53  ;;  %v5284_v7 = vsel %vm412_vm3, %v5271_v59, %v8247_v10  ;;  %v14484_v53 = vld [vmem:[#allocation77_spill] sm:$0xff]  ;;  %v14491_v59 = vld [vmem:[#allocation100_spill] sm:$0xff] }
 0x457   : > { %v5311_v63 = vsel %vm408_vm1, %v4860_v0, %v8251_v28  ;;  %v3988_v51 = vcombine.low %v14484_v53, %v14483_v1 }
 0x458   : > { %v8255_v58 = vpop.permute.xlu0 %8254  ;;  %v8260_v45 = vpop.permute.xlu1 %8259 }
 0x459   : > { %v8257_v15 = vunpack.i.h.bf16 %v8255_v58  ;;  %v8256_v54 = vunpack.i.l.bf16 %v8255_v58  ;;  %v8261_v50 = vunpack.i.l.bf16 %v8260_v45  ;;  %v8262_v24 = vunpack.i.h.bf16 %v8260_v45 }
 0x45b   : > { %v5335_v46 = vsel %vm416_vm5, %v5322_v14, %v8256_v54  ;;  %v5296_v56 = vsel %vm416_vm5, %v5283_v2, %v8257_v15  ;;  %v5324_v60 = vsel %vm412_vm3, %v5311_v63, %v8261_v50  ;;  %v5272_v15 = vsel %vm408_vm1, %v3988_v51, %v8252_v31  ;;  %v14496_v51 = vld [vmem:[#allocation97_spill] sm:$0xff] }
 0x45c   : > { %5509 = vmatprep.mubr.f32.mxu0 %v5335_v46  ;;  %v5285_v54 = vsel %vm412_vm3, %v5272_v15, %v8262_v24  ;;  %v14489_v50 = vcombine.low %v12360_v19, %v12366_v52  ;;  %v14492_v19 = vcombine.low %v14490_v61, %v14491_v59  ;;  %v14493_v24 = vld [vmem:[#allocation112_spill] sm:$0xff] }
 0x45d   : > { %5510 = vmatmul.mubr.f32.gmra.mrb[34].mxu0 %v5296_v56  ;;  %v14485_v56 = vcombine.low %v12346_v37, %v12354_v29 }
 0x460   : > { %v8275_v13 = vpop.permute.xlu0 %8274 }
 0x461   : > { %v8276_v12 = vunpack.i.l.bf16 %v8275_v13  ;;  %v8277_v39 = vunpack.i.h.bf16 %v8275_v13  ;;  %v14486_v13 = vld [vmem:[#allocation111_spill] sm:$0xff] }
 0x462   : > { %v14488_v49 = vcombine.low %v14486_v13, %v14487_v22  ;;  %v14503_v13 = vld [vmem:[#allocation63_spill] sm:$0xff] }
 0x463   : > { %v5337_v32 = vsel %vm416_vm5, %v5324_v60, %v8276_v12  ;;  %v5298_v55 = vsel %vm416_vm5, %v5285_v54, %v8277_v39 }
 0x464   : > { %v8280_v42 = vpop.permute.xlu0 %8279 }
 0x465   : > { %v8282_v21 = vunpack.i.h.bf16 %v8280_v42  ;;  %v8281_v30 = vunpack.i.l.bf16 %v8280_v42 }
 0x466   : > { %v8265_v16 = vpop.permute.xlu1 %8264 }
 0x467   : > { %v8267_v0 = vunpack.i.h.bf16 %v8265_v16  ;;  %v8266_v47 = vunpack.i.l.bf16 %v8265_v16 }
 0x468   : > { %v8285_v58 = vpop.permute.xlu0 %8284 }
 0x469   : > { %v8286_v5 = vunpack.i.l.bf16 %v8285_v58  ;;  %v8287_v14 = vunpack.i.h.bf16 %v8285_v58  ;;  %v5312_v45 = vsel %vm408_vm1, %v14485_v56, %v8266_v47  ;;  %v5273_v10 = vsel %vm408_vm1, %v14488_v49, %v8267_v0  ;;  %v14504_v49 = vld [vmem:[#allocation70_spill] sm:$0xff] }
 0x46a   : > { %v8270_v4 = vpop.permute.xlu1 %8269  ;;  %v5286_v43 = vsel %vm412_vm3, %v5273_v10, %v8282_v21  ;;  %v14497_v21 = vld [vmem:[#allocation57_spill] sm:$0xff] }
 0x46b   : > { %v8272_v57 = vunpack.i.h.bf16 %v8270_v4  ;;  %v8271_v36 = vunpack.i.l.bf16 %v8270_v4  ;;  %v5313_v42 = vsel %vm408_vm1, %v14489_v50, %v8286_v5  ;;  %v5325_v4 = vsel %vm412_vm3, %v5312_v45, %v8281_v30  ;;  %v14498_v30 = vld [vmem:[#allocation50_spill] sm:$0xff]  ;;  %v14502_v45 = vld [vmem:[#allocation68_spill] sm:$0xff]  ;;  %v14505_v10 = vld [vmem:[#allocation73_spill] sm:$0xff] }
 0x46c   : > { %v5274_v52 = vsel %vm408_vm1, %v14492_v19, %v8287_v14  ;;  %v14499_v14 = vcombine.low %v14497_v21, %v14498_v30  ;;  %v5229_v22 = vcombine.low %v14503_v13, %v14502_v45  ;;  %v6773_v21 = vld [vmem:[%s13671_s7 + $0x88] sm:$0xff]  ;;  %v6756_v30 = vld [vmem:[%s13671_s7] sm:$0xff]  ;;  %v6775_v45 = vld [vmem:[%s13671_s7 + $0x98] sm:$0xff] }
 0x46d   : > { %v5336_v34 = vsel %vm416_vm5, %v5323_v40, %v8271_v36  ;;  %v5297_v8 = vsel %vm416_vm5, %v5284_v7, %v8272_v57 }
 0x46e   : > { %5514 = vmatprep.mubr.f32.mxu0 %v5336_v34  ;;  %v8290_v48 = vpop.permute.xlu1 %8289  ;;  %v14494_v34 = vld [vmem:[#allocation104_spill] sm:$0xff] }
 0x46f   : > { %5515 = vmatmul.mubr.f32.gmra.mrb[36].mxu0 %v5297_v8  ;;  %v8291_v2 = vunpack.i.l.bf16 %v8290_v48  ;;  %v8292_v37 = vunpack.i.h.bf16 %v8290_v48  ;;  %v14495_v8 = vcombine.low %v14493_v24, %v14494_v34 }
 0x470   : > { %5519 = vmatprep.mubr.f32.mxu0 %v5337_v32 }
 0x471   : > { %v5326_v9 = vsel %vm412_vm3, %v5313_v42, %v8291_v2  ;;  %v4902_v63 = vrot.slane %v14495_v8, %v8749_v3  ;;  %v5287_v1 = vsel %vm412_vm3, %v5274_v52, %v8292_v37  ;;  %v14500_v2 = vld [vmem:[#allocation53_spill] sm:$0xff]  ;;  %v14508_v42 = vld [vmem:[#allocation103_spill] sm:$0xff]  ;;  %v14510_v37 = vld [vmem:[#allocation86_spill] sm:$0xff] }
 0x473   : > { %5520 = vmatmul.mubr.f32.gmra.mrb[38].mxu0 %v5298_v55  ;;  %v8305_v20 = vpop.permute.xlu0 %8304 }
 0x474   : > { %v8306_v62 = vunpack.i.l.bf16 %v8305_v20  ;;  %v8307_v36 = vunpack.i.h.bf16 %v8305_v20  ;;  %v8513_v20 = vmov 0.0  }
 0x476   : > { %v5339_v7 = vsel %vm416_vm5, %v5326_v9, %v8306_v62  ;;  %v5300_v15 = vsel %vm416_vm5, %v5287_v1, %v8307_v36  ;;  %v5230_v62 = vcombine.low %v14505_v10, %v14504_v49  ;;  %v14513_v36 = vcombine.low %v14455_v33, %v11958_v17  ;;  %v14517_v17 = vld [vmem:[#allocation93_spill] sm:$0xff]  ;;  %v6758_v49 = vld [vmem:[%s13671_s7 + $0x10] sm:$0xff]  ;;  %v6759_v10 = vld [vmem:[%s13671_s7 + $0x18] sm:$0xff] }
 0x477   : > { %v8310_v29 = vpop.permute.xlu0 %8309 }
 0x478   : > { %v8312_v39 = vunpack.i.h.bf16 %v8310_v29  ;;  %v8311_v60 = vunpack.i.l.bf16 %v8310_v29  ;;  %v14511_v29 = vld [vmem:[#allocation88_spill] sm:$0xff] }
 0x479   : > { %v8295_v46 = vpop.permute.xlu1 %8294 }
 0x47a   : > { %v8297_v28 = vunpack.i.h.bf16 %v8295_v46  ;;  %v8296_v16 = vunpack.i.l.bf16 %v8295_v46  ;;  %v14501_v46 = vld [vmem:[#allocation55_spill] sm:$0xff] }
 0x47b   : > { %v5228_v56 = vcombine.low %v14501_v46, %v14500_v2  ;;  %v6757_v46 = vld [vmem:[%s13671_s7 + $0x8] sm:$0xff] }
 0x47c   : > { %v5338_v12 = vsel %vm416_vm5, %v5325_v4, %v8296_v16  ;;  %v5299_v57 = vsel %vm416_vm5, %v5286_v43, %v8297_v28  ;;  %v14506_v28 = vld [vmem:[#allocation126_spill] sm:$0xff]  ;;  %v14507_v16 = vld [vmem:[#allocation83_spill] sm:$0xff]  ;;  %v7748_v13 = vpack.c.bf16 %v6757_v46, %v6756_v30 }
 0x47d   : > { %v8300_v11 = vpop.permute.xlu1 %8299  ;;  %5524 = vmatprep.mubr.f32.mxu0 %v5338_v12  ;;  %v5231_v50 = vcombine.low %v14507_v16, %v14506_v28  ;;  %v14509_v4 = vld [vmem:[#allocation127_spill] sm:$0xff]  ;;  %v5233_v12 = vcombine.low %v14511_v29, %v14510_v37  ;;  %v6777_v16 = vld [vmem:[%s13671_s7 + $0xa8] sm:$0xff]  ;;  %v6760_v37 = vld [vmem:[%s13671_s7 + $0x20] sm:$0xff] }
 0x47e   : > { %v8302_v31 = vunpack.i.h.bf16 %v8300_v11  ;;  %v8301_v40 = vunpack.i.l.bf16 %v8300_v11  ;;  %5525 = vmatmul.mubr.f32.gmra.mrb[40].mxu0 %v5299_v57  ;;  %v5232_v43 = vcombine.low %v14509_v4, %v14508_v42  ;;  %v14512_v57 = vcombine.low %v14454_v27, %v14453_v6  ;;  %v14516_v27 = vld [vmem:[#allocation85_spill] sm:$0xff] }
 0x47f   : > { %5529 = vmatprep.mubr.f32.mxu0 %v5339_v7  ;;  %v14514_v11 = vcombine.low %v11963_v44, %v12041_v23  ;;  %v14515_v6 = vcombine.low %v12001_v26, %v12132_v25  ;;  %v5255_v33 = vcombine.low %v14517_v17, %v14516_v27  ;;  %v7752_v42 = vpack.c.bf16 %v6759_v10, %v6758_v49  ;;  %v6761_v29 = vld [vmem:[%s13671_s7 + $0x28] sm:$0xff]  ;;  %v6767_v10 = vld [vmem:[%s13671_s7 + $0x58] sm:$0xff] }
 0x480   : > { %v5314_v53 = vsel %vm408_vm1, %v4902_v63, %v8301_v40  ;;  %v5275_v32 = vsel %vm408_vm1, %v14496_v51, %v8302_v31  ;;  %v7756_v27 = vpack.c.bf16 %v6761_v29, %v6760_v37 }
 0x481   : > { %v8315_v58 = vpop.permute.xlu1 %8314  ;;  %v5327_v48 = vsel %vm412_vm3, %v5314_v53, %v8311_v60  ;;  %v5288_v0 = vsel %vm412_vm3, %v5275_v32, %v8312_v39  ;;  %v5262_v44 = vrot.slane %v5255_v33, %v8749_v3 }
 0x482   : > { %v8317_v54 = vunpack.i.h.bf16 %v8315_v58  ;;  %v8316_v55 = vunpack.i.l.bf16 %v8315_v58  ;;  %5530 = vmatmul.mubr.f32.gmra.mrb[42].mxu0 %v5300_v15 }
 0x484   : > { %v5340_v47 = vsel %vm416_vm5, %v5327_v48, %v8316_v55  ;;  %v5301_v5 = vsel %vm416_vm5, %v5288_v0, %v8317_v54 }
 0x485   : > { %5534 = vmatprep.mubr.f32.mxu0 %v5340_v47 }
 0x486   : > { %5535 = vmatmul.mubr.f32.gmra.mrb[44].mxu0 %v5301_v5 }
 0x487   : > { %7547 = vmatprep.mubr.msk.f32.mxu0 %vm8512_vm14, %v8513_v20 }
 0x48a   : > { %7548 = vmatmul.mubr.msk.f32.vlgmr.msra.gmra.mrb[46].mxu0 %vm408_vm1, %v14499_v14 }
 0x48b   : > { %7550 = vmatprep.mubr.msk.f32.mxu0 %vm8512_vm14, %v8513_v20 }
 0x48e   : > { %7551 = vmatmul.mubr.msk.f32.gmra.mrb[48].mxu0 %vm408_vm1, %v5228_v56  ;;  %v6774_v56 = vld [vmem:[%s13671_s7 + $0x90] sm:$0xff] }
 0x48f   : > { %7553 = vmatprep.mubr.msk.f32.mxu0 %vm8512_vm14, %v8513_v20 }
 0x492   : > { %7554 = vmatmul.mubr.msk.f32.gmra.mrb[50].mxu0 %vm408_vm1, %v5229_v22  ;;  %v7750_v22 = vpack.c.bf16 %v6775_v45, %v6774_v56 }
 0x493   : > { %7556 = vmatprep.mubr.msk.f32.mxu0 %vm8512_vm14, %v8513_v20 }
 0x496   : > { %7557 = vmatmul.mubr.msk.f32.gmra.mrb[52].mxu0 %vm408_vm1, %v5230_v62  ;;  %v6776_v62 = vld [vmem:[%s13671_s7 + $0xa0] sm:$0xff] }
 0x497   : > { %7559 = vmatprep.mubr.msk.f32.mxu0 %vm8512_vm14, %v8513_v20 }
 0x49a   : > { %7560 = vmatmul.mubr.msk.f32.gmra.mrb[54].mxu0 %vm408_vm1, %v5231_v50 }
 0x49b   : > { %7562 = vmatprep.mubr.msk.f32.mxu0 %vm8512_vm14, %v8513_v20 }
 0x49e   : > { %7563 = vmatmul.mubr.msk.f32.gmra.mrb[56].mxu0 %vm408_vm1, %v5232_v43  ;;  %v7754_v43 = vpack.c.bf16 %v6777_v16, %v6776_v62 }
 0x49f   : > { %7565 = vmatprep.mubr.msk.f32.mxu0 %vm8512_vm14, %v8513_v20 }
 0x4a2   : > { %7566 = vmatmul.mubr.msk.f32.gmra.mrb[58].mxu0 %vm408_vm1, %v5233_v12  ;;  %v6778_v12 = vld [vmem:[%s13671_s7 + $0xb0] sm:$0xff] }
 0x4a3   : > { %7568 = vmatprep.mubr.msk.f32.mxu0 %vm8512_vm14, %v8513_v20 }
 0x4a6   : > { %7569 = vmatmul.mubr.msk.f32.gmra.mrb[60].mxu0 %vm408_vm1, %v14512_v57  ;;  %v6779_v57 = vld [vmem:[%s13671_s7 + $0xb8] sm:$0xff] }
 0x4a7   : > { %7571 = vmatprep.mubr.msk.f32.mxu0 %vm8512_vm14, %v8513_v20  ;;  %v7758_v33 = vpack.c.bf16 %v6779_v57, %v6778_v12 }
 0x4aa   : > { %7572 = vmatmul.mubr.msk.f32.gmra.mrb[62].mxu0 %vm408_vm1, %v14513_v36 }
 0x4ab   : > { %7574 = vmatprep.mubr.msk.f32.mxu0 %vm8512_vm14, %v8513_v20 }
 0x4ae   : > { %7575 = vmatmul.mubr.msk.f32.gmra.mrb[64].mxu0 %vm408_vm1, %v14514_v11  ;;  %v7271_v11 = vld [vmem:[%s13670_s6] ss:$0 sm:$0xff] }
 0x4af   : > { %7577 = vmatprep.mubr.msk.f32.mxu0 %vm8512_vm14, %v8513_v20 }
 0x4b2   : > { %7578 = vmatmul.mubr.msk.f32.gmra.mrb[66].mxu0 %vm408_vm1, %v14515_v6 }
 0x4b3   : > { %7580 = vmatprep.mubr.msk.f32.mxu0 %vm8512_vm14, %v8513_v20 }
 0x4b6   : > { %7581 = vmatmul.mubr.msk.f32.gmra.mrb[68].mxu0 %vm408_vm1, %v5254_v18 }
 0x4b7   : > { %7583 = vmatprep.mubr.msk.f32.mxu0 %vm8512_vm14, %v8513_v20 }
 0x4ba   : > { %7584 = vmatmul.mubr.msk.f32.gmra.mrb[70].mxu0 %vm408_vm1, %v5262_v44  ;;  %v6762_v44 = vld [vmem:[%s13671_s7 + $0x30] sm:$0xff] }
 0x4bb   : > { %7622 = vmatprep.mubr.msk.f32.mxu0 %vm8512_vm14, %v8513_v20  ;;  %v6772_v20 = vld [vmem:[%s13671_s7 + $0x80] sm:$0xff] }
 0x4bc   : > { %v7746_v2 = vpack.c.bf16 %v6773_v21, %v6772_v20 }
 0x4be   : > { %7747 = vmatprep.subr.bf16.mxu1 %v7746_v2 }
 0x4bf   : > { %7749 = vmatpush3.bf16.msra.mxu1 %v7748_v13 }
 0x4c0   : > { %7751 = vmatprep.subr.bf16.mxu1 %v7750_v22 }
 0x4c3   : > { %7753 = vmatpush3.bf16.msra.mxu1 %v7752_v42 }
 0x4c4   : > { %7755 = vmatprep.subr.bf16.mxu1 %v7754_v43 }
 0x4c7   : > { %7757 = vmatpush3.bf16.msra.mxu1 %v7756_v27 }
 0x4c8   : > { %7759 = vmatprep.subr.bf16.mxu1 %v7758_v33 }
 0x4f9   : > { %v7371_v26 = vpop.f32.mrb[20].mxu0 }
 0x4fa   : > { %v7372_v23 = vpop.f32.mrb[21].mxu0 }
 0x4fb   : > { %v12633_v25 = vadd.f32 %v7372_v23, %v7371_v26  ;;  %v6763_v26 = vld [vmem:[%s13671_s7 + $0x38] sm:$0xff] }
 0x4fd   : > { %v7374_v9 = vpop.f32.mrb[22].mxu0  ;;  %v5477_v23 = vadd.f32 %v12633_v25, %v7271_v11 }
 0x4fe   : > { %v7375_v61 = vpop.f32.mrb[23].mxu0 }
 0x4ff   : > { %v12635_v59 = vadd.f32 %v7375_v61, %v7374_v9 }
 0x501   : > { %v7377_v19 = vpop.f32.mrb[24].mxu0 }
 0x502   : > { %v7378_v41 = vpop.f32.mrb[25].mxu0 }
 0x503   : > { %v12637_v35 = vadd.f32 %v7378_v41, %v7377_v19  ;;  %v7760_v41 = vpack.c.bf16 %v6763_v26, %v6762_v44 }
 0x505   : > { %v7380_v18 = vpop.f32.mrb[26].mxu0  ;;  %7761 = vmatpush3.bf16.msra.mxu1 %v7760_v41 }
 0x506   : > { %v7381_v52 = vpop.f32.mrb[27].mxu0 }
 0x507   : > { %v12639_v31 = vadd.f32 %v7381_v52, %v7380_v18  ;;  %v5482_v52 = vadd.f32 %v12635_v59, %v7271_v11 }
 0x509   : > { %v5492_v59 = vadd.f32 %v12639_v31, %v7271_v11 }
 0x50b   : > { %v7383_v40 = vpop.f32.mrb[28].mxu0 }
 0x50c   : > { %v7384_v7 = vpop.f32.mrb[29].mxu0 }
 0x50d   : > { %v12641_v24 = vadd.f32 %v7384_v7, %v7383_v40 }
 0x51d   : > { %v7386_v34 = vpop.f32.mrb[30].mxu0 }
 0x51e   : > { %v7387_v8 = vpop.f32.mrb[31].mxu0 }
 0x51f   : > { %v12643_v63 = vadd.f32 %v7387_v8, %v7386_v34 }
 0x521   : > { %v12728_v20 = vadd.f32 %v12643_v63, %v7271_v11 }
 0x526   : > { %v7389_v39 = vpop.f32.mrb[32].mxu0 }
 0x527   : > { %v7390_v60 = vpop.f32.mrb[33].mxu0 }
 0x528   : > { %v12645_v1 = vadd.f32 %v7390_v60, %v7389_v39 }
 0x52a   : > { %v12736_v2 = vadd.f32 %v12645_v1, %v7271_v11 }
 0x530   : > { %v7392_v53 = vpop.f32.mrb[34].mxu0 }
 0x531   : > { %v7393_v51 = vpop.f32.mrb[35].mxu0 }
 0x532   : > { %v12647_v32 = vadd.f32 %v7393_v51, %v7392_v53  ;;  %v5487_v51 = vadd.f32 %v12637_v35, %v7271_v11 }
 0x534   : > { %v12739_v46 = vadd.f32 %v12647_v32, %v7271_v11 }
 0x542   : > { %v7395_v58 = vpop.f32.mrb[36].mxu0 }
 0x543   : > { %v7396_v15 = vpop.f32.mrb[37].mxu0 }
 0x544   : > { %v12649_v54 = vadd.f32 %v7396_v15, %v7395_v58  ;;  %v5497_v15 = vadd.f32 %v12641_v24, %v7271_v11 }
 0x546   : > { %v7398_v55 = vpop.f32.mrb[38].mxu0  ;;  %v12742_v56 = vadd.f32 %v12649_v54, %v7271_v11 }
 0x547   : > { %v7399_v48 = vpop.f32.mrb[39].mxu0 }
 0x548   : > { %v12651_v0 = vadd.f32 %v7399_v48, %v7398_v55 }
 0x54a   : > { %v12754_v54 = vadd.f32 %v12651_v0, %v7271_v11 }
 0x551   : > { %v7401_v47 = vpop.f32.mrb[40].mxu0 }
 0x552   : > { %v7402_v5 = vpop.f32.mrb[41].mxu0 }
 0x553   : > { %v12662_v14 = vadd.f32 %v7402_v5, %v7401_v47 }
 0x555   : > { %v7404_v28 = vpop.f32.mrb[42].mxu0  ;;  %v12757_v42 = vadd.f32 %v12662_v14, %v7271_v11 }
 0x556   : > { %v7405_v50 = vpop.f32.mrb[43].mxu0 }
 0x557   : > { %v12685_v4 = vadd.f32 %v7405_v50, %v7404_v28 }
 0x559   : > { %v7407_v36 = vpop.f32.mrb[44].mxu0  ;;  %v12760_v43 = vadd.f32 %v12685_v4, %v7271_v11 }
 0x55a   : > { %v7408_v6 = vpop.f32.mrb[45].mxu0 }
 0x55b   : > { %v7409_v17 = vadd.f32 %v7408_v6, %v7407_v36 }
 0x55d   : > { %v5606_v9 = vpop.f32.mrb[46].mxu0  ;;  %v12769_v57 = vadd.f32 %v7409_v17, %v7271_v11 }
 0x55e   : > { %v5607_v61 = vadd.f32 %v5606_v9, %v5477_v23  ;;  %v7549_v19 = vpop.f32.mrb[47].mxu0 }
 0x560   : > { %v5670_v18 = vmax.f32 %v5607_v61, 0.0 }
 0x561   : > { %v5611_v40 = vpop.f32.mrb[48].mxu0 }
 0x562   : > { %v5696_v7 = vcombine.high %v5670_v18, %v5670_v18  ;;  %v12711_v34 = vrot.slane %v5670_v18, %v8749_v3  ;;  %v5612_v8 = vadd.f32 %v5611_v40, %v5482_v52  ;;  %v7552_v39 = vpop.f32.mrb[49].mxu0 }
 0x564   : > { %14518 = vst [vmem:[#allocation108_spill] sm:$0xff] %v12711_v34  ;;  %v12714_v60 = vrot.slane %v5696_v7, %v8749_v3  ;;  %v12718_v25 = vcombine.high %v12711_v34, %v12711_v34  ;;  %v5671_v53 = vmax.f32 %v5612_v8, 0.0  ;;  %v7285_v63 = vrot.slane %v12711_v34, 9 }
 0x565   : > { %v5616_v58 = vpop.f32.mrb[50].mxu0 }
 0x566   : > { %14519 = vst [vmem:[#allocation117_spill] sm:$0xff] %v12714_v60  ;;  %14520 = vst [vmem:[#allocation116_spill] sm:$0xff] %v12718_v25  ;;  %v5910_v55 = vrot.slane %v12718_v25, 7  ;;  %v5913_v48 = vrot.slane %v12714_v60, 7  ;;  %v7555_v5 = vpop.f32.mrb[51].mxu0  ;;  %v12732_v21 = vcombine.high %v12714_v60, %v12714_v60  ;;  %v5713_v35 = vcombine.high %v5671_v53, %v5671_v53 }
 0x567   : > { %v5720_v31 = vrot.slane %v5671_v53, %v8749_v3  ;;  %v5617_v30 = vadd.f32 %v5616_v58, %v5487_v51  ;;  %v6342_v0 = vcombine.low %v12718_v25, %v12714_v60 }
 0x568   : > { %14521 = vst [vmem:[#allocation114_spill] sm:$0xff] %v12732_v21  ;;  %v5912_v24 = vrot.slane %v5910_v55, 2  ;;  %v5915_v45 = vrot.slane %v5913_v48, 2  ;;  %v12746_v13 = vrot.slane %v5713_v35, %v8749_v3  ;;  %v5916_v22 = vrot.slane %v12732_v21, 7 }
 0x569   : > { %v5621_v49 = vpop.f32.mrb[52].mxu0  ;;  %v12751_v1 = vcombine.high %v5720_v31, %v5720_v31  ;;  %v5672_v28 = vmax.f32 %v5617_v30, 0.0  ;;  %v5911_v37 = vsel %vm9524_vm13, %v7285_v63, %v5910_v55  ;;  %v6343_v12 = vcombine.low %v12732_v21, %v5720_v31 }
 0x56a   : > { %v5914_v62 = vsel %vm9524_vm13, %v5912_v24, %v5913_v48  ;;  %v5622_v32 = vadd.f32 %v5621_v49, %v5492_v59  ;;  %v7558_v16 = vpop.f32.mrb[53].mxu0  ;;  %v5918_v50 = vrot.slane %v5916_v22, 2  ;;  %v12766_v29 = vcombine.high %v12746_v13, %v12746_v13 }
 0x56b   : > { %v6182_v36 = vcombine.low %v5911_v37, %v5914_v62  ;;  %v5919_v14 = vrot.slane %v5720_v31, 7  ;;  %v5730_v6 = vcombine.high %v5672_v28, %v5672_v28  ;;  %v5917_v4 = vsel %vm9524_vm13, %v5915_v45, %v5916_v22 }
 0x56c   : > { %v7286_v33 = vrot.slane %v12751_v1, 9  ;;  %v5923_v44 = vrot.slane %v12746_v13, 7  ;;  %v12778_v26 = vrot.slane %v5672_v28, %v8749_v3  ;;  %v5673_v9 = vmax.f32 %v5622_v32, 0.0 }
 0x56d   : > { %v5626_v27 = vpop.f32.mrb[54].mxu0  ;;  %v5920_v11 = vsel %vm9524_vm13, %v5918_v50, %v5919_v14  ;;  %v5744_v17 = vrot.slane %v5730_v6, %v8749_v3  ;;  %v12787_v18 = vrot.slane %v6343_v12, %v8749_v3  ;;  %v6359_v40 = vcombine.low %v12746_v13, %v12766_v29 }
 0x56e   : > { %v7561_v23 = vpop.f32.mrb[55].mxu0  ;;  %v5627_v61 = vadd.f32 %v5626_v27, %v5497_v15  ;;  %v5747_v8 = vcombine.high %v5673_v9, %v5673_v9  ;;  %v5754_v39 = vrot.slane %v5673_v9, %v8749_v3  ;;  %v12796_v51 = vsel %vm9524_vm13, %v7286_v33, %v5923_v44 }
 0x56f   : > { %v5746_v7 = vcombine.high %v5744_v17, %v5744_v17  ;;  %v12798_v58 = vrot.slane %v5923_v44, 2  ;;  %v6183_v59 = vcombine.low %v5917_v4, %v5920_v11  ;;  %v12802_v31 = vrot.slane %v6182_v36, %v8749_v3 }
 0x570   : > { %v5674_v15 = vmax.f32 %v5627_v61, 0.0  ;;  %v5761_v5 = vrot.slane %v5747_v8, %v8749_v3  ;;  %v5762_v35 = vcombine.high %v5754_v39, %v5754_v39  ;;  %v12806_v30 = vcombine.high %v12778_v26, %v12778_v26 }
 0x571   : > { %v5631_v53 = vpop.f32.mrb[56].mxu0  ;;  %v5936_v48 = vrot.slane %v5746_v7, 7  ;;  %v5939_v24 = vrot.slane %v5754_v39, 7  ;;  %v6376_v63 = vcombine.low %v5746_v7, %v5754_v39  ;;  %v13940_v22 = vrot.slane %v12778_v26, 7 }
 0x572   : > { %v7564_v55 = vpop.f32.mrb[57].mxu0  ;;  %v5764_v45 = vcombine.high %v5674_v15, %v5674_v15  ;;  %v12809_v62 = vcombine.high %v5761_v5, %v5761_v5  ;;  %v12812_v28 = vrot.slane %v5674_v15, %v8749_v3  ;;  %v7287_v16 = vrot.slane %v5744_v17, 9 }
 0x573   : > { %v5938_v49 = vrot.slane %v5936_v48, 2  ;;  %v6072_v50 = vcombine.low %v5744_v17, %v5746_v7  ;;  %v5942_v37 = vrot.slane %v5762_v35, 7  ;;  %v6197_v36 = vrot.slane %v6183_v59, %v8749_v3 }
 0x574   : > { %v5941_v6 = vrot.slane %v5939_v24, 2  ;;  %v5945_v27 = vrot.slane %v5761_v5, 7  ;;  %v7288_v4 = vrot.slane %v12809_v62, 9  ;;  %v6073_v44 = vcombine.low %v5754_v39, %v5762_v35 }
 0x575   : > { %v5636_v32 = vpop.f32.mrb[58].mxu0  ;;  %v12817_v14 = vsel %vm9524_vm13, %v5938_v49, %v5939_v24  ;;  %v5944_v33 = vrot.slane %v5942_v37, 2  ;;  %v6377_v23 = vcombine.low %v5762_v35, %v5761_v5  ;;  %v12821_v11 = vrot.slane %v5764_v45, %v8749_v3 }
 0x576   : > { %v7567_v12 = vpop.f32.mrb[59].mxu0  ;;  %v12825_v17 = vrot.slane %v13940_v22, 2  ;;  %v5949_v61 = vrot.slane %v12812_v28, 7  ;;  %v6089_v7 = vcombine.low %v12809_v62, %v12812_v28  ;;  %v12833_v59 = vsel %vm9524_vm13, %v7287_v16, %v5936_v48 }
 0x577   : > { %v6360_v39 = vcombine.low %v12778_v26, %v12806_v30  ;;  %v12839_v15 = vsel %vm9524_vm13, %v5944_v33, %v5945_v27  ;;  %v5632_v55 = vadd.f32 %v5631_v53, %v12728_v20  ;;  %v6080_v35 = vrot.slane %v6072_v50, %v8749_v3 }
 0x578   : > { %v12844_v24 = vrot.slane %v6376_v63, %v8749_v3  ;;  %v12848_v45 = vcombine.high %v12812_v28, %v12812_v28  ;;  %v12852_v48 = vsel %vm9524_vm13, %v7288_v4, %v5949_v61  ;;  %v12856_v49 = vsel %vm9524_vm13, %v5941_v6, %v5942_v37 }
 0x579   : > { %v5641_v8 = vpop.f32.mrb[60].mxu0  ;;  %v6087_v20 = vrot.slane %v6073_v44, %v8749_v3  ;;  %v12860_v53 = vrot.slane %v6377_v23, %v8749_v3  ;;  %v12864_v63 = vcombine.high %v12821_v11, %v12821_v11  ;;  %v12868_v16 = vrot.slane %v5949_v61, 2 }
 0x57a   : > { %v7570_v5 = vpop.f32.mrb[61].mxu0  ;;  %v13938_v50 = vrot.slane %v12821_v11, 7  ;;  %v5675_v12 = vmax.f32 %v5632_v55, 0.0  ;;  %v5637_v37 = vadd.f32 %v5636_v32, %v12736_v2  ;;  %v6198_v6 = vcombine.low %v12802_v31, %v6197_v36 }
 0x57b   : > { %v6367_v4 = vrot.slane %v6359_v40, %v8749_v3  ;;  %v6374_v33 = vrot.slane %v6360_v39, %v8749_v3  ;;  %v13939_v23 = vrot.slane %v12848_v45, 7  ;;  %v5642_v47 = vadd.f32 %v5641_v8, %v12739_v46 }
 0x57c   : > { %v5781_v5 = vcombine.high %v5675_v12, %v5675_v12  ;;  %v5788_v61 = vrot.slane %v5675_v12, %v8749_v3  ;;  %v5676_v62 = vmax.f32 %v5637_v37, 0.0  ;;  %v12882_v52 = vcombine.low %v6080_v35, %v6087_v20 }
 0x57d   : > { %v12871_v27 = vpop.f32.mrb[62].mxu0  ;;  %v12880_v55 = vcombine.low %v6367_v4, %v6374_v33  ;;  %v6350_v2 = vrot.slane %v6342_v0, %v8749_v3  ;;  %v12890_v40 = vrot.slane %v13938_v50, 2 }
 0x57e   : > { %v7573_v44 = vpop.f32.mrb[63].mxu0  ;;  %v5795_v32 = vrot.slane %v5781_v5, %v8749_v3  ;;  %v5796_v36 = vcombine.high %v5788_v61, %v5788_v61  ;;  %v5798_v8 = vcombine.high %v5676_v62, %v5676_v62  ;;  %v5805_v39 = vrot.slane %v5676_v62, %v8749_v3 }
 0x57f   : > { %v8318_v35 = vpack.i.bf16 %v6198_v6, %v12880_v55  ;;  %v6358_v20 = vcombine.low %v6350_v2, %v12787_v18  ;;  %v12903_v44 = vrot.slane %v13939_v23, 2  ;;  %v12906_v5 = vrot.slane %v6089_v7, %v8749_v3 }
 0x580   : > { %v5797_v37 = vcombine.high %v5795_v32, %v5795_v32  ;;  %v5962_v4 = vrot.slane %v5796_v36, 7  ;;  %v5965_v33 = vrot.slane %v5795_v32, 7  ;;  %v6393_v62 = vcombine.low %v12812_v28, %v12848_v45 }
 0x581   : > { %v12894_v46 = vpop.f32.mrb[64].mxu0  ;;  %v12911_v6 = vrot.slane %v5798_v8, %v8749_v3  ;;  %8319 = vrot.lane.b32.xlu0 %v8318_v35, %s14097_s16  ;;  %v7289_v2 = vrot.slane %v5788_v61, 9  ;;  %v6106_v41 = vcombine.low %v5788_v61, %v5796_v36  ;;  %v5813_v7 = vcombine.high %v5805_v39, %v5805_v39 }
 0x582   : > { %v7576_v12 = vpop.f32.mrb[65].mxu0  ;;  %v5968_v31 = vrot.slane %v5797_v37, 7  ;;  %v5964_v23 = vrot.slane %v5962_v4, 2  ;;  %v6107_v8 = vcombine.low %v5795_v32, %v5797_v37  ;;  %v6410_v9 = vcombine.low %v5796_v36, %v5795_v32 }
 0x583   : > { %v5967_v12 = vrot.slane %v5965_v33, 2  ;;  %v12920_v0 = vcombine.high %v12911_v6, %v12911_v6  ;;  %v5971_v35 = vrot.slane %v5805_v39, 7  ;;  %v12923_v19 = vrot.slane %v6393_v62, %v8749_v3 }
 0x584   : > { %v5970_v22 = vrot.slane %v5968_v31, 2  ;;  %v12927_v18 = vsel %vm9524_vm13, %v7289_v2, %v5962_v4  ;;  %v5677_v61 = vmax.f32 %v5642_v47, 0.0  ;;  %v5975_v32 = vrot.slane %v12911_v6, 7 }
 0x585   : > { %v12916_v50 = vpop.f32.mrb[66].mxu0  ;;  %14523 = vst [vmem:[#allocation119_spill] sm:$0xff] %v12920_v0  ;;  %v5978_v38 = vrot.slane %v12920_v0, 7  ;;  %v12932_v25 = vsel %vm9524_vm13, %v5967_v12, %v5968_v31  ;;  %v6411_v36 = vcombine.low %v5797_v37, %v5805_v39  ;;  %v12943_v4 = vsel %vm9524_vm13, %v5964_v23, %v5965_v33 }
 0x586   : > { %v7579_v28 = vpop.f32.mrb[67].mxu0  ;;  %14524 = vst [vmem:[#allocation121_spill] sm:$0xff] %v12932_v25  ;;  %v6114_v2 = vrot.slane %v6106_v41, %v8749_v3  ;;  %v7290_v47 = vrot.slane %v5813_v7, 9  ;;  %v6121_v34 = vrot.slane %v6107_v8, %v8749_v3  ;;  %v5815_v60 = vcombine.high %v5677_v61, %v5677_v61 }
 0x587   : > { %v12936_v28 = vsel %vm9524_vm13, %v5970_v22, %v5971_v35  ;;  %v6123_v22 = vcombine.low %v5813_v7, %v12911_v6  ;;  %v6418_v35 = vrot.slane %v6410_v9, %v8749_v3  ;;  %v6425_v39 = vrot.slane %v6411_v36, %v8749_v3 }
 0x588   : > { %14525 = vst [vmem:[#allocation130_spill] sm:$0xff] %v12936_v28  ;;  %v5980_v37 = vrot.slane %v5978_v38, 2  ;;  %v5822_v23 = vrot.slane %v5677_v61, %v8749_v3  ;;  %v8323_v33 = vpack.i.bf16 %v6358_v20, %v12882_v52  ;;  %v5977_v41 = vrot.slane %v5975_v32, 2 }
 0x589   : > { %v12939_v62 = vpop.f32.mrb[68].mxu0  ;;  %v12954_v21 = vcombine.low %v6418_v35, %v6425_v39  ;;  %v14526_v8 = vrot.slane %v12766_v29, 7  ;;  %v12963_v9 = vrot.slane %v5815_v60, %v8749_v3  ;;  %v14528_v39 = vrot.slane %v12778_v26, 7 }
 0x58a   : > { %v7582_v12 = vpop.f32.mrb[69].mxu0  ;;  %v5981_v36 = vrot.slane %v5822_v23, 7  ;;  %v6124_v28 = vcombine.low %v12920_v0, %v5822_v23  ;;  %8324 = vrot.lane.b32.xlu1 %v8323_v33, %s14307_s15 }
 0x58b   : > { %v5647_v12 = vadd.f32 %v12871_v27, %v12742_v56  ;;  %v5928_v31 = vrot.slane %v14526_v8, 2  ;;  %v14527_v20 = vmov %v14526_v8  ;;  %v12972_v27 = vcombine.high %v5822_v23, %v5822_v23 }
 0x58c   : > { %v5927_v61 = vsel %vm9524_vm13, %v12798_v58, %v14527_v20  ;;  %v14529_v8 = vrot.slane %v12806_v30, 7  ;;  %v12987_v58 = vsel %vm9524_vm13, %v7290_v47, %v5975_v32  ;;  %v12997_v30 = vcombine.low %v6114_v2, %v6121_v34 }
 0x58d   : > { %v12960_v7 = vpop.f32.mrb[70].mxu0  ;;  %v5678_v35 = vmax.f32 %v5647_v12, 0.0  ;;  %v5930_v60 = vsel %vm9524_vm13, %v5928_v31, %v14528_v39  ;;  %14530 = vst [vmem:[#allocation129_spill] sm:$0xff] %v12987_v58  ;;  %v12991_v12 = vcombine.high %v12963_v9, %v12963_v9  ;;  %v12995_v31 = vsel %vm9524_vm13, %v5980_v37, %v5981_v36 }
 0x58e   : > { %v7585_v56 = vpop.f32.mrb[71].mxu0  ;;  %v5933_v33 = vsel %vm9524_vm13, %v12825_v17, %v14529_v8  ;;  %v13001_v17 = vsel %vm9524_vm13, %v5977_v41, %v5978_v38  ;;  %v13004_v20 = vrot.slane %v6123_v22, %v8749_v3  ;;  %v6199_v39 = vcombine.low %v12796_v51, %v5927_v61 }
 0x58f   : > { %14531 = vst [vmem:[#allocation124_spill] sm:$0xff] %v13001_v17  ;;  %v5832_v56 = vcombine.high %v5678_v35, %v5678_v35  ;;  %v5988_v32 = vrot.slane %v12991_v12, 7  ;;  %v13008_v47 = vrot.slane %v5678_v35, %v8749_v3  ;;  %v6200_v8 = vcombine.low %v5930_v60, %v5933_v33 }
 0x590   : > { %v6428_v2 = vcombine.low %v5822_v23, %v12972_v27  ;;  %v13019_v22 = vcombine.low %v12844_v24, %v12860_v53  ;;  %v13023_v41 = vrot.slane %v5981_v36, 2  ;;  %v7291_v53 = vrot.slane %v12963_v9, 9 }
 0x591   : > { %v13015_v38 = vrot.slane %v5832_v56, %v8749_v3  ;;  %v5990_v35 = vrot.slane %v5988_v32, 2  ;;  %v5847_v51 = vcombine.high %v13008_v47, %v13008_v47  ;;  %v5991_v60 = vrot.slane %v13008_v47, 7 }
 0x592   : > { %v6444_v24 = vcombine.low %v12991_v12, %v13008_v47  ;;  %v13037_v36 = vrot.slane %v6124_v28, %v8749_v3  ;;  %v6207_v33 = vrot.slane %v6199_v39, %v8749_v3  ;;  %v6214_v56 = vrot.slane %v6200_v8, %v8749_v3 }
 0x593   : > { %v13030_v23 = vcombine.high %v13015_v38, %v13015_v38  ;;  %v6140_v37 = vcombine.low %v12963_v9, %v12991_v12  ;;  %v13044_v34 = vrot.slane %v6428_v2, %v8749_v3  ;;  %v13048_v61 = vsel %vm9524_vm13, %v5990_v35, %v5991_v60 }
 0x594   : > { %v5994_v25 = vrot.slane %v5847_v51, 7  ;;  %v5997_v17 = vrot.slane %v13015_v38, 7  ;;  %v6141_v28 = vcombine.low %v13008_v47, %v5847_v51  ;;  %v6445_v58 = vcombine.low %v5847_v51, %v13015_v38 }
 0x595   : > { %v13053_v39 = vcombine.low %v6207_v33, %v6214_v56  ;;  %v5993_v8 = vrot.slane %v5991_v60, 2  ;;  %v7292_v0 = vrot.slane %v13030_v23, 9  ;;  %v14533_v9 = vcombine.low %v12848_v45, %v12821_v11 }
 0x596   : > { %v5652_v2 = vadd.f32 %v12894_v46, %v12754_v54  ;;  %v14534_v47 = vcombine.low %v12751_v1, %v12746_v13  ;;  %v14535_v51 = vcombine.low %v12766_v29, %v12778_v26  ;;  %v6216_v33 = vcombine.low %v12833_v59, %v12817_v14 }
 0x597   : > { %14532 = vst [vmem:[#allocation14_spill] sm:$0xff] %v13053_v39  ;;  %v6104_v12 = vrot.slane %v14533_v9, %v8749_v3  ;;  %v8328_v35 = vpack.i.bf16 %v13053_v39, %v13019_v22  ;;  %v5996_v56 = vrot.slane %v5994_v25, 2  ;;  %v14536_v46 = vcombine.low %v12856_v49, %v12839_v15 }
 0x598   : > { %v6063_v38 = vrot.slane %v14534_v47, %v8749_v3  ;;  %v6070_v60 = vrot.slane %v14535_v51, %v8749_v3  ;;  %v5679_v54 = vmax.f32 %v5652_v2, 0.0  ;;  %v6224_v1 = vrot.slane %v6216_v33, %v8749_v3 }
 0x599   : > { %v13075_v9 = vcombine.low %v12906_v5, %v6104_v12  ;;  %v6231_v39 = vrot.slane %v14536_v46, %v8749_v3  ;;  %8329 = vrot.lane.b32.xlu1 %v8328_v35, %s14097_s16  ;;  %v14537_v29 = vrot.slane %v12848_v45, 7  ;;  %v14538_v14 = vrot.slane %v12821_v11, 7 }
 0x59a   : > { %v13082_v13 = vcombine.low %v6063_v38, %v6070_v60  ;;  %v5849_v49 = vcombine.high %v5679_v54, %v5679_v54  ;;  %v13098_v5 = vrot.slane %v5679_v54, %v8749_v3  ;;  %v14539_v12 = vrot.slane %v12864_v63, 7 }
 0x59b   : > { %v5953_v26 = vsel %vm9524_vm13, %v12868_v16, %v14537_v29  ;;  %v5956_v59 = vsel %vm9524_vm13, %v12903_v44, %v14538_v14  ;;  %v8333_v15 = vpack.i.bf16 %v12880_v55, %v13075_v9  ;;  %v13105_v16 = vcombine.low %v6224_v1, %v6231_v39 }
 0x59c   : > { %v5959_v45 = vsel %vm9524_vm13, %v12890_v40, %v14539_v12  ;;  %v6233_v2 = vcombine.low %v12852_v48, %v5953_v26  ;;  %v5657_v44 = vadd.f32 %v12916_v50, %v12757_v42  ;;  %v13112_v55 = vsel %vm9524_vm13, %v7291_v53, %v5988_v32 }
 0x59d   : > { %v6234_v35 = vcombine.low %v5956_v59, %v5959_v45  ;;  %8334 = vrot.lane.b32.xlu0 %v8333_v15, %s14307_s15  ;;  %v13116_v47 = vrot.slane %v5849_v49, %v8749_v3  ;;  %v6001_v38 = vrot.slane %v13098_v5, 7  ;;  %v6157_v40 = vcombine.low %v13030_v23, %v13098_v5 }
 0x59e   : > { %v13123_v48 = vsel %vm9524_vm13, %v5996_v56, %v5997_v17  ;;  %v13127_v42 = vcombine.high %v13098_v5, %v13098_v5  ;;  %v5680_v32 = vmax.f32 %v5657_v44, 0.0  ;;  %v13131_v53 = vrot.slane %v6140_v37, %v8749_v3 }
 0x59f   : > { %v6248_v50 = vrot.slane %v6234_v35, %v8749_v3  ;;  %v13135_v39 = vsel %vm9524_vm13, %v7292_v0, %v6001_v38  ;;  %v8338_v23 = vpack.i.bf16 %v13082_v13, %v13105_v16  ;;  %v6241_v17 = vrot.slane %v6233_v2, %v8749_v3 }
 0x5a0   : > { %v13142_v51 = vsel %vm9524_vm13, %v5993_v8, %v5994_v25  ;;  %v13145_v60 = vrot.slane %v6141_v28, %v8749_v3  ;;  %v13148_v33 = vrot.slane %v6444_v24, %v8749_v3  ;;  %v13151_v37 = vrot.slane %v6445_v58, %v8749_v3 }
 0x5a1   : > { %v6285_v0 = vcombine.low %v13142_v51, %v13123_v48  ;;  %v13157_v56 = vcombine.high %v13116_v47, %v13116_v47  ;;  %v13159_v54 = vrot.slane %v6001_v38, 2  ;;  %8339 = vrot.lane.b32.xlu0 %v8338_v23, %s14090_s29  ;;  %v13162_v25 = vcombine.low %v6241_v17, %v6248_v50 }
 0x5a2   : > { %v13953_v28 = vrot.slane %v13127_v42, 7  ;;  %v13952_v24 = vrot.slane %v13116_v47, 7  ;;  %v5866_v8 = vcombine.high %v5680_v32, %v5680_v32  ;;  %v13167_v58 = vrot.slane %v5680_v32, %v8749_v3 }
 0x5a3   : > { %v6158_v46 = vcombine.low %v13127_v42, %v13116_v47  ;;  %v8348_v1 = vpack.i.bf16 %v12882_v52, %v13162_v25  ;;  %v14540_v29 = vcombine.low %v12821_v11, %v12864_v63  ;;  %v5662_v14 = vadd.f32 %v12939_v62, %v12760_v43 }
 0x5a4   : > { %v13180_v59 = vrot.slane %v6157_v40, %v8749_v3  ;;  %v13183_v15 = vrot.slane %v5866_v8, %v8749_v3  ;;  %v13187_v49 = vcombine.high %v13167_v58, %v13167_v58  ;;  %v13191_v12 = vcombine.low %v13004_v20, %v13037_v36 }
 0x5a5   : > { %v6408_v26 = vrot.slane %v14540_v29, %v8749_v3  ;;  %8349 = vrot.lane.b32.xlu1 %v8348_v1, %s14090_s29  ;;  %v5681_v63 = vmax.f32 %v5662_v14, 0.0  ;;  %v5667_v62 = vadd.f32 %v12960_v7, %v12769_v57  ;;  %v13203_v45 = vrot.slane %v13953_v28, 2  ;;  %v14548_v28 = vld [vmem:[#allocation129_spill] sm:$0xff] }
 0x5a6   : > { %v6014_v2 = vrot.slane %v13187_v49, 7  ;;  %v6017_v20 = vrot.slane %v13183_v15, 7  ;;  %v8353_v36 = vpack.i.bf16 %v13019_v22, %v12997_v30  ;;  %v6010_v7 = vrot.slane %v13157_v56, 7 }
 0x5a7   : > { %v13197_v43 = vcombine.low %v12923_v19, %v6408_v26  ;;  %v13213_v19 = vcombine.high %v13183_v15, %v13183_v15  ;;  %v5883_v44 = vcombine.high %v5681_v63, %v5681_v63  ;;  %v5890_v57 = vrot.slane %v5681_v63, %v8749_v3 }
 0x5a8   : > { %v7293_v38 = vrot.slane %v13167_v58, 9  ;;  %v6016_v40 = vrot.slane %v6014_v2, 2  ;;  %v8358_v50 = vpack.i.bf16 %v13162_v25, %v12954_v21  ;;  %v6019_v32 = vrot.slane %v6017_v20, 2 }
 0x5a9   : > { %v8343_v35 = vpack.i.bf16 %v13105_v16, %v13197_v43  ;;  %8354 = vrot.lane.b32.xlu1 %v8353_v36, %s14307_s15  ;;  %v13223_v23 = vrot.slane %v5883_v44, %v8749_v3  ;;  %v13225_v17 = vcombine.high %v5890_v57, %v5890_v57  ;;  %v6020_v8 = vrot.slane %v13213_v19, 7 }
 0x5aa   : > { %v13230_v1 = vsel %vm9524_vm13, %v7293_v38, %v6014_v2  ;;  %v13234_v29 = vsel %vm9524_vm13, %v6016_v40, %v6017_v20  ;;  %v6569_v26 = vcombine.low %v13213_v19, %v5890_v57  ;;  %v5682_v14 = vmax.f32 %v5667_v62, 0.0 }
 0x5ab   : > { %8344 = vrot.lane.b32.xlu0 %v8343_v35, %s14097_s16  ;;  %v13239_v63 = vcombine.high %v13223_v23, %v13223_v23  ;;  %v6022_v36 = vrot.slane %v6020_v8, 2  ;;  %v6023_v35 = vrot.slane %v5890_v57, 7  ;;  %v8363_v44 = vpack.i.bf16 %v13197_v43, %v13191_v12 }
 0x5ac   : > { %v6009_v2 = vrot.slane %v13952_v24, 2  ;;  %v6462_v38 = vcombine.low %v13116_v47, %v13157_v56  ;;  %v6543_v20 = vcombine.low %v13230_v1, %v13234_v29  ;;  %v6568_v62 = vcombine.low %v13187_v49, %v13183_v15 }
 0x5ad   : > { %v6021_v40 = vsel %vm9524_vm13, %v6019_v32, %v6020_v8  ;;  %v6024_v57 = vsel %vm9524_vm13, %v6022_v36, %v6023_v35  ;;  %8359 = vrot.lane.b32.xlu1 %v8358_v50, %s14097_s16  ;;  %v13259_v56 = vrot.slane %v5682_v14, %v8749_v3  ;;  %v14541_v24 = vcombine.low %v12927_v18, %v12943_v4  ;;  %v14542_v8 = vld [vmem:[#allocation121_spill] sm:$0xff]  ;;  %v14543_v36 = vld [vmem:[#allocation130_spill] sm:$0xff] }
 0x5ae   : > { %v6544_v29 = vcombine.low %v6021_v40, %v6024_v57  ;;  %v14544_v35 = vcombine.low %v14542_v8, %v14543_v36  ;;  %v14545_v40 = vrot.slane %v12972_v27, 7  ;;  %v6609_v4 = vcombine.low %v13225_v17, %v13223_v23  ;;  %v14546_v57 = vld [vmem:[#allocation119_spill] sm:$0xff] }
 0x5af   : > { %8364 = vrot.lane.b32.xlu0 %v8363_v44, %s14307_s15  ;;  %v6258_v32 = vrot.slane %v14541_v24, %v8749_v3  ;;  %v6583_v44 = vrot.slane %v6569_v26, %v8749_v3  ;;  %v13273_v50 = vcombine.high %v13259_v56, %v13259_v56  ;;  %v6610_v14 = vcombine.low %v13239_v63, %v13259_v56 }
 0x5b0   : > { %v6265_v11 = vrot.slane %v14544_v35, %v8749_v3  ;;  %v5985_v18 = vsel %vm9524_vm13, %v13023_v41, %v14545_v40  ;;  %v14547_v8 = vcombine.low %v12911_v6, %v14546_v57  ;;  %v6033_v35 = vrot.slane %v13259_v56, 7  ;;  %v14549_v41 = vld [vmem:[#allocation124_spill] sm:$0xff] }
 0x5b1   : > { %v6268_v26 = vcombine.low %v12995_v31, %v5985_v18  ;;  %v6692_v27 = vcombine.low %v13259_v56, %v13273_v50  ;;  %v14550_v40 = vcombine.low %v14548_v28, %v14549_v41  ;;  %v6172_v18 = vrot.slane %v6158_v46, %v8749_v3 }
 0x5b2   : > { %v13284_v24 = vcombine.low %v6258_v32, %v6265_v11  ;;  %v6435_v36 = vrot.slane %v14547_v8, %v8749_v3  ;;  %v13300_v11 = vcombine.low %v13131_v53, %v13145_v60  ;;  %v6030_v28 = vrot.slane %v13239_v63, 7 }
 0x5b3   : > { %v6275_v1 = vrot.slane %v14550_v40, %v8749_v3  ;;  %v6282_v6 = vrot.slane %v6268_v26, %v8749_v3  ;;  %v13315_v57 = vcombine.low %v13148_v33, %v13151_v37  ;;  %v6284_v53 = vcombine.low %v13112_v55, %v13048_v61 }
 0x5b4   : > { %v8368_v31 = vpack.i.bf16 %v13075_v9, %v13284_v24  ;;  %v13306_v32 = vcombine.low %v6435_v36, %v13044_v34  ;;  %v6299_v34 = vrot.slane %v6285_v0, %v8749_v3  ;;  %v14551_v60 = vrot.slane %v13223_v23, 7 }
 0x5b5   : > { %v13326_v46 = vcombine.low %v6275_v1, %v6282_v6  ;;  %v13329_v8 = vcombine.low %v13180_v59, %v6172_v18  ;;  %v14552_v33 = vrot.slane %v13127_v42, 7  ;;  %v6292_v55 = vrot.slane %v6284_v53, %v8749_v3 }
 0x5b6   : > { %v6029_v26 = vrot.slane %v14551_v60, 2  ;;  %8369 = vrot.lane.b32.xlu0 %v8368_v31, %s14090_s29  ;;  %v14553_v48 = vrot.slane %v13116_v47, 7  ;;  %v6011_v37 = vsel %vm9524_vm13, %v6009_v2, %v6010_v7  ;;  %v6035_v59 = vrot.slane %v6033_v35, 2 }
 0x5b7   : > { %v6005_v61 = vsel %vm9524_vm13, %v13159_v54, %v14552_v33  ;;  %v8378_v1 = vpack.i.bf16 %v12997_v30, %v13326_v46  ;;  %v8373_v54 = vpack.i.bf16 %v13284_v24, %v13306_v32  ;;  %v8383_v47 = vpack.i.bf16 %v12954_v21, %v13300_v11 }
 0x5b8   : > { %v6008_v51 = vsel %vm9524_vm13, %v13203_v45, %v14553_v48  ;;  %v6301_v0 = vcombine.low %v13135_v39, %v6005_v61  ;;  %v8393_v41 = vpack.i.bf16 %v13306_v32, %v13329_v8  ;;  %v13353_v45 = vcombine.low %v6292_v55, %v6299_v34 }
 0x5b9   : > { %v6302_v36 = vcombine.low %v6008_v51, %v6011_v37  ;;  %v6036_v39 = vrot.slane %v13273_v50, 7  ;;  %8379 = vrot.lane.b32.xlu1 %v8378_v1, %s14090_s29  ;;  %v6551_v40 = vrot.slane %v6543_v20, %v8749_v3  ;;  %v6558_v31 = vrot.slane %v6544_v29, %v8749_v3 }
 0x5ba   : > { %v6309_v7 = vrot.slane %v6301_v0, %v8749_v3  ;;  %8374 = vrot.lane.b32.xlu0 %v8373_v54, %s14097_s16  ;;  %v6476_v6 = vrot.slane %v6462_v38, %v8749_v3  ;;  %v6503_v18 = vcombine.low %v13183_v15, %v13213_v19  ;;  %v6576_v53 = vrot.slane %v6568_v62, %v8749_v3  ;;  %v6780_v38 = vld [vmem:[%s13671_s7 + $0xc0] sm:$0xff] }
 0x5bb   : > { %v6316_v2 = vrot.slane %v6302_v36, %v8749_v3  ;;  %v6032_v34 = vrot.slane %v6030_v28, 2  ;;  %v13368_v33 = vcombine.low %v6551_v40, %v6558_v31  ;;  %v13371_v61 = vrot.slane %v6609_v4, %v8749_v3  ;;  %v6764_v4 = vld [vmem:[%s13671_s7 + $0x40] sm:$0xff]  ;;  %v6785_v31 = vld [vmem:[%s13671_s7 + $0xe8] sm:$0xff] }
 0x5bc   : > { %v13374_v55 = vrot.slane %v6610_v14, %v8749_v3  ;;  %v14554_v15 = vcombine.low %v13098_v5, %v13127_v42  ;;  %v6502_v20 = vcombine.low %v13167_v58, %v13187_v49  ;;  %v13385_v62 = vcombine.low %v6576_v53, %v6583_v44  ;;  %v6781_v14 = vld [vmem:[%s13671_s7 + $0xc8] sm:$0xff]  ;;  %v6784_v40 = vld [vmem:[%s13671_s7 + $0xe0] sm:$0xff] }
 0x5bd   : > { %v13366_v60 = vcombine.low %v6309_v7, %v6316_v2  ;;  %v6031_v29 = vsel %vm9524_vm13, %v6029_v26, %v6030_v28  ;;  %v6765_v5 = vld [vmem:[%s13671_s7 + $0x48] sm:$0xff]  ;;  %v14555_v42 = vrot.slane %v13223_v23, 7  ;;  %v14556_v58 = vrot.slane %v13225_v17, 9  ;;  %8384 = vrot.lane.b32.xlu1 %v8383_v47, %s14307_s15  ;;  %v6782_v28 = vld [vmem:[%s13671_s7 + $0xd0] sm:$0xff]  ;;  %v6783_v26 = vld [vmem:[%s13671_s7 + $0xd8] sm:$0xff] }
 0x5be   : > { %v6469_v19 = vrot.slane %v14554_v15, %v8749_v3  ;;  %8394 = vrot.lane.b32.xlu0 %v8393_v41, %s14307_s15  ;;  %v6625_v44 = vcombine.low %v13371_v61, %v13374_v55  ;;  %v6517_v17 = vrot.slane %v6503_v18, %v8749_v3  ;;  %v6034_v51 = vsel %vm9524_vm13, %v6032_v34, %v6033_v35  ;;  %v6766_v35 = vld [vmem:[%s13671_s7 + $0x50] sm:$0xff]  ;;  %v6768_v15 = vld [vmem:[%s13671_s7 + $0x60] sm:$0xff] }
 0x5bf   : > { %v6028_v49 = vsel %vm9524_vm13, %v14556_v58, %v14555_v42  ;;  %v6037_v37 = vsel %vm9524_vm13, %v6035_v59, %v6036_v39  ;;  %v8388_v0 = vpack.i.bf16 %v13326_v46, %v13315_v57  ;;  %v8398_v1 = vpack.i.bf16 %v13191_v12, %v13353_v45  ;;  %v6770_v42 = vld [vmem:[%s13671_s7 + $0x70] sm:$0xff]  ;;  %v6771_v58 = vld [vmem:[%s13671_s7 + $0x78] sm:$0xff] }
 0x5c0   : > { %v13414_v48 = vcombine.low %v6469_v19, %v6476_v6  ;;  %v6650_v54 = vcombine.low %v6028_v49, %v6031_v29  ;;  %v6651_v36 = vcombine.low %v6034_v51, %v6037_v37  ;;  %v6510_v47 = vrot.slane %v6502_v20, %v8749_v3  ;;  %v6769_v19 = vld [vmem:[%s13671_s7 + $0x68] sm:$0xff]  ;;  %v6787_v29 = vld [vmem:[%s13671_s7 + $0xf8] sm:$0xff]  ;;  %v6788_v49 = vld [vmem:[%s13671_s7 + $0x100] sm:$0xff] }
 0x5c1   : > { %v7762_v41 = vpack.c.bf16 %v6781_v14, %v6780_v38  ;;  %v7764_v7 = vpack.c.bf16 %v6765_v5, %v6764_v4  ;;  %v7766_v2 = vpack.c.bf16 %v6783_v26, %v6782_v28  ;;  %8389 = vrot.lane.b32.xlu1 %v8388_v0, %s14097_s16  ;;  %v8408_v53 = vpack.i.bf16 %v13300_v11, %v13366_v60  ;;  %v6789_v28 = vld [vmem:[%s13671_s7 + $0x108] sm:$0xff] }
 0x5c2   : > { %8399 = vrot.lane.b32.xlu0 %v8398_v1, %s14090_s29  ;;  %v6658_v59 = vrot.slane %v6650_v54, %v8749_v3  ;;  %v6665_v39 = vrot.slane %v6651_v36, %v8749_v3  ;;  %v8403_v6 = vpack.i.bf16 %v13353_v45, %v13414_v48  ;;  %v6518_v18 = vcombine.low %v6510_v47, %v6517_v17  ;;  %v14557_v1 = vld [vmem:[#allocation114_spill] sm:$0xff]  ;;  %v14558_v54 = vld [vmem:[#allocation117_spill] sm:$0xff] }
 0x5c3   : > { %7763 = vmatprep.subr.bf16.mxu1 %v7762_v41  ;;  %v7768_v61 = vpack.c.bf16 %v6767_v10, %v6766_v35  ;;  %v6691_v55 = vcombine.low %v13223_v23, %v13239_v63  ;;  %v7770_v38 = vpack.c.bf16 %v6785_v31, %v6784_v40  ;;  %v13458_v20 = vrot.slane %v6692_v27, %v8749_v3  ;;  %v6786_v63 = vld [vmem:[%s13671_s7 + $0xf0] sm:$0xff]  ;;  %v14560_v35 = vld [vmem:[#allocation116_spill] sm:$0xff] }
 0x5c4   : > { %v6666_v34 = vcombine.low %v6658_v59, %v6665_v39  ;;  %7765 = vmatpush3.bf16.msra.mxu1 %v7764_v7  ;;  %v8413_v56 = vpack.i.bf16 %v13315_v57, %v6518_v18  ;;  %v8423_v50 = vpack.i.bf16 %v13329_v8, %v13368_v33  ;;  %v7772_v27 = vpack.c.bf16 %v6769_v19, %v6768_v15 }
 0x5c5   : > { %7767 = vmatprep.subr.bf16.mxu1 %v7766_v2  ;;  %8409 = vrot.lane.b32.xlu1 %v8408_v53, %s14090_s29  ;;  %v13469_v14 = vrot.slane %v6691_v55, %v8749_v3  ;;  %v7774_v5 = vpack.c.bf16 %v6787_v29, %v6786_v63  ;;  %v8418_v26 = vpack.i.bf16 %v13366_v60, %v13385_v62  ;;  %v14559_v2 = vld [vmem:[#allocation108_spill] sm:$0xff] }
 0x5c6   : > { %8404 = vrot.lane.b32.xlu0 %v8403_v6, %s14097_s16  ;;  %v8433_v23 = vpack.i.bf16 %v6518_v18, %v6666_v34  ;;  %v8428_v17 = vpack.i.bf16 %v13414_v48, %v6625_v44  ;;  %v7776_v51 = vpack.c.bf16 %v6771_v58, %v6770_v42  ;;  %v7778_v37 = vpack.c.bf16 %v6789_v28, %v6788_v49  ;;  %v6790_v34 = vld [vmem:[%s13671_s7 + $0x110] sm:$0xff] }
 0x5c7   : > { %v6707_v4 = vcombine.low %v13469_v14, %v13458_v20  ;;  %v6039_v36 = vcombine.low %v14558_v54, %v14557_v1  ;;  %v14561_v10 = vcombine.low %v14559_v2, %v14560_v35 }
 0x5c8   : > { %7769 = vmatpush3.bf16.msra.mxu1 %v7768_v61  ;;  %v6791_v61 = vld [vmem:[%s13671_s7 + $0x118] sm:$0xff] }
 0x5c9   : > { %7771 = vmatprep.subr.bf16.mxu1 %v7770_v38  ;;  %8414 = vrot.lane.b32.xlu1 %v8413_v56, %s14307_s15  ;;  %v6053_v41 = vrot.slane %v6039_v36, %v8749_v3  ;;  %v6046_v59 = vrot.slane %v14561_v10, %v8749_v3 }
 0x5ca   : > { %8424 = vrot.lane.b32.xlu0 %v8423_v50, %s14090_s29 }
 0x5cb   : > { %v6054_v18 = vcombine.low %v6046_v59, %v6053_v41 }
 0x5cc   : > { %7773 = vmatpush3.bf16.msra.mxu1 %v7772_v27  ;;  %v7782_v27 = vpack.c.bf16 %v6791_v61, %v6790_v34 }
 0x5cd   : > { %7775 = vmatprep.subr.bf16.mxu1 %v7774_v5  ;;  %8419 = vrot.lane.b32.xlu1 %v8418_v26, %s14097_s16 }
 0x5ce   : > { %8429 = vrot.lane.b32.xlu0 %v8428_v17, %s14307_s15 }
 0x5d0   : > { %7777 = vmatpush3.bf16.msra.mxu1 %v7776_v51 }
 0x5d1   : > { %7779 = vmatprep.subr.bf16.mxu1 %v7778_v37  ;;  %8434 = vrot.lane.b32.xlu1 %v8433_v23, %s14090_s29  ;;  %v14562_v23 = vld [vmem:[#allocation14_spill] sm:$0xff]  ;;  %s375_s29 = scalar_lea.vmem [#allocation2], %s7213_s1 }
 0x5d2   : > { %s7153_s16 = sshll.u32 %s375_s29, 4  ;;  %s13624_s16 = int_to_ptr.vmem [resolvable:$true] %s7153_s16 }
 0x5d3   : > { %s8439_s24 = scalar_lea.vmem %s13624_s16, 64  ;;  %p8446_p0 = scmp.lt.s32.totalorder %s13624_s16, %s8444_s0 }
 0x5d4   : > { %p8440_p11 = scmp.ne.s32.totalorder %s13624_s16, %s8439_s24  ;;  %p8447_p1 = scmp.lt.s32.totalorder %s8445_s12, %s8439_s24 }
 0x5d6   : > { %p8441_p12 = pnand %p8440_p11, %p8614_p5  ;;  %p8448_p2 = por %p8447_p1, %p8446_p0 }
 0x5d8   : > { %p8442_p13 = pneg %p8441_p12 }
 0x5da   : > { %p8449_p3 = pnand %p8448_p2, %p8442_p13 }
 0x5f3   : > { %v8320_v47 = vpop.permute.xlu0 %8319 }
 0x5f4   : > { %v8322_v39 = vunpack.i.h.bf16 %v8320_v47  ;;  %v8321_v40 = vunpack.i.l.bf16 %v8320_v47 }
 0x5f6   : > { %v6708_v15 = vsel %vm408_vm1, %v6054_v18, %v8322_v39  ;;  %v6732_v63 = vsel %vm408_vm1, %v14562_v23, %v8321_v40 }
 0x5fc   : > { %v8325_v0 = vpop.permute.xlu1 %8324 }
 0x5fd   : > { %v8327_v31 = vunpack.i.h.bf16 %v8325_v0  ;;  %v8326_v6 = vunpack.i.l.bf16 %v8325_v0 }
 0x5ff   : > { %v6716_v29 = vsel %vm412_vm3, %v6708_v15, %v8327_v31  ;;  %v6740_v50 = vsel %vm412_vm3, %v6732_v63, %v8326_v6 }
 0x60b   : > { %v8330_v44 = vpop.permute.xlu1 %8329 }
 0x60c   : > { %v8331_v53 = vunpack.i.l.bf16 %v8330_v44  ;;  %v8332_v55 = vunpack.i.h.bf16 %v8330_v44 }
 0x60e   : > { %v6733_v49 = vsel %vm408_vm1, %v13105_v16, %v8331_v53  ;;  %v6709_v26 = vsel %vm408_vm1, %v13082_v13, %v8332_v55 }
 0x60f   : > { %v8335_v7 = vpop.permute.xlu0 %8334 }
 0x610   : > { %v8336_v56 = vunpack.i.l.bf16 %v8335_v7  ;;  %v8337_v5 = vunpack.i.h.bf16 %v8335_v7 }
 0x612   : > { %v6741_v0 = vsel %vm412_vm3, %v6733_v49, %v8336_v56  ;;  %v6717_v54 = vsel %vm412_vm3, %v6709_v26, %v8337_v5 }
 0x613   : > { %v8340_v38 = vpop.permute.xlu0 %8339 }
 0x614   : > { %v8342_v19 = vunpack.i.h.bf16 %v8340_v38  ;;  %v8341_v3 = vunpack.i.l.bf16 %v8340_v38 }
 0x616   : > { %v6748_v42 = vsel %vm416_vm5, %v6740_v50, %v8341_v3  ;;  %v6724_v58 = vsel %vm416_vm5, %v6716_v29, %v8342_v19 }
 0x617   : > { %v8350_v28 = vpop.permute.xlu1 %8349  ;;  %6879 = vmatprep.mubr.f32.mxu1 %v6748_v42 }
 0x618   : > { %v8352_v17 = vunpack.i.h.bf16 %v8350_v28  ;;  %v8351_v51 = vunpack.i.l.bf16 %v8350_v28  ;;  %6880 = vmatmul.mubr.f32.vlgmr.msra.gmra.mrb[36].mxu1 %v6724_v58 }
 0x619   : > { %7781 = vmatpush3.bf16.msra.mxu1 %v7778_v37 }
 0x61a   : > { %v6749_v1 = vsel %vm416_vm5, %v6741_v0, %v8351_v51  ;;  %7783 = vmatprep.subr.bf16.mxu1 %v7782_v27  ;;  %v6725_v16 = vsel %vm416_vm5, %v6717_v54, %v8352_v17 }
 0x61b   : > { %6884 = vmatprep.mubr.f32.mxu1 %v6749_v1  ;;  %v8355_v47 = vpop.permute.xlu1 %8354 }
 0x61c   : > { %6885 = vmatmul.mubr.f32.gmra.mrb[38].mxu1 %v6725_v16  ;;  %v8357_v2 = vunpack.i.h.bf16 %v8355_v47  ;;  %v8356_v35 = vunpack.i.l.bf16 %v8355_v47 }
 0x61d   : > { %v8345_v36 = vpop.permute.xlu0 %8344  ;;  %7785 = vmatpush3.bf16.msra.mxu1 %v7782_v27 }
 0x61e   : > { %v8347_v13 = vunpack.i.h.bf16 %v8345_v36  ;;  %v8346_v44 = vunpack.i.l.bf16 %v8345_v36 }
 0x61f   : > { %v8360_v7 = vpop.permute.xlu1 %8359 }
 0x620   : > { %v8361_v10 = vunpack.i.l.bf16 %v8360_v7  ;;  %v6734_v37 = vsel %vm408_vm1, %v13162_v25, %v8346_v44  ;;  %v6710_v59 = vsel %vm408_vm1, %v12882_v52, %v8347_v13  ;;  %v8362_v39 = vunpack.i.h.bf16 %v8360_v7 }
 0x621   : > { %v8365_v41 = vpop.permute.xlu0 %8364  ;;  %v6742_v18 = vsel %vm412_vm3, %v6734_v37, %v8356_v35  ;;  %v6718_v53 = vsel %vm412_vm3, %v6710_v59, %v8357_v2 }
 0x622   : > { %v6735_v55 = vsel %vm408_vm1, %v13284_v24, %v8361_v10  ;;  %v8366_v38 = vunpack.i.l.bf16 %v8365_v41  ;;  %v6711_v52 = vsel %vm408_vm1, %v13075_v9, %v8362_v39  ;;  %v8367_v19 = vunpack.i.h.bf16 %v8365_v41 }
 0x624   : > { %v6743_v63 = vsel %vm412_vm3, %v6735_v55, %v8366_v38  ;;  %v6719_v27 = vsel %vm412_vm3, %v6711_v52, %v8367_v19 }
 0x628   : > { %v8370_v40 = vpop.permute.xlu0 %8369 }
 0x629   : > { %v8372_v31 = vunpack.i.h.bf16 %v8370_v40  ;;  %v8371_v6 = vunpack.i.l.bf16 %v8370_v40 }
 0x62b   : > { %v6750_v34 = vsel %vm416_vm5, %v6742_v18, %v8371_v6  ;;  %v6726_v61 = vsel %vm416_vm5, %v6718_v53, %v8372_v31  ;;  %v8380_v25 = vpop.permute.xlu1 %8379 }
 0x62c   : > { %v8375_v15 = vpop.permute.xlu0 %8374  ;;  %6889 = vmatprep.mubr.f32.mxu1 %v6750_v34  ;;  %v8382_v3 = vunpack.i.h.bf16 %v8380_v25  ;;  %v8381_v23 = vunpack.i.l.bf16 %v8380_v25 }
 0x62d   : > { %6890 = vmatmul.mubr.f32.gmra.mrb[40].mxu1 %v6726_v61  ;;  %v8377_v29 = vunpack.i.h.bf16 %v8375_v15  ;;  %v8376_v56 = vunpack.i.l.bf16 %v8375_v15 }
 0x62e   : > { %v6751_v50 = vsel %vm416_vm5, %v6743_v63, %v8381_v23  ;;  %v6727_v42 = vsel %vm416_vm5, %v6719_v27, %v8382_v3 }
 0x62f   : > { %v8385_v24 = vpop.permute.xlu1 %8384  ;;  %6894 = vmatprep.mubr.f32.mxu1 %v6751_v50  ;;  %v6736_v49 = vsel %vm408_vm1, %v13326_v46, %v8376_v56  ;;  %v6712_v28 = vsel %vm408_vm1, %v12997_v30, %v8377_v29 }
 0x630   : > { %v8395_v5 = vpop.permute.xlu0 %8394  ;;  %v8387_v58 = vunpack.i.h.bf16 %v8385_v24  ;;  %v8386_v9 = vunpack.i.l.bf16 %v8385_v24 }
 0x631   : > { %6895 = vmatmul.mubr.f32.gmra.mrb[42].mxu1 %v6727_v42  ;;  %v8397_v13 = vunpack.i.h.bf16 %v8395_v5  ;;  %v8396_v44 = vunpack.i.l.bf16 %v8395_v5 }
 0x632   : > { %v6744_v36 = vsel %vm412_vm3, %v6736_v49, %v8386_v9  ;;  %v6720_v16 = vsel %vm412_vm3, %v6712_v28, %v8387_v58 }
 0x633   : > { %v8390_v26 = vpop.permute.xlu1 %8389 }
 0x634   : > { %v8400_v17 = vpop.permute.xlu0 %8399  ;;  %v8392_v51 = vunpack.i.h.bf16 %v8390_v26  ;;  %v8391_v0 = vunpack.i.l.bf16 %v8390_v26 }
 0x635   : > { %v8402_v1 = vunpack.i.h.bf16 %v8400_v17  ;;  %v8401_v54 = vunpack.i.l.bf16 %v8400_v17 }
 0x636   : > { %v6737_v46 = vsel %vm408_vm1, %v13353_v45, %v8391_v0  ;;  %v6713_v2 = vsel %vm408_vm1, %v13191_v12, %v8392_v51 }
 0x637   : > { %v6752_v47 = vsel %vm416_vm5, %v6744_v36, %v8401_v54  ;;  %v6728_v41 = vsel %vm416_vm5, %v6720_v16, %v8402_v1  ;;  %v8410_v30 = vpop.permute.xlu1 %8409  ;;  %v6745_v39 = vsel %vm412_vm3, %v6737_v46, %v8396_v44  ;;  %v6721_v31 = vsel %vm412_vm3, %v6713_v2, %v8397_v13  ;;  %v7295_v44 = vld [vmem:[%s13672_s8] ss:$0 sm:$0xff] }
 0x638   : > { %v8405_v7 = vpop.permute.xlu0 %8404  ;;  %6899 = vmatprep.mubr.f32.mxu1 %v6752_v47  ;;  %v8412_v35 = vunpack.i.h.bf16 %v8410_v30  ;;  %v8411_v10 = vunpack.i.l.bf16 %v8410_v30 }
 0x639   : > { %v8407_v37 = vunpack.i.h.bf16 %v8405_v7  ;;  %v8406_v59 = vunpack.i.l.bf16 %v8405_v7  ;;  %6900 = vmatmul.mubr.f32.gmra.mrb[44].mxu1 %v6728_v41 }
 0x63a   : > { %v6753_v40 = vsel %vm416_vm5, %v6745_v39, %v8411_v10  ;;  %v6729_v18 = vsel %vm416_vm5, %v6721_v31, %v8412_v35 }
 0x63b   : > { %v8415_v45 = vpop.permute.xlu1 %8414  ;;  %6904 = vmatprep.mubr.f32.mxu1 %v6753_v40  ;;  %v6738_v53 = vsel %vm408_vm1, %v13366_v60, %v8406_v59  ;;  %v6714_v12 = vsel %vm408_vm1, %v13300_v11, %v8407_v37 }
 0x63c   : > { %v8425_v6 = vpop.permute.xlu0 %8424  ;;  %v8417_v34 = vunpack.i.h.bf16 %v8415_v45  ;;  %v8416_v61 = vunpack.i.l.bf16 %v8415_v45 }
 0x63d   : > { %v8427_v55 = vunpack.i.h.bf16 %v8425_v6  ;;  %v8426_v38 = vunpack.i.l.bf16 %v8425_v6  ;;  %6905 = vmatmul.mubr.f32.gmra.mrb[46].mxu1 %v6729_v18 }
 0x63e   : > { %v6746_v25 = vsel %vm412_vm3, %v6738_v53, %v8416_v61  ;;  %v6722_v15 = vsel %vm412_vm3, %v6714_v12, %v8417_v34 }
 0x63f   : > { %v8420_v52 = vpop.permute.xlu1 %8419  ;;  %v6754_v3 = vsel %vm416_vm5, %v6746_v25, %v8426_v38  ;;  %v6730_v23 = vsel %vm416_vm5, %v6722_v15, %v8427_v55 }
 0x640   : > { %v8430_v19 = vpop.permute.xlu0 %8429  ;;  %v8422_v63 = vunpack.i.h.bf16 %v8420_v52  ;;  %v8421_v60 = vunpack.i.l.bf16 %v8420_v52  ;;  %6909 = vmatprep.mubr.f32.mxu1 %v6754_v3 }
 0x641   : > { %v8432_v29 = vunpack.i.h.bf16 %v8430_v19  ;;  %v8431_v56 = vunpack.i.l.bf16 %v8430_v19  ;;  %6910 = vmatmul.mubr.f32.gmra.mrb[48].mxu1 %v6730_v23  ;;  %v14565_v23 = vmov 0.0|0.0  }
 0x642   : > { %v6739_v11 = vsel %vm408_vm1, %v13368_v33, %v8421_v60  ;;  %v6715_v50 = vsel %vm408_vm1, %v13329_v8, %v8422_v63 }
 0x643   : > { %v8435_v27 = vpop.permute.xlu1 %8434  ;;  %v6747_v24 = vsel %vm412_vm3, %v6739_v11, %v8431_v56  ;;  %v6723_v5 = vsel %vm412_vm3, %v6715_v50, %v8432_v29 }
 0x644   : > { %v8437_v42 = vunpack.i.h.bf16 %v8435_v27  ;;  %v8436_v58 = vunpack.i.l.bf16 %v8435_v27 }
 0x646   : > { %v6755_v9 = vsel %vm416_vm5, %v6747_v24, %v8436_v58  ;;  %v6731_v49 = vsel %vm416_vm5, %v6723_v5, %v8437_v42 }
 0x647   : > { %6914 = vmatprep.mubr.f32.mxu1 %v6755_v9 }
 0x648   : > { %6915 = vmatmul.mubr.f32.gmra.mrb[50].mxu1 %v6731_v49 }
 0x649   : > { %7594 = vmatprep.mubr.msk.f32.mxu1 %vm408_vm1, %v13019_v22  ;;  %v8514_v22 = vmov 0  }
 0x64a   : > { %8438 = vset.pattern.permute.xlu0 %v8514_v22  ;;  %v7033_v22 = vld [vmem:[%s13673_s9] sm:$0xf] }
 0x64c   : > { %7595 = vmatmul.mubr.msk.f32.vlgmr.msra.gmra.mrb[52].mxu1 %vm408_vm1, %v13197_v43 }
 0x64d   : > { %7597 = vmatprep.mubr.msk.f32.mxu1 %vm408_vm1, %v12954_v21  ;;  %v7034_v21 = vld [vmem:[%s13674_s10] sm:$0xf] }
 0x64e   : > { %7037 = vperm.xlu0 %8438, %v7034_v21  }
 0x650   : > { %7598 = vmatmul.mubr.msk.f32.gmra.mrb[54].mxu1 %vm408_vm1, %v13306_v32 }
 0x651   : > { %7600 = vmatprep.mubr.msk.f32.mxu1 %vm408_vm1, %v13315_v57 }
 0x654   : > { %7601 = vmatmul.mubr.msk.f32.gmra.mrb[56].mxu1 %vm408_vm1, %v13414_v48 }
 0x655   : > { %7603 = vmatprep.mubr.msk.f32.mxu1 %vm408_vm1, %v13385_v62 }
 0x658   : > { %7604 = vmatmul.mubr.msk.f32.gmra.mrb[58].mxu1 %vm408_vm1, %v6707_v4 }
 0x6eb   : > { %v7459_v43 = vpop.f32.mrb[36].mxu1 }
 0x6ec   : > { %v7460_v32 = vpop.f32.mrb[37].mxu1 }
 0x6ed   : > { %v7461_v57 = vadd.f32 %v7460_v32, %v7459_v43  ;;  %v7038_v43 = vpop.permute.xlu0 %7037 }
 0x6ef   : > { %v7462_v8 = vpop.f32.mrb[38].mxu1  ;;  %v6882_v35 = vadd.f32 %v7461_v57, %v7295_v44 }
 0x6f0   : > { %v7463_v33 = vpop.f32.mrb[39].mxu1 }
 0x6f1   : > { %v7464_v48 = vadd.f32 %v7463_v33, %v7462_v8 }
 0x6f3   : > { %v6887_v7 = vadd.f32 %v7464_v48, %v7295_v44 }
 0x700   : > { %v7465_v28 = vpop.f32.mrb[40].mxu1 }
 0x701   : > { %v7466_v62 = vpop.f32.mrb[41].mxu1 }
 0x702   : > { %v7467_v26 = vadd.f32 %v7466_v62, %v7465_v28 }
 0x704   : > { %v7468_v17 = vpop.f32.mrb[42].mxu1  ;;  %v6892_v6 = vadd.f32 %v7467_v26, %v7295_v44 }
 0x705   : > { %v7469_v20 = vpop.f32.mrb[43].mxu1 }
 0x706   : > { %v7470_v14 = vadd.f32 %v7469_v20, %v7468_v17 }
 0x708   : > { %v6897_v40 = vadd.f32 %v7470_v14, %v7295_v44 }
 0x70c   : > { %v7471_v4 = vpop.f32.mrb[44].mxu1 }
 0x70d   : > { %v7472_v51 = vpop.f32.mrb[45].mxu1 }
 0x70e   : > { %v7473_v0 = vadd.f32 %v7472_v51, %v7471_v4 }
 0x710   : > { %v7474_v1 = vpop.f32.mrb[46].mxu1  ;;  %v6902_v52 = vadd.f32 %v7473_v0, %v7295_v44 }
 0x711   : > { %v7475_v54 = vpop.f32.mrb[47].mxu1 }
 0x712   : > { %v7476_v36 = vadd.f32 %v7475_v54, %v7474_v1 }
 0x714   : > { %v7477_v16 = vpop.f32.mrb[48].mxu1  ;;  %v6907_v38 = vadd.f32 %v7476_v36, %v7295_v44 }
 0x715   : > { %v7478_v47 = vpop.f32.mrb[49].mxu1 }
 0x716   : > { %v7479_v41 = vadd.f32 %v7478_v47, %v7477_v16 }
 0x718   : > { %v6912_v27 = vadd.f32 %v7479_v41, %v7295_v44 }
 0x71b   : > { %v7480_v46 = vpop.f32.mrb[50].mxu1 }
 0x71c   : > { %v7481_v13 = vpop.f32.mrb[51].mxu1 }
 0x71d   : > { %v7482_v30 = vadd.f32 %v7481_v13, %v7480_v46 }
 0x71f   : > { %v7596_v2 = vpop.f32.mrb[52].mxu1  ;;  %v6917_v56 = vadd.f32 %v7482_v30, %v7295_v44 }
 0x720   : > { %v6992_v10 = vadd.f32 %v7596_v2, %v6887_v7  ;;  %v6986_v37 = vpop.f32.mrb[53].mxu1 }
 0x721   : > { %v6987_v59 = vadd.f32 %v6986_v37, %v6882_v35 }
 0x722   : > { %v7026_v39 = vmax.f32 %v6992_v10, 0.0 }
 0x723   : > { %v7025_v31 = vmax.f32 %v6987_v59, 0.0  ;;  %v7599_v45 = vpop.f32.mrb[54].mxu1 }
 0x724   : > { %v7002_v18 = vadd.f32 %v7599_v45, %v6897_v40  ;;  %v6996_v53 = vpop.f32.mrb[55].mxu1 }
 0x725   : > { %v7787_v34 = vpack.c.bf16 %v7026_v39, %v7025_v31  ;;  %v6997_v61 = vadd.f32 %v6996_v53, %v6892_v6 }
 0x726   : > { %v7028_v55 = vmax.f32 %v7002_v18, 0.0 }
 0x727   : > { %v7027_v25 = vmax.f32 %v6997_v61, 0.0  ;;  %v7602_v15 = vpop.f32.mrb[56].mxu1  ;;  %7789 = vmatpush3.bf16.xpose.msk.msra.mxu0 %vm13598_vm15, %v7787_v34 }
 0x728   : > { %v7012_v19 = vadd.f32 %v7602_v15, %v6907_v38  ;;  %v7006_v3 = vpop.f32.mrb[57].mxu1  ;;  %7790 = vmatprep.subr.bf16.mxu0 %v14565_v23 }
 0x729   : > { %v7791_v63 = vpack.c.bf16 %v7028_v55, %v7027_v25  ;;  %v7007_v60 = vadd.f32 %v7006_v3, %v6902_v52 }
 0x72a   : > { %v7030_v29 = vmax.f32 %v7012_v19, 0.0 }
 0x72b   : > { %v7029_v11 = vmax.f32 %v7007_v60, 0.0  ;;  %v7605_v50 = vpop.f32.mrb[58].mxu1 }
 0x72c   : > { %v7022_v24 = vadd.f32 %v7605_v50, %v6917_v56  ;;  %v7016_v5 = vpop.f32.mrb[59].mxu1 }
 0x72d   : > { %v7795_v42 = vpack.c.bf16 %v7030_v29, %v7029_v11  ;;  %v7017_v58 = vadd.f32 %v7016_v5, %v6912_v27 }
 0x72e   : > { %v7032_v9 = vmax.f32 %v7022_v24, 0.0 }
 0x72f   : > { %v7031_v49 = vmax.f32 %v7017_v58, 0.0  ;;  %7793 = vmatpush3.bf16.xpose.msk.msra.mxu0 %vm13598_vm15, %v7791_v63 }
 0x730   : > { %7794 = vmatprep.subr.bf16.mxu0 %v14565_v23 }
 0x731   : > { %v7799_v21 = vpack.c.bf16 %v7032_v9, %v7031_v49 }
 0x737   : > { %7797 = vmatpush3.bf16.xpose.msk.msra.mxu0 %vm13598_vm15, %v7795_v42 }
 0x738   : > { %7798 = vmatprep.subr.bf16.mxu0 %v14565_v23 }
 0x73f   : > { %7801 = vmatpush3.bf16.xpose.msk.msra.mxu0 %vm13598_vm15, %v7799_v21 }
 0x746   : > { %7623 = vmatmul.mubr.msk.f32.vlgmr.msra.gmra.mrb[72].mxu0 %vm408_vm1, %v7033_v22 }
 0x819   : > { %v7133_v32 = vpop.f32.mrb[72].mxu0 }
 0x81a   : > { %v7134_v57 = vadd.f32 %v7133_v32, %v7038_v43  ;;  %v7624_v8 = vpop.f32.mrb[73].mxu0 }
 0x81c   : > { %7138 = vst.msk [vmem:[%s375_s29] sm:$0xf] %vm7137_vm0, %v7134_v57 }
 0x81d   : > { %8452 = shalt.err (!%p8449_p3)
}
 0x81e   : > { %s8453_s30 = scalar_lea.hbm %s13622_s25, 64  ;;  %s8457_s2 = scalar_lea.hbm %s13675_s11, 128 }
 0x81f   : > { %p8454_p4 = scmp.ne.s32.totalorder %s13622_s25, %s8453_s30  ;;  %p8458_p9 = scmp.lt.u32.totalorder %s13622_s25, %s13675_s11 }
 0x820   : > { %p8459_p10 = scmp.lt.u32.totalorder %s8457_s2, %s8453_s30  ;;  %p8461_p12 = scmp.lt.u32.totalorder %s8453_s30, %s13622_s25 }
 0x821   : > { %p8455_p7 = pnand %p8454_p4, %p8614_p5 }
 0x822   : > { %p8460_p11 = por %p8459_p10, %p8458_p9 }
 0x823   : > { %p8456_p8 = pneg %p8455_p7 }
 0x824   : > { %p8462_p13 = por %p8461_p12, %p8460_p11 }
 0x826   : > { %p8463_p0 = pnand %p8462_p13, %p8456_p8 }
 0x828   : > { %8466 = shalt.err (!%p8463_p0)
}
 0x829   : > { %7802 = dma.vmem_to_hbm [thread:$0]  (%p8614_p5), %s13624_s16, 64, %s13622_s25, %s7140_s22  }
 0x82a PF: > { %p7808_p1 = scmp.ge.s32.totalorder %s8501_s20, 2  ;;  %s7165_s13 = sand.u32 1, %s8489_s17  }
 0x82b   : > { %s7166_s24 = scalar_lea.sflag [#allocation3], %s7165_s13 }
 0x82c   : > { %p7805_p2 = pnand %p7808_p1, %p8618_p6 }
 0x82e   : > { %8484 = dma.done.wait (!%p7805_p2), %s7166_s24, 64  }
 0x82f   : > { %8486 = vsyncadd (!%p7805_p2), %s7166_s24, 4294967232  ;;  %p21_p3 = scmp.ge.s32.totalorder %s8601_s23, 4   ;;  %s14566_s17 = smov %s8493_s18 }
 0x830   : > { %s14567_s18 = smov %s8497_s19  ;;  %s14568_s19 = smov %s8612_s26 }
 0x831   : > { %s14569_s20 = smov %s8601_s23  ;;  %23 = sbr.rel (!%p21_p3) target bundleno = 7 (0x7), region = 99 }
 0x838   :  { %7171 = vsyncpa [#allocation3], 1 }
 0x839   :  { %7173 = vsyncpa [#allocation3 + $0x1], 1 }

</bundles_post_ra>
